<compile_context>
chip_gen: v7x
topology: tpu7x:2x2x1
jax: 0.10.0
libtpu: 0.0.40
codegen_flags: <defaults>
</compile_context>

<pallas_src>
import numpy as np
import jax
import jax.numpy as jnp
from jax import lax
from jax.experimental import pallas as pl
from jax.experimental.pallas import tpu as pltpu


# ----------------------------------------------------------------------------
# Fused Pallas kernel
# ----------------------------------------------------------------------------
def _lenet_fused_kernel(x_ref, band1_ref, b1_ref, band2_ref, b2_ref,
                        fc1w_ref, fc1b_ref, fc2w_ref, fc2b_ref, out_ref):
    f32 = jnp.float32
    bf16 = jnp.bfloat16
    x = x_ref[...]                                        # (tb, 28, 28) f32
    tb = x.shape[0]

    # ---- conv1 (1->3, k=5) + bias + 2x2 maxpool + relu : ONE matmul --------
    # LHS row (b, oh) = 5 consecutive input rows concatenated along lanes.
    # RHS lanes = parity*36 + c*12 + pooled_ow  (parity = width-pool even/odd).
    lhs1 = jnp.concatenate([x[:, kh:kh + 24, :] for kh in range(5)],
                           axis=-1).reshape(tb * 24, 140)
    r1 = jnp.dot(lhs1.astype(bf16), band1_ref[...],
                 preferred_element_type=f32)              # (tb*24, 72)
    m1 = jnp.maximum(r1[:, :36], r1[:, 36:]) + b1_ref[...]   # width pool
    m1 = m1.reshape(tb, 12, 2, 36)                        # expose oh pairs
    h1 = jnp.maximum(jnp.maximum(m1[:, :, 0, :], m1[:, :, 1, :]), 0.0)  # (tb,12,36)

    # ---- conv2 (3->8, k=5) + bias + 2x2 maxpool + relu : ONE matmul --------
    # LHS row (b, oh2) = 5 consecutive h1 rows (lanes cin*12 + iw) concat'd.
    # RHS lanes = parity*32 + cout*4 + pooled_ow.
    lhs2 = jnp.concatenate([h1[:, kh:kh + 8, :] for kh in range(5)],
                           axis=-1).reshape(tb * 8, 180)
    r2 = jnp.dot(lhs2.astype(bf16), band2_ref[...],
                 preferred_element_type=f32)              # (tb*8, 64)
    m2 = jnp.maximum(r2[:, :32], r2[:, 32:]) + b2_ref[...]
    m2 = m2.reshape(tb, 4, 2, 32)
    h2 = jnp.maximum(jnp.maximum(m2[:, :, 0, :], m2[:, :, 1, :]), 0.0)  # (tb,4,32)

    # ---- flatten + fc1 + relu (dropout = identity): 4 accumulating dots ----
    a = fc1b_ref[...]                                     # (1, 50) f32
    for h in range(4):
        a = a + jnp.dot(h2[:, h, :].astype(bf16), fc1w_ref[h],
                        preferred_element_type=f32)       # (tb, 50)
    a = jnp.maximum(a, 0.0)

    # ---- fc2 + log_softmax -------------------------------------------------
    logits = jnp.dot(a.astype(bf16), fc2w_ref[...],
                     preferred_element_type=f32) + fc2b_ref[...]
    mx = jnp.max(logits, axis=-1, keepdims=True)
    s = logits - mx
    lse = jnp.log(jnp.sum(jnp.exp(s), axis=-1, keepdims=True))
    out_ref[...] = (s - lse).astype(out_ref.dtype)


# ----------------------------------------------------------------------------
# Wrapper
# ----------------------------------------------------------------------------
def _round_up(n, m):
    return ((n + m - 1) // m) * m


def _choose_batch_tile(B, batch_tile):
    """Pick a sublane-aligned batch tile: avoid pathological padding, keep
    >=2 grid steps when possible (v7x has 2 TensorCores on the parallel axis),
    and prefer bigger tiles (amortize ~0.35us/grid-step overhead)."""
    b8 = _round_up(max(B, 1), 8)
    cap = min(batch_tile, b8)
    if b8 >= 16:
        cap = min(cap, (b8 // 2 // 8) * 8)
    cap = max(8, (cap // 8) * 8)
    best_tb, best_cost = 8, None
    for tb in range(8, cap + 1, 8):
        b_pad = _round_up(b8, tb)
        cost = b_pad + 32 * (b_pad // tb)   # padded rows + per-step overhead
        if best_cost is None or cost < best_cost or (cost == best_cost and tb > best_tb):
            best_tb, best_cost = tb, cost
    return best_tb


def lenet_forward(x_nchw, params, *, batch_tile=256):
    B = x_nchw.shape[0]
    x = x_nchw.reshape(B, 28, 28).astype(jnp.float32)     # Cin == 1

    tb = _choose_batch_tile(B, batch_tile)
    b_pad = _round_up(B, tb)
    if b_pad != B:
        x = jnp.pad(x, ((0, b_pad - B), (0, 0), (0, 0)))

    out = pl.pallas_call(
        _lenet_fused_kernel,
        out_shape=jax.ShapeDtypeStruct((b_pad, 10), jnp.float32),
        grid=(b_pad // tb,),
        in_specs=[
            pl.BlockSpec((tb, 28, 28), lambda i: (i, 0, 0)),
            pl.BlockSpec((140, 72), lambda i: (0, 0)),     # conv1 merged band (bf16)
            pl.BlockSpec((1, 36), lambda i: (0, 0)),       # conv1 bias (lane-expanded)
            pl.BlockSpec((180, 64), lambda i: (0, 0)),     # conv2 merged band (bf16)
            pl.BlockSpec((1, 32), lambda i: (0, 0)),       # conv2 bias (lane-expanded)
            pl.BlockSpec((4, 32, 50), lambda i: (0, 0, 0)),  # fc1 (permuted, per-h)
            pl.BlockSpec((1, 50), lambda i: (0, 0)),
            pl.BlockSpec((50, 10), lambda i: (0, 0)),        # fc2
            pl.BlockSpec((1, 10), lambda i: (0, 0)),
        ],
        out_specs=pl.BlockSpec((tb, 10), lambda i: (i, 0)),
        compiler_params=pltpu.CompilerParams(
            dimension_semantics=("parallel",),
            vmem_limit_bytes=64 * 1024 * 1024),
    )(x, params["band1"], params["b1row"], params["band2"], params["b2row"],
      params["fc1w3"], params["fc1b_row"], params["fc2w_mat"], params["fc2b_row"])
    return out[:B]


# ----------------------------------------------------------------------------
# Init-time weight preparation (merged banded conv matrices, permuted fc1)
# ----------------------------------------------------------------------------
def _make_conv1_band(w1):
    """w1: (3,1,5,5) -> (140, 72). Rows = kh*28 + iw; lanes = parity*36 + c*12 + j."""
    w1 = np.asarray(w1, np.float32)
    cout, _, K, _ = w1.shape
    w_in, w_pool = 28, 12
    band = np.zeros((K * w_in, 2 * cout * w_pool), np.float32)
    for parity in range(2):
        for kh in range(K):
            for c in range(cout):
                for j in range(w_pool):
                    ow = 2 * j + parity
                    for kw in range(K):
                        band[kh * w_in + ow + kw,
                             parity * cout * w_pool + c * w_pool + j] = w1[c, 0, kh, kw]
    return band


def _make_conv2_band(w2):
    """w2: (8,3,5,5) -> (180, 64). Rows = kh*36 + cin*12 + iw; lanes = parity*32 + co*4 + j."""
    w2 = np.asarray(w2, np.float32)
    cout, cin, K, _ = w2.shape
    w_in, w_pool = 12, 4
    band = np.zeros((K * cin * w_in, 2 * cout * w_pool), np.float32)
    for parity in range(2):
        for kh in range(K):
            for ci in range(cin):
                for co in range(cout):
                    for j in range(w_pool):
                        ow = 2 * j + parity
                        for kw in range(K):
                            band[kh * cin * w_in + ci * w_in + ow + kw,
                                 parity * cout * w_pool + co * w_pool + j] = w2[co, ci, kh, kw]
    return band


def init_params(key):
    ks = jax.random.split(key, 8)
    k = 5
    w1 = 0.1 * jax.random.normal(ks[0], (3, 1, k, k), jnp.float32)
    b1 = 0.1 * jax.random.normal(ks[1], (3,), jnp.float32)
    w2 = 0.1 * jax.random.normal(ks[2], (8, 3, k, k), jnp.float32)
    b2 = 0.1 * jax.random.normal(ks[3], (8,), jnp.float32)
    fc1w = 0.1 * jax.random.normal(ks[4], (128, 50), jnp.float32)   # (in, out)
    fc1b = 0.1 * jax.random.normal(ks[5], (50,), jnp.float32)
    fc2w = 0.1 * jax.random.normal(ks[6], (50, 10), jnp.float32)
    fc2b = 0.1 * jax.random.normal(ks[7], (10,), jnp.float32)

    # Kernel's h2 layout is (h, cout*4 + w); PyTorch flatten is (c, h, w).
    # Absorb permutation into fc1's weight, reshaped per-h to (4, 32, 50).
    fc1w3 = fc1w.reshape(8, 4, 4, 50).transpose(1, 0, 2, 3).reshape(4, 32, 50)

    return {
        # raw weights (reference path)
        "w1": w1, "b1": b1, "w2": w2, "b2": b2,
        "fc1w": fc1w, "fc1b": fc1b, "fc2w": fc2w, "fc2b": fc2b,
        # kernel-ready (matmul operands in bf16, biases in f32)
        "band1": jnp.asarray(_make_conv1_band(w1), jnp.bfloat16),
        "b1row": jnp.repeat(b1, 12).reshape(1, 36),
        "band2": jnp.asarray(_make_conv2_band(w2), jnp.bfloat16),
        "b2row": jnp.repeat(b2, 4).reshape(1, 32),
        "fc1w3": fc1w3.astype(jnp.bfloat16),
        "fc1b_row": fc1b.reshape(1, 50),
        "fc2w_mat": fc2w.astype(jnp.bfloat16),
        "fc2b_row": fc2b.reshape(1, 10),
    }


# ----------------------------------------------------------------------------
# Pure-JAX reference (matches the PyTorch module in eval mode)
# ----------------------------------------------------------------------------
def lenet_reference(x_nchw, p):
    dn = ("NCHW", "OIHW", "NCHW")
    hp = lax.Precision.HIGHEST
    y = lax.conv_general_dilated(x_nchw, p["w1"], (1, 1), "VALID",
                                 dimension_numbers=dn, precision=hp)
    y = y + p["b1"][None, :, None, None]
    y = lax.reduce_window(y, -jnp.inf, lax.max, (1, 1, 2, 2), (1, 1, 2, 2), "VALID")
    y = jnp.maximum(y, 0.0)
    y = lax.conv_general_dilated(y, p["w2"], (1, 1), "VALID",
                                 dimension_numbers=dn, precision=hp)
    y = y + p["b2"][None, :, None, None]
    y = lax.reduce_window(y, -jnp.inf, lax.max, (1, 1, 2, 2), (1, 1, 2, 2), "VALID")
    y = jnp.maximum(y, 0.0)
    flat = y.reshape(y.shape[0], 128)
    a = jnp.maximum(jnp.dot(flat, p["fc1w"], precision=hp) + p["fc1b"], 0.0)
    logits = jnp.dot(a, p["fc2w"], precision=hp) + p["fc2b"]
    return jax.nn.log_softmax(logits, axis=-1)


# ----------------------------------------------------------------------------
if __name__ == "__main__":
    key = jax.random.PRNGKey(0)
    k_x, k_p = jax.random.split(key)
    x = jax.random.normal(k_x, (2, 1, 28, 28), jnp.float32)   # NCHW like PyTorch
    params = init_params(k_p)

    out = jax.jit(lenet_forward)(x, params)
    out = jax.block_until_ready(out)

    assert out.shape == (2, 10)
    assert out.dtype == jnp.float32
    # log_softmax rows must sum to ~1 in probability space
    assert bool(jnp.allclose(jnp.sum(jnp.exp(out), axis=1), 1.0, atol=1e-4))
    # match the pure-JAX reference of the PyTorch module (eval mode);
    # tolerance accounts for bf16 matmul operands (f32 accumulation).
    ref = lenet_reference(x, params)
    assert bool(jnp.allclose(out, ref, atol=2e-2, rtol=2e-2))

    print("KERNEL_OK")
</pallas_src>

<mosaic_0001>
module attributes {stable_mosaic.version = 11 : i64} {
  func.func @_lenet_fused_kernel(%arg0: i32, %arg1: memref<8x28x28xf32, #tpu.memory_space<vmem>>, %arg2: memref<140x72xbf16, #tpu.memory_space<vmem>>, %arg3: memref<1x36xf32, #tpu.memory_space<vmem>>, %arg4: memref<180x64xbf16, #tpu.memory_space<vmem>>, %arg5: memref<1x32xf32, #tpu.memory_space<vmem>>, %arg6: memref<4x32x50xbf16, #tpu.memory_space<vmem>>, %arg7: memref<1x50xf32, #tpu.memory_space<vmem>>, %arg8: memref<50x10xbf16, #tpu.memory_space<vmem>>, %arg9: memref<1x10xf32, #tpu.memory_space<vmem>>, %arg10: memref<8x10xf32, #tpu.memory_space<vmem>>) attributes {dimension_semantics = [#tpu.dimension_semantics<parallel>], iteration_bounds = array<i64: 1>, scalar_prefetch = 0 : i64, scratch_operands = 0 : i64, tpu.core_type = #tpu.core_type<tc>, window_params = [{transform_indices = @transform_0, window_bounds = array<i64: 8, 28, 28>}, {pipeline_mode = #tpu.pipeline_mode<synchronous>, transform_indices = @transform_1, window_bounds = array<i64: 140, 72>}, {pipeline_mode = #tpu.pipeline_mode<synchronous>, transform_indices = @transform_2, window_bounds = array<i64: 1, 36>}, {pipeline_mode = #tpu.pipeline_mode<synchronous>, transform_indices = @transform_3, window_bounds = array<i64: 180, 64>}, {pipeline_mode = #tpu.pipeline_mode<synchronous>, transform_indices = @transform_4, window_bounds = array<i64: 1, 32>}, {pipeline_mode = #tpu.pipeline_mode<synchronous>, transform_indices = @transform_5, window_bounds = array<i64: 4, 32, 50>}, {pipeline_mode = #tpu.pipeline_mode<synchronous>, transform_indices = @transform_6, window_bounds = array<i64: 1, 50>}, {pipeline_mode = #tpu.pipeline_mode<synchronous>, transform_indices = @transform_7, window_bounds = array<i64: 50, 10>}, {pipeline_mode = #tpu.pipeline_mode<synchronous>, transform_indices = @transform_8, window_bounds = array<i64: 1, 10>}, {transform_indices = @transform_9, window_bounds = array<i64: 8, 10>}]} {
    %c0 = arith.constant 0 : index
    %c0_0 = arith.constant 0 : index
    %c0_1 = arith.constant 0 : index
    %0 = vector.load %arg1[%c0, %c0_0, %c0_1] : memref<8x28x28xf32, #tpu.memory_space<vmem>>, vector<8x28x28xf32>
    %1 = vector.extract_strided_slice %0 {offsets = [0, 0, 0], sizes = [8, 24, 28], strides = [1, 1, 1]} : vector<8x28x28xf32> to vector<8x24x28xf32>
    %2 = vector.extract_strided_slice %0 {offsets = [0, 1, 0], sizes = [8, 24, 28], strides = [1, 1, 1]} : vector<8x28x28xf32> to vector<8x24x28xf32>
    %3 = vector.extract_strided_slice %0 {offsets = [0, 2, 0], sizes = [8, 24, 28], strides = [1, 1, 1]} : vector<8x28x28xf32> to vector<8x24x28xf32>
    %4 = vector.extract_strided_slice %0 {offsets = [0, 3, 0], sizes = [8, 24, 28], strides = [1, 1, 1]} : vector<8x28x28xf32> to vector<8x24x28xf32>
    %5 = vector.extract_strided_slice %0 {offsets = [0, 4, 0], sizes = [8, 24, 28], strides = [1, 1, 1]} : vector<8x28x28xf32> to vector<8x24x28xf32>
    %6 = tpu.concatenate %1, %2, %3, %4, %5 in 2 : vector<8x24x28xf32>, vector<8x24x28xf32>, vector<8x24x28xf32>, vector<8x24x28xf32>, vector<8x24x28xf32> -> vector<8x24x140xf32>
    %7 = vector.shape_cast %6 : vector<8x24x140xf32> to vector<192x140xf32>
    %8 = arith.truncf %7 : vector<192x140xf32> to vector<192x140xbf16>
    %c0_2 = arith.constant 0 : index
    %c0_3 = arith.constant 0 : index
    %9 = vector.load %arg2[%c0_2, %c0_3] : memref<140x72xbf16, #tpu.memory_space<vmem>>, vector<140x72xbf16>
    %cst = arith.constant dense<0.000000e+00> : vector<192x72xf32>
    %10 = tpu.matmul %8, %9, %cst {dimension_numbers = #tpu.dot_dimension_numbers<[1], [0], [0], [1], [0, 0, 1, 1], [], []>} : vector<192x140xbf16>, vector<140x72xbf16>, vector<192x72xf32> -> vector<192x72xf32>
    %11 = vector.extract_strided_slice %10 {offsets = [0, 0], sizes = [192, 36], strides = [1, 1]} : vector<192x72xf32> to vector<192x36xf32>
    %12 = vector.extract_strided_slice %10 {offsets = [0, 36], sizes = [192, 36], strides = [1, 1]} : vector<192x72xf32> to vector<192x36xf32>
    %13 = arith.maximumf %11, %12 : vector<192x36xf32>
    %c0_4 = arith.constant 0 : index
    %c0_5 = arith.constant 0 : index
    %14 = vector.load %arg3[%c0_4, %c0_5] : memref<1x36xf32, #tpu.memory_space<vmem>>, vector<1x36xf32>
    %15 = vector.broadcast %14 : vector<1x36xf32> to vector<192x36xf32>
    %16 = arith.addf %13, %15 : vector<192x36xf32>
    %17 = vector.shape_cast %16 : vector<192x36xf32> to vector<8x12x2x36xf32>
    %18 = vector.extract_strided_slice %17 {offsets = [0, 0, 0, 0], sizes = [8, 12, 1, 36], strides = [1, 1, 1, 1]} : vector<8x12x2x36xf32> to vector<8x12x1x36xf32>
    %19 = vector.shape_cast %18 : vector<8x12x1x36xf32> to vector<8x12x36xf32>
    %20 = vector.extract_strided_slice %17 {offsets = [0, 0, 1, 0], sizes = [8, 12, 1, 36], strides = [1, 1, 1, 1]} : vector<8x12x2x36xf32> to vector<8x12x1x36xf32>
    %21 = vector.shape_cast %20 : vector<8x12x1x36xf32> to vector<8x12x36xf32>
    %22 = arith.maximumf %19, %21 : vector<8x12x36xf32>
    %cst_6 = arith.constant 0.000000e+00 : f32
    %23 = vector.broadcast %cst_6 : f32 to vector<8x12x36xf32>
    %24 = arith.maximumf %22, %23 : vector<8x12x36xf32>
    %25 = vector.extract_strided_slice %24 {offsets = [0, 0, 0], sizes = [8, 8, 36], strides = [1, 1, 1]} : vector<8x12x36xf32> to vector<8x8x36xf32>
    %26 = vector.extract_strided_slice %24 {offsets = [0, 1, 0], sizes = [8, 8, 36], strides = [1, 1, 1]} : vector<8x12x36xf32> to vector<8x8x36xf32>
    %27 = vector.extract_strided_slice %24 {offsets = [0, 2, 0], sizes = [8, 8, 36], strides = [1, 1, 1]} : vector<8x12x36xf32> to vector<8x8x36xf32>
    %28 = vector.extract_strided_slice %24 {offsets = [0, 3, 0], sizes = [8, 8, 36], strides = [1, 1, 1]} : vector<8x12x36xf32> to vector<8x8x36xf32>
    %29 = vector.extract_strided_slice %24 {offsets = [0, 4, 0], sizes = [8, 8, 36], strides = [1, 1, 1]} : vector<8x12x36xf32> to vector<8x8x36xf32>
    %30 = tpu.concatenate %25, %26, %27, %28, %29 in 2 : vector<8x8x36xf32>, vector<8x8x36xf32>, vector<8x8x36xf32>, vector<8x8x36xf32>, vector<8x8x36xf32> -> vector<8x8x180xf32>
    %31 = vector.shape_cast %30 : vector<8x8x180xf32> to vector<64x180xf32>
    %32 = arith.truncf %31 : vector<64x180xf32> to vector<64x180xbf16>
    %c0_7 = arith.constant 0 : index
    %c0_8 = arith.constant 0 : index
    %33 = vector.load %arg4[%c0_7, %c0_8] : memref<180x64xbf16, #tpu.memory_space<vmem>>, vector<180x64xbf16>
    %cst_9 = arith.constant dense<0.000000e+00> : vector<64x64xf32>
    %34 = tpu.matmul %32, %33, %cst_9 {dimension_numbers = #tpu.dot_dimension_numbers<[1], [0], [0], [1], [0, 0, 1, 1], [], []>} : vector<64x180xbf16>, vector<180x64xbf16>, vector<64x64xf32> -> vector<64x64xf32>
    %35 = vector.extract_strided_slice %34 {offsets = [0, 0], sizes = [64, 32], strides = [1, 1]} : vector<64x64xf32> to vector<64x32xf32>
    %36 = vector.extract_strided_slice %34 {offsets = [0, 32], sizes = [64, 32], strides = [1, 1]} : vector<64x64xf32> to vector<64x32xf32>
    %37 = arith.maximumf %35, %36 : vector<64x32xf32>
    %c0_10 = arith.constant 0 : index
    %c0_11 = arith.constant 0 : index
    %38 = vector.load %arg5[%c0_10, %c0_11] : memref<1x32xf32, #tpu.memory_space<vmem>>, vector<1x32xf32>
    %39 = vector.broadcast %38 : vector<1x32xf32> to vector<64x32xf32>
    %40 = arith.addf %37, %39 : vector<64x32xf32>
    %41 = vector.shape_cast %40 : vector<64x32xf32> to vector<8x4x2x32xf32>
    %42 = vector.extract_strided_slice %41 {offsets = [0, 0, 0, 0], sizes = [8, 4, 1, 32], strides = [1, 1, 1, 1]} : vector<8x4x2x32xf32> to vector<8x4x1x32xf32>
    %43 = vector.shape_cast %42 : vector<8x4x1x32xf32> to vector<8x4x32xf32>
    %44 = vector.extract_strided_slice %41 {offsets = [0, 0, 1, 0], sizes = [8, 4, 1, 32], strides = [1, 1, 1, 1]} : vector<8x4x2x32xf32> to vector<8x4x1x32xf32>
    %45 = vector.shape_cast %44 : vector<8x4x1x32xf32> to vector<8x4x32xf32>
    %46 = arith.maximumf %43, %45 : vector<8x4x32xf32>
    %cst_12 = arith.constant 0.000000e+00 : f32
    %47 = vector.broadcast %cst_12 : f32 to vector<8x4x32xf32>
    %48 = arith.maximumf %46, %47 : vector<8x4x32xf32>
    %c0_13 = arith.constant 0 : index
    %c0_14 = arith.constant 0 : index
    %49 = vector.load %arg7[%c0_13, %c0_14] : memref<1x50xf32, #tpu.memory_space<vmem>>, vector<1x50xf32>
    %50 = vector.extract_strided_slice %48 {offsets = [0, 0, 0], sizes = [8, 1, 32], strides = [1, 1, 1]} : vector<8x4x32xf32> to vector<8x1x32xf32>
    %51 = vector.shape_cast %50 : vector<8x1x32xf32> to vector<8x32xf32>
    %52 = arith.truncf %51 : vector<8x32xf32> to vector<8x32xbf16>
    %c0_15 = arith.constant 0 : index
    %c0_16 = arith.constant 0 : index
    %c0_17 = arith.constant 0 : index
    %53 = vector.load %arg6[%c0_15, %c0_16, %c0_17] : memref<4x32x50xbf16, #tpu.memory_space<vmem>>, vector<1x32x50xbf16>
    %54 = vector.shape_cast %53 : vector<1x32x50xbf16> to vector<32x50xbf16>
    %cst_18 = arith.constant dense<0.000000e+00> : vector<8x50xf32>
    %55 = tpu.matmul %52, %54, %cst_18 {dimension_numbers = #tpu.dot_dimension_numbers<[1], [0], [0], [1], [0, 0, 1, 1], [], []>} : vector<8x32xbf16>, vector<32x50xbf16>, vector<8x50xf32> -> vector<8x50xf32>
    %56 = vector.broadcast %49 : vector<1x50xf32> to vector<8x50xf32>
    %57 = arith.addf %56, %55 : vector<8x50xf32>
    %58 = vector.extract_strided_slice %48 {offsets = [0, 1, 0], sizes = [8, 1, 32], strides = [1, 1, 1]} : vector<8x4x32xf32> to vector<8x1x32xf32>
    %59 = vector.shape_cast %58 : vector<8x1x32xf32> to vector<8x32xf32>
    %60 = arith.truncf %59 : vector<8x32xf32> to vector<8x32xbf16>
    %c1 = arith.constant 1 : index
    %c0_19 = arith.constant 0 : index
    %c0_20 = arith.constant 0 : index
    %61 = vector.load %arg6[%c1, %c0_19, %c0_20] : memref<4x32x50xbf16, #tpu.memory_space<vmem>>, vector<1x32x50xbf16>
    %62 = vector.shape_cast %61 : vector<1x32x50xbf16> to vector<32x50xbf16>
    %cst_21 = arith.constant dense<0.000000e+00> : vector<8x50xf32>
    %63 = tpu.matmul %60, %62, %cst_21 {dimension_numbers = #tpu.dot_dimension_numbers<[1], [0], [0], [1], [0, 0, 1, 1], [], []>} : vector<8x32xbf16>, vector<32x50xbf16>, vector<8x50xf32> -> vector<8x50xf32>
    %64 = arith.addf %57, %63 : vector<8x50xf32>
    %65 = vector.extract_strided_slice %48 {offsets = [0, 2, 0], sizes = [8, 1, 32], strides = [1, 1, 1]} : vector<8x4x32xf32> to vector<8x1x32xf32>
    %66 = vector.shape_cast %65 : vector<8x1x32xf32> to vector<8x32xf32>
    %67 = arith.truncf %66 : vector<8x32xf32> to vector<8x32xbf16>
    %c2 = arith.constant 2 : index
    %c0_22 = arith.constant 0 : index
    %c0_23 = arith.constant 0 : index
    %68 = vector.load %arg6[%c2, %c0_22, %c0_23] : memref<4x32x50xbf16, #tpu.memory_space<vmem>>, vector<1x32x50xbf16>
    %69 = vector.shape_cast %68 : vector<1x32x50xbf16> to vector<32x50xbf16>
    %cst_24 = arith.constant dense<0.000000e+00> : vector<8x50xf32>
    %70 = tpu.matmul %67, %69, %cst_24 {dimension_numbers = #tpu.dot_dimension_numbers<[1], [0], [0], [1], [0, 0, 1, 1], [], []>} : vector<8x32xbf16>, vector<32x50xbf16>, vector<8x50xf32> -> vector<8x50xf32>
    %71 = arith.addf %64, %70 : vector<8x50xf32>
    %72 = vector.extract_strided_slice %48 {offsets = [0, 3, 0], sizes = [8, 1, 32], strides = [1, 1, 1]} : vector<8x4x32xf32> to vector<8x1x32xf32>
    %73 = vector.shape_cast %72 : vector<8x1x32xf32> to vector<8x32xf32>
    %74 = arith.truncf %73 : vector<8x32xf32> to vector<8x32xbf16>
    %c3 = arith.constant 3 : index
    %c0_25 = arith.constant 0 : index
    %c0_26 = arith.constant 0 : index
    %75 = vector.load %arg6[%c3, %c0_25, %c0_26] : memref<4x32x50xbf16, #tpu.memory_space<vmem>>, vector<1x32x50xbf16>
    %76 = vector.shape_cast %75 : vector<1x32x50xbf16> to vector<32x50xbf16>
    %cst_27 = arith.constant dense<0.000000e+00> : vector<8x50xf32>
    %77 = tpu.matmul %74, %76, %cst_27 {dimension_numbers = #tpu.dot_dimension_numbers<[1], [0], [0], [1], [0, 0, 1, 1], [], []>} : vector<8x32xbf16>, vector<32x50xbf16>, vector<8x50xf32> -> vector<8x50xf32>
    %78 = arith.addf %71, %77 : vector<8x50xf32>
    %cst_28 = arith.constant 0.000000e+00 : f32
    %79 = vector.broadcast %cst_28 : f32 to vector<8x50xf32>
    %80 = arith.maximumf %78, %79 : vector<8x50xf32>
    %81 = arith.truncf %80 : vector<8x50xf32> to vector<8x50xbf16>
    %c0_29 = arith.constant 0 : index
    %c0_30 = arith.constant 0 : index
    %82 = vector.load %arg8[%c0_29, %c0_30] : memref<50x10xbf16, #tpu.memory_space<vmem>>, vector<50x10xbf16>
    %cst_31 = arith.constant dense<0.000000e+00> : vector<8x10xf32>
    %83 = tpu.matmul %81, %82, %cst_31 {dimension_numbers = #tpu.dot_dimension_numbers<[1], [0], [0], [1], [0, 0, 1, 1], [], []>} : vector<8x50xbf16>, vector<50x10xbf16>, vector<8x10xf32> -> vector<8x10xf32>
    %c0_32 = arith.constant 0 : index
    %c0_33 = arith.constant 0 : index
    %84 = vector.load %arg9[%c0_32, %c0_33] : memref<1x10xf32, #tpu.memory_space<vmem>>, vector<1x10xf32>
    %85 = vector.broadcast %84 : vector<1x10xf32> to vector<8x10xf32>
    %86 = arith.addf %83, %85 : vector<8x10xf32>
    %cst_34 = arith.constant dense<0xFF800000> : vector<8xf32>
    %87 = vector.multi_reduction <maximumf>, %86, %cst_34 [1] : vector<8x10xf32> to vector<8xf32>
    %88 = vector.shape_cast %87 : vector<8xf32> to vector<8x1xf32>
    %89 = vector.broadcast %88 : vector<8x1xf32> to vector<8x10xf32>
    %90 = arith.subf %86, %89 : vector<8x10xf32>
    %91 = math.exp %90 : vector<8x10xf32>
    %cst_35 = arith.constant dense<0.000000e+00> : vector<8xf32>
    %92 = vector.multi_reduction <add>, %91, %cst_35 [1] : vector<8x10xf32> to vector<8xf32>
    %93 = vector.shape_cast %92 : vector<8xf32> to vector<8x1xf32>
    %94 = math.log %93 : vector<8x1xf32>
    %95 = vector.broadcast %94 : vector<8x1xf32> to vector<8x10xf32>
    %96 = arith.subf %90, %95 : vector<8x10xf32>
    %c0_36 = arith.constant 0 : index
    %c0_37 = arith.constant 0 : index
    %97 = vector.load %arg10[%c0_36, %c0_37] : memref<8x10xf32, #tpu.memory_space<vmem>>, vector<8x10xf32>
    tpu.vector_store %arg10[%c0_36, %c0_37], %96 {strides = array<i32>} : memref<8x10xf32, #tpu.memory_space<vmem>>, vector<8x10xf32>,
    return
  }
  func.func @transform_0(%arg0: i32) -> (i32, i32, i32) {
    %c0_i32 = arith.constant 0 : i32
    %c0_i32_0 = arith.constant 0 : i32
    %c0_i32_1 = arith.constant 0 : i32
    return %arg0, %c0_i32, %c0_i32_0 : i32, i32, i32
  }
  func.func @transform_1(%arg0: i32) -> (i32, i32) {
    %c0_i32 = arith.constant 0 : i32
    %c0_i32_0 = arith.constant 0 : i32
    %c0_i32_1 = arith.constant 0 : i32
    return %c0_i32, %c0_i32_0 : i32, i32
  }
  func.func @transform_2(%arg0: i32) -> (i32, i32) {
    %c0_i32 = arith.constant 0 : i32
    %c0_i32_0 = arith.constant 0 : i32
    %c0_i32_1 = arith.constant 0 : i32
    return %c0_i32, %c0_i32_0 : i32, i32
  }
  func.func @transform_3(%arg0: i32) -> (i32, i32) {
    %c0_i32 = arith.constant 0 : i32
    %c0_i32_0 = arith.constant 0 : i32
    %c0_i32_1 = arith.constant 0 : i32
    return %c0_i32, %c0_i32_0 : i32, i32
  }
  func.func @transform_4(%arg0: i32) -> (i32, i32) {
    %c0_i32 = arith.constant 0 : i32
    %c0_i32_0 = arith.constant 0 : i32
    %c0_i32_1 = arith.constant 0 : i32
    return %c0_i32, %c0_i32_0 : i32, i32
  }
  func.func @transform_5(%arg0: i32) -> (i32, i32, i32) {
    %c0_i32 = arith.constant 0 : i32
    %c0_i32_0 = arith.constant 0 : i32
    %c0_i32_1 = arith.constant 0 : i32
    %c0_i32_2 = arith.constant 0 : i32
    return %c0_i32, %c0_i32_0, %c0_i32_1 : i32, i32, i32
  }
  func.func @transform_6(%arg0: i32) -> (i32, i32) {
    %c0_i32 = arith.constant 0 : i32
    %c0_i32_0 = arith.constant 0 : i32
    %c0_i32_1 = arith.constant 0 : i32
    return %c0_i32, %c0_i32_0 : i32, i32
  }
  func.func @transform_7(%arg0: i32) -> (i32, i32) {
    %c0_i32 = arith.constant 0 : i32
    %c0_i32_0 = arith.constant 0 : i32
    %c0_i32_1 = arith.constant 0 : i32
    return %c0_i32, %c0_i32_0 : i32, i32
  }
  func.func @transform_8(%arg0: i32) -> (i32, i32) {
    %c0_i32 = arith.constant 0 : i32
    %c0_i32_0 = arith.constant 0 : i32
    %c0_i32_1 = arith.constant 0 : i32
    return %c0_i32, %c0_i32_0 : i32, i32
  }
  func.func @transform_9(%arg0: i32) -> (i32, i32) {
    %c0_i32 = arith.constant 0 : i32
    %c0_i32_0 = arith.constant 0 : i32
    return %arg0, %c0_i32 : i32, i32
  }
}

</mosaic_0001>

<bundles_post_ra>
// kernel: lenet_forward.1
= control target key start
LH: loop header
LB: loop body
LE: loop exit
PB: predicated region body
PF: predicated region fallthrough
CT: control target
= control target key end

     0   :  { %14 = vsyncpa [#allocation3], 0  ;;  %s7077_s0 = inlined_call_operand.hbm [shape: f32[8,28,28], index: 0, kind: input, shape index: {}]   ;;  %s7078_s1 = inlined_call_operand.hbm [shape: bf16[140,72], index: 1, kind: input, shape index: {}]   ;;  %s7079_s2 = inlined_call_operand.hbm [shape: f32[1,36], index: 2, kind: input, shape index: {}]   ;;  %s7080_s3 = inlined_call_operand.hbm [shape: bf16[180,64], index: 3, kind: input, shape index: {}]   ;;  %s7081_s4 = inlined_call_operand.hbm [shape: f32[1,32], index: 4, kind: input, shape index: {}]   ;;  %s7082_s5 = inlined_call_operand.hbm [shape: bf16[4,32,50], index: 5, kind: input, shape index: {}]   ;;  %s7083_s6 = inlined_call_operand.hbm [shape: f32[1,50], index: 6, kind: input, shape index: {}]   ;;  %s7084_s7 = inlined_call_operand.hbm [shape: bf16[50,10], index: 7, kind: input, shape index: {}]   ;;  %s7085_s8 = inlined_call_operand.hbm [shape: f32[1,10], index: 8, kind: input, shape index: {}]   ;;  %s7086_s9 = inlined_call_operand.hbm [shape: f32[8,10], index: 9, kind: output, shape index: {}]  }
   0x1   :  { %15 = vsyncpa [#allocation6], 0 }
   0x2   :  { %16 = vsyncpa [#allocation9], 0 }
   0x3   :  { %17 = vsyncpa [#allocation12], 0 }
   0x4   :  { %18 = vsyncpa [#allocation15], 0 }
   0x5   :  { %19 = vsyncpa [#allocation4], 0  ;;  %s5134_s30 = smov [#allocation5]   ;;  %s4902_s13 = scalar_lea.hbm %s7078_s1, 1152 }
   0x6   :  { %s37_s10 = sshll.u32 %s5134_s30, 4  ;;  %p4903_p0 = scmp.ne.s32.totalorder %s7078_s1, %s4902_s13  ;;  %s38_s10 = int_to_ptr.vmem [resolvable:$true] %s37_s10 }
   0x7   :  { %p4906_p1 = scmp.lt.u32.totalorder %s4902_s13, %s7078_s1 }
   0x9   :  { %p4908_p2 = pnand %p4906_p1, %p4903_p0 }
   0xb   :  { %4911 = shalt.err (!%p4908_p2)
}
   0xc   :  { %s4912_s18 = scalar_lea.vmem %s38_s10, 1152  ;;  %p4917_p4 = scmp.lt.s32.totalorder %s38_s10, %s38_s10 }
   0xd   :  { %p4913_p3 = scmp.ne.s32.totalorder %s38_s10, %s4912_s18  ;;  %p4918_p5 = scmp.lt.s32.totalorder %s4912_s18, %s4912_s18 }
   0xf   :  { %p4919_p6 = por %p4918_p5, %p4917_p4 }
  0x11   :  { %p4920_p7 = pnand %p4919_p6, %p4913_p3 }
  0x13   :  { %4923 = shalt.err (!%p4920_p7)
}
  0x14   :  { %s5135_s19 = smov 64   ;;  %s5136_s20 = smov 4  }
  0x15   :  { %43 = dma.hbm_to_vmem [thread:$0]  %s7078_s1, 1152, %s38_s10, [#allocation6], %s5135_s19, %s5135_s19, %s5136_s20  }
  0x16   :  { %s5137_s23 = smov [#allocation8]   ;;  %s5138_s25 = smov [#allocation11]  }
  0x17   :  { %s59_s24 = sshll.u32 %s5137_s23, 4  ;;  %s81_s26 = sshll.u32 %s5138_s25, 4  ;;  %s60_s24 = int_to_ptr.vmem [resolvable:$true] %s59_s24  ;;  %s82_s26 = int_to_ptr.vmem [resolvable:$true] %s81_s26 }
  0x18   :  { %s4924_s29 = scalar_lea.hbm %s7080_s3, 1472 }
  0x19   :  { %p4925_p8 = scmp.ne.s32.totalorder %s7080_s3, %s4924_s29  ;;  %p4928_p9 = scmp.lt.u32.totalorder %s4924_s29, %s7080_s3 }
  0x1b   :  { %p4930_p10 = pnand %p4928_p9, %p4925_p8 }
  0x1d   :  { %4933 = shalt.err (!%p4930_p10)
}
  0x1e   :  { %s4934_s1 = scalar_lea.vmem %s60_s24, 1472  ;;  %p4939_p12 = scmp.lt.s32.totalorder %s60_s24, %s60_s24 }
  0x1f   :  { %p4935_p11 = scmp.ne.s32.totalorder %s60_s24, %s4934_s1  ;;  %p4940_p13 = scmp.lt.s32.totalorder %s4934_s1, %s4934_s1 }
  0x21   :  { %p4941_p0 = por %p4940_p13, %p4939_p12 }
  0x23   :  { %p4942_p1 = pnand %p4941_p0, %p4935_p11 }
  0x25   :  { %4945 = shalt.err (!%p4942_p1)
}
  0x26   :  { %65 = dma.hbm_to_vmem [thread:$0]  %s7080_s3, 1472, %s60_s24, [#allocation9], %s5135_s19, %s5135_s19, %s5136_s20  }
  0x27   :  { %s4946_s17 = scalar_lea.hbm %s7082_s5, 1024 }
  0x28   :  { %p4947_p2 = scmp.ne.s32.totalorder %s7082_s5, %s4946_s17  ;;  %p4950_p3 = scmp.lt.u32.totalorder %s4946_s17, %s7082_s5 }
  0x2a   :  { %p4952_p4 = pnand %p4950_p3, %p4947_p2 }
  0x2c   :  { %4955 = shalt.err (!%p4952_p4)
}
  0x2d   :  { %s4956_s25 = scalar_lea.vmem %s82_s26, 1024  ;;  %p4961_p6 = scmp.lt.s32.totalorder %s82_s26, %s82_s26 }
  0x2e   :  { %p4957_p5 = scmp.ne.s32.totalorder %s82_s26, %s4956_s25  ;;  %p4962_p7 = scmp.lt.s32.totalorder %s4956_s25, %s4956_s25 }
  0x30   :  { %p4963_p8 = por %p4962_p7, %p4961_p6 }
  0x32   :  { %p4964_p9 = pnand %p4963_p8, %p4957_p5 }
  0x34   :  { %4967 = shalt.err (!%p4964_p9)
}
  0x35   :  { %87 = dma.hbm_to_vmem [thread:$0]  %s7082_s5, 1024, %s82_s26, [#allocation12], %s5135_s19, %s5135_s19, %s5136_s20  }
  0x36   :  { %s5139_s27 = smov [#allocation14]   ;;  %s5140_s29 = smov [#allocation2]  }
  0x37   :  { %s103_s28 = sshll.u32 %s5139_s27, 4  ;;  %s25_s30 = sshll.u32 %s5140_s29, 4  ;;  %s104_s28 = int_to_ptr.vmem [resolvable:$true] %s103_s28  ;;  %s26_s30 = int_to_ptr.vmem [resolvable:$true] %s25_s30 }
  0x38   :  { %s4968_s13 = scalar_lea.hbm %s7084_s7, 448 }
  0x39   :  { %p4969_p10 = scmp.ne.s32.totalorder %s7084_s7, %s4968_s13  ;;  %p4972_p11 = scmp.lt.u32.totalorder %s4968_s13, %s7084_s7 }
  0x3b   :  { %p4974_p12 = pnand %p4972_p11, %p4969_p10 }
  0x3d   :  { %4977 = shalt.err (!%p4974_p12)
}
  0x3e   :  { %s4978_s5 = scalar_lea.vmem %s104_s28, 448  ;;  %p4983_p0 = scmp.lt.s32.totalorder %s104_s28, %s104_s28 }
  0x3f   :  { %p4979_p13 = scmp.ne.s32.totalorder %s104_s28, %s4978_s5  ;;  %p4984_p1 = scmp.lt.s32.totalorder %s4978_s5, %s4978_s5 }
  0x41   :  { %p4985_p2 = por %p4984_p1, %p4983_p0 }
  0x43   :  { %p4986_p3 = pnand %p4985_p2, %p4979_p13 }
  0x45   :  { %4989 = shalt.err (!%p4986_p3)
}
  0x46   :  { %109 = dma.hbm_to_vmem [thread:$0]  %s7084_s7, 448, %s104_s28, [#allocation15], %s5135_s19, %s5135_s19, %s5136_s20  }
  0x47   :  { %s4990_s21 = scalar_lea.hbm %s7077_s0, 4096 }
  0x48   :  { %p4991_p4 = scmp.ne.s32.totalorder %s7077_s0, %s4990_s21  ;;  %p4994_p5 = scmp.lt.u32.totalorder %s4990_s21, %s7077_s0 }
  0x4a   :  { %p4996_p6 = pnand %p4994_p5, %p4991_p4 }
  0x4c   :  { %4999 = shalt.err (!%p4996_p6)
}
  0x4d   :  { %s5000_s24 = scalar_lea.vmem %s26_s30, 4096  ;;  %p5005_p8 = scmp.lt.s32.totalorder %s26_s30, %s26_s30 }
  0x4e   :  { %p5001_p7 = scmp.ne.s32.totalorder %s26_s30, %s5000_s24  ;;  %p5006_p9 = scmp.lt.s32.totalorder %s5000_s24, %s5000_s24 }
  0x50   :  { %p5007_p10 = por %p5006_p9, %p5005_p8 }
  0x52   :  { %p5008_p11 = pnand %p5007_p10, %p5001_p7 }
  0x54   :  { %5011 = shalt.err (!%p5008_p11)
}
  0x55   :  { %s5141_s7 = smov 128   ;;  %s5142_s19 = smov 8  }
  0x56   :  { %31 = dma.hbm_to_vmem [thread:$0]  %s7077_s0, 4096, %s26_s30, [#allocation3], %s5141_s7, %s5141_s7, %s5142_s19  }
  0x57   :  { %s5143_s28 = smov [#allocation7]   ;;  %s5144_s11 = smov [#allocation10]  }
  0x58   :  { %s50_s29 = sshll.u32 %s5143_s28, 4  ;;  %s72_s12 = sshll.u32 %s5144_s11, 4  ;;  %s51_s29 = int_to_ptr.vmem [resolvable:$true] %s50_s29  ;;  %s73_s12 = int_to_ptr.vmem [resolvable:$true] %s72_s12 }
  0x59   :  { %s5012_s10 = scalar_lea.hbm %s7079_s2, 16 }
  0x5a   :  { %p5013_p12 = scmp.ne.s32.totalorder %s7079_s2, %s5012_s10  ;;  %p5016_p13 = scmp.lt.u32.totalorder %s5012_s10, %s7079_s2 }
  0x5c   :  { %p5018_p0 = pnand %p5016_p13, %p5013_p12 }
  0x5e   :  { %5021 = shalt.err (!%p5018_p0)
}
  0x5f   :  { %s5022_s0 = scalar_lea.vmem %s51_s29, 16  ;;  %s5026_s30 = scalar_lea.vmem %s51_s29, 32 }
  0x60   :  { %p5023_p1 = scmp.ne.s32.totalorder %s51_s29, %s5022_s0  ;;  %p5027_p2 = scmp.lt.s32.totalorder %s51_s29, %s51_s29 }
  0x61   :  { %p5028_p3 = scmp.lt.s32.totalorder %s5026_s30, %s5022_s0 }
  0x63   :  { %p5029_p4 = por %p5028_p3, %p5027_p2 }
  0x65   :  { %p5030_p5 = pnand %p5029_p4, %p5023_p1 }
  0x67   :  { %5033 = shalt.err (!%p5030_p5)
}
  0x68   :  { %53 = dma.hbm_to_vmem [thread:$0]  %s7079_s2, 16, %s51_s29, [#allocation6]  }
  0x69   :  { %s5034_s22 = scalar_lea.hbm %s7081_s4, 16 }
  0x6a   :  { %p5035_p6 = scmp.ne.s32.totalorder %s7081_s4, %s5034_s22  ;;  %p5038_p7 = scmp.lt.u32.totalorder %s5034_s22, %s7081_s4 }
  0x6c   :  { %p5040_p8 = pnand %p5038_p7, %p5035_p6 }
  0x6e   :  { %5043 = shalt.err (!%p5040_p8)
}
  0x6f   :  { %s5044_s7 = scalar_lea.vmem %s73_s12, 16  ;;  %s5048_s19 = scalar_lea.vmem %s73_s12, 32 }
  0x70   :  { %p5045_p9 = scmp.ne.s32.totalorder %s73_s12, %s5044_s7  ;;  %p5049_p10 = scmp.lt.s32.totalorder %s73_s12, %s73_s12 }
  0x71   :  { %p5050_p11 = scmp.lt.s32.totalorder %s5048_s19, %s5044_s7 }
  0x73   :  { %p5051_p12 = por %p5050_p11, %p5049_p10 }
  0x75   :  { %p5052_p13 = pnand %p5051_p12, %p5045_p9 }
  0x77   :  { %5055 = shalt.err (!%p5052_p13)
}
  0x78   :  { %75 = dma.hbm_to_vmem [thread:$0]  %s7081_s4, 16, %s73_s12, [#allocation9]  }
  0x79   :  { %s5145_s27 = smov [#allocation13]   ;;  %s5146_s29 = smov [#allocation16]  }
  0x7a   :  { %s94_s28 = sshll.u32 %s5145_s27, 4  ;;  %s116_s11 = sshll.u32 %s5146_s29, 4  ;;  %s95_s28 = int_to_ptr.vmem [resolvable:$true] %s94_s28  ;;  %s117_s11 = int_to_ptr.vmem [resolvable:$true] %s116_s11 }
  0x7b   :  { %s5056_s10 = scalar_lea.hbm %s7083_s6, 16 }
  0x7c   :  { %p5057_p0 = scmp.ne.s32.totalorder %s7083_s6, %s5056_s10  ;;  %p5060_p1 = scmp.lt.u32.totalorder %s5056_s10, %s7083_s6 }
  0x7e   :  { %p5062_p2 = pnand %p5060_p1, %p5057_p0 }
  0x80   :  { %5065 = shalt.err (!%p5062_p2)
}
  0x81   :  { %s5066_s4 = scalar_lea.vmem %s95_s28, 16  ;;  %s5070_s12 = scalar_lea.vmem %s95_s28, 32 }
  0x82   :  { %p5067_p3 = scmp.ne.s32.totalorder %s95_s28, %s5066_s4  ;;  %p5071_p4 = scmp.lt.s32.totalorder %s95_s28, %s95_s28 }
  0x83   :  { %p5072_p5 = scmp.lt.s32.totalorder %s5070_s12, %s5066_s4 }
  0x85   :  { %p5073_p6 = por %p5072_p5, %p5071_p4 }
  0x87   :  { %p5074_p7 = pnand %p5073_p6, %p5067_p3 }
  0x89   :  { %5077 = shalt.err (!%p5074_p7)
}
  0x8a   :  { %97 = dma.hbm_to_vmem [thread:$0]  %s7083_s6, 16, %s95_s28, [#allocation12]  }
  0x8b   :  { %s5078_s18 = scalar_lea.hbm %s7085_s8, 16 }
  0x8c   :  { %p5079_p8 = scmp.ne.s32.totalorder %s7085_s8, %s5078_s18  ;;  %p5082_p9 = scmp.lt.u32.totalorder %s5078_s18, %s7085_s8 }
  0x8e   :  { %p5084_p10 = pnand %p5082_p9, %p5079_p8 }
  0x90   :  { %5087 = shalt.err (!%p5084_p10)
}
  0x91   :  { %s5088_s3 = scalar_lea.vmem %s117_s11, 16  ;;  %s5092_s24 = scalar_lea.vmem %s117_s11, 32 }
  0x92   :  { %p5089_p11 = scmp.ne.s32.totalorder %s117_s11, %s5088_s3  ;;  %p5093_p12 = scmp.lt.s32.totalorder %s117_s11, %s117_s11 }
  0x93   :  { %p5094_p13 = scmp.lt.s32.totalorder %s5092_s24, %s5088_s3 }
  0x95   :  { %p5095_p0 = por %p5094_p13, %p5093_p12 }
  0x97   :  { %p5096_p1 = pnand %p5095_p0, %p5089_p11 }
  0x99   :  { %5099 = shalt.err (!%p5096_p1)
}
  0x9a   :  { %119 = dma.hbm_to_vmem [thread:$0]  %s7085_s8, 16, %s117_s11, [#allocation15]  }
  0x9b   :  { %5122 = dma.done.wait [#allocation3], 4096  }
  0x9c   :  { %5123 = vsyncadd [#allocation3], 4294963200 }
  0x9d   :  { %5124 = dma.done.wait [#allocation6], 1168  }
  0x9e   :  { %5125 = vsyncadd [#allocation6], 4294966128 }
  0x9f   :  { %5126 = dma.done.wait [#allocation9], 1488  }
  0xa0   :  { %5127 = vsyncadd [#allocation9], 4294965808 }
  0xa1   :  { %5128 = dma.done.wait [#allocation12], 1040  }
  0xa2   :  { %5129 = vsyncadd [#allocation12], 4294966256 }
  0xa3   :  { %5130 = dma.done.wait [#allocation15], 464  }
  0xa4   :  { %5131 = vsyncadd [#allocation15], 4294966832  ;;  %v7087_v0 = vmov 0   ;;  %vm212_vm0 = vcmask 1046528   ;;  %v5334_v1 = vld [vmem:[#allocation2] sm:$0xff]  ;;  %v5336_v2 = vld [vmem:[#allocation2 + $0x8] sm:$0xff] }
  0xa5   :  { %963 = vmatprep.subr.bf16.mxu0 %v7087_v0  ;;  %3275 = vmatprep.subr.bf16.mxu1 %v7087_v0  ;;  %v5338_v3 = vld [vmem:[#allocation2 + $0x10] sm:$0xff]  ;;  %vm470_vm1 = vcmask 1044480   ;;  %vm341_vm2 = vcmask 1045504   ;;  %vm599_vm3 = vcmask 1043456   ;;  %v213_v4 = vrot.slane %v5334_v1, 1  ;;  %v5352_v17 = vld [vmem:[#allocation2 + $0x20] sm:$0xff] }
  0xa6   :  { %v214_v5 = vrot.slane %v5336_v2, 1  ;;  %v216_v6 = vrot.slane %v5338_v3, 1  ;;  %v471_v7 = vrot.slane %v5334_v1, 3  ;;  %v472_v8 = vrot.slane %v5336_v2, 3  ;;  %v151_v16 = vld [vmem:[#allocation2 + $0x18] sm:$0xf] }
  0xa7   :  { %v474_v9 = vrot.slane %v5338_v3, 3  ;;  %v342_v10 = vrot.slane %v5334_v1, 2  ;;  %v343_v11 = vrot.slane %v5336_v2, 2  ;;  %v345_v14 = vrot.slane %v5338_v3, 2  ;;  %v5354_v18 = vld [vmem:[#allocation2 + $0x28] sm:$0xff]  ;;  %s5148_s8 = smov 28  }
  0xa8   :  { %v215_v12 = vsel %vm212_vm0, %v213_v4, %v214_v5  ;;  %v217_v13 = vsel %vm212_vm0, %v214_v5, %v216_v6  ;;  %v600_v15 = vrot.slane %v5334_v1, 4  ;;  %v473_v20 = vsel %vm470_vm1, %v471_v7, %v472_v8  ;;  %s5149_s19 = smov 84   ;;  %v5372_v39 = vld [vmem:[#allocation2 + $0x30] sm:$0xff]  ;;  %v155_v44 = vld [vmem:[#allocation2 + $0x38] sm:$0xf]  ;;  %s5150_s2 = smov 56  }
  0xa9   :  { %v4544_v19 = vpack.i.bf16 %v217_v13, %v215_v12  ;;  %v475_v21 = vsel %vm470_vm1, %v472_v8, %v474_v9  ;;  %v344_v22 = vsel %vm341_vm2, %v342_v10, %v343_v11  ;;  %v346_v24 = vsel %vm341_vm2, %v343_v11, %v345_v14  ;;  %s5151_s20 = smov 112   ;;  %v5387_v57 = vld [vmem:[#allocation2 + $0x40] sm:$0xff]  ;;  %v5394_v5 = vld [vmem:[#allocation2 + $0x48] sm:$0xff]  ;;  %s5152_s27 = smov 92  }
  0xaa   :  { %v4554_v23 = vpack.i.bf16 %v475_v21, %v473_v20  ;;  %v601_v25 = vrot.slane %v5336_v2, 4  ;;  %v603_v26 = vrot.slane %v5338_v3, 4  ;;  %v4549_v27 = vpack.i.bf16 %v346_v24, %v344_v22  ;;  %v4864_v61 = vld [vmem:[#allocation5] sm:$0xff]   ;;  %v4865_v10 = vld [vmem:[#allocation5 + $0x8] sm:$0xff]   ;;  %s5154_s28 = smov 36   ;;  %s5155_s29 = smov 72  }
  0xab   :  { %4545 = vrot.lane.b32.xlu0 %v4544_v19, %s5148_s8  ;;  %v218_v28 = vrot.slane %v151_v16, 1  ;;  %v220_v29 = vrot.slane %v5352_v17, 1  ;;  %v221_v30 = vrot.slane %v5354_v18, 1  ;;  %v347_v33 = vrot.slane %v151_v16, 2  ;;  %964 = vmatpush1.bf16.msra.mxu0 %v4864_v61  ;;  %v4869_v61 = vld [vmem:[#allocation5 + $0x28] sm:$0xff]   ;;  %s5156_s11 = smov 108  }
  0xac   :  { %4555 = vrot.lane.b32.xlu1 %v4554_v23, %s5149_s19  ;;  %v602_v31 = vsel %vm599_vm3, %v600_v15, %v601_v25  ;;  %v604_v32 = vsel %vm599_vm3, %v601_v25, %v603_v26  ;;  %v349_v34 = vrot.slane %v5352_v17, 2  ;;  %v350_v38 = vrot.slane %v5354_v18, 2  ;;  %965 = vmatprep.subr.bf16.mxu0 %v7087_v0  ;;  %v4866_v25 = vld [vmem:[#allocation5 + $0x10] sm:$0xff]   ;;  %s5157_s13 = smov 16   ;;  %s5158_s1 = smov 96  }
  0xad   :  { %v4559_v35 = vpack.i.bf16 %v604_v32, %v602_v31  ;;  %v219_v36 = vsel %vm212_vm0, %v216_v6, %v218_v28  ;;  %v222_v37 = vsel %vm212_vm0, %v220_v29, %v221_v30  ;;  %v348_v41 = vsel %vm341_vm2, %v345_v14, %v347_v33  ;;  %v5416_v31 = vld [vmem:[#allocation2 + $0x58] sm:$0xf]  ;;  %s5161_s10 = smov [#allocation17]  }
  0xae   :  { %v4564_v40 = vpack.i.bf16 %v222_v37, %v219_v36  ;;  %v476_v42 = vrot.slane %v151_v16, 3  ;;  %v478_v43 = vrot.slane %v5352_v17, 3  ;;  %v351_v45 = vsel %vm341_vm2, %v349_v34, %v350_v38  ;;  %v5423_v36 = vld [vmem:[#allocation2 + $0x60] sm:$0xff]  ;;  %s4243_s14 = sshll.u32 %s5161_s10, 4  ;;  %s4244_s14 = int_to_ptr.vmem [resolvable:$true] %s4243_s14 }
  0xaf   :  { %4550 = vrot.lane.b32.xlu0 %v4549_v27, %s5150_s2  ;;  %v479_v46 = vrot.slane %v5354_v18, 3  ;;  %v605_v47 = vrot.slane %v151_v16, 4  ;;  %v607_v48 = vrot.slane %v5352_v17, 4  ;;  %v4569_v49 = vpack.i.bf16 %v351_v45, %v348_v41  ;;  %966 = vmatpush1.bf16.msra.mxu0 %v4865_v10  ;;  %s5100_s15 = scalar_lea.vmem %s4244_s14, 128  ;;  %p5105_p3 = scmp.lt.s32.totalorder %s4244_s14, %s4244_s14 }
  0xb0   :  { %4560 = vrot.lane.b32.xlu1 %v4559_v35, %s5151_s20  ;;  %v477_v50 = vsel %vm470_vm1, %v474_v9, %v476_v42  ;;  %v608_v51 = vrot.slane %v5354_v18, 4  ;;  %v223_v52 = vrot.slane %v5372_v39, 1  ;;  %v225_v55 = vrot.slane %v155_v44, 1  ;;  %v5398_v9 = vld [vmem:[#allocation2 + $0x50] sm:$0xff]  ;;  %967 = vmatprep.subr.bf16.mxu0 %v7087_v0  ;;  %v5430_v42 = vld [vmem:[#allocation2 + $0x68] sm:$0xff]  ;;  %p5101_p2 = scmp.ne.s32.totalorder %s4244_s14, %s5100_s15  ;;  %p5106_p4 = scmp.lt.s32.totalorder %s5100_s15, %s5100_s15 }
  0xb1   :  { %v480_v53 = vsel %vm470_vm1, %v478_v43, %v479_v46  ;;  %v606_v54 = vsel %vm599_vm3, %v603_v26, %v605_v47  ;;  %v352_v56 = vrot.slane %v5372_v39, 2  ;;  %v354_v60 = vrot.slane %v155_v44, 2  ;;  %v4867_v43 = vld [vmem:[#allocation5 + $0x18] sm:$0xff]  }
  0xb2   :  { %v609_v58 = vsel %vm599_vm3, %v607_v48, %v608_v51  ;;  %v224_v59 = vsel %vm212_vm0, %v221_v30, %v223_v52  ;;  %v4574_v62 = vpack.i.bf16 %v480_v53, %v477_v50  ;;  %v226_v63 = vsel %vm212_vm0, %v223_v52, %v225_v55  ;;  %p5107_p5 = por %p5106_p4, %p5105_p3 }
  0xb3   :  { %4565 = vrot.lane.b32.xlu0 %v4564_v40, %s5148_s8  ;;  %v481_v4 = vrot.slane %v5372_v39, 3  ;;  %v4579_v6 = vpack.i.bf16 %v609_v58, %v606_v54  ;;  %v483_v7 = vrot.slane %v155_v44, 3  ;;  %v610_v8 = vrot.slane %v5372_v39, 4  ;;  %968 = vmatpush1.bf16.msra.mxu0 %v4866_v25  ;;  %v4868_v54 = vld [vmem:[#allocation5 + $0x20] sm:$0xff]  }
  0xb4   :  { %4570 = vrot.lane.b32.xlu1 %v4569_v49, %s5150_s2  ;;  %v4584_v11 = vpack.i.bf16 %v226_v63, %v224_v59  ;;  %v353_v12 = vsel %vm341_vm2, %v350_v38, %v352_v56  ;;  %v355_v13 = vsel %vm341_vm2, %v352_v56, %v354_v60  ;;  %v612_v14 = vrot.slane %v155_v44, 4  ;;  %969 = vmatprep.subr.bf16.mxu0 %v7087_v0  ;;  %v5448_v60 = vld [vmem:[#allocation2 + $0x70] sm:$0xff]  ;;  %v5468_v25 = vld [vmem:[#allocation2 + $0x80] sm:$0xff]  ;;  %p5108_p6 = pnand %p5107_p5, %p5101_p2 }
  0xb5   :  { %v482_v15 = vsel %vm470_vm1, %v479_v46, %v481_v4  ;;  %v484_v16 = vsel %vm470_vm1, %v481_v4, %v483_v7  ;;  %v611_v19 = vsel %vm599_vm3, %v608_v51, %v610_v8  ;;  %v227_v20 = vrot.slane %v5387_v57, 1  ;;  %v163_v7 = vld [vmem:[#allocation2 + $0x78] sm:$0xf] }
  0xb6   :  { %v613_v21 = vsel %vm599_vm3, %v610_v8, %v612_v14  ;;  %v228_v22 = vrot.slane %v5394_v5, 1  ;;  %v230_v23 = vrot.slane %v5398_v9, 1  ;;  %v356_v24 = vrot.slane %v5387_v57, 2 }
  0xb7   :  { %4575 = vrot.lane.b32.xlu0 %v4574_v62, %s5149_s19  ;;  %v4589_v26 = vpack.i.bf16 %v355_v13, %v353_v12  ;;  %v357_v27 = vrot.slane %v5394_v5, 2  ;;  %v359_v28 = vrot.slane %v5398_v9, 2  ;;  %v4594_v29 = vpack.i.bf16 %v484_v16, %v482_v15  ;;  %970 = vmatpush1.bf16.msra.mxu0 %v4867_v43 }
  0xb8   :  { %4580 = vrot.lane.b32.xlu1 %v4579_v6, %s5151_s20  ;;  %v4599_v30 = vpack.i.bf16 %v613_v21, %v611_v19  ;;  %v229_v32 = vsel %vm212_vm0, %v227_v20, %v228_v22  ;;  %v231_v33 = vsel %vm212_vm0, %v228_v22, %v230_v23  ;;  %v485_v34 = vrot.slane %v5387_v57, 3  ;;  %971 = vmatprep.subr.bf16.mxu0 %v7087_v0 }
  0xb9   :  { %v486_v35 = vrot.slane %v5394_v5, 3  ;;  %v358_v37 = vsel %vm341_vm2, %v356_v24, %v357_v27  ;;  %v360_v38 = vsel %vm341_vm2, %v357_v27, %v359_v28  ;;  %v488_v40 = vrot.slane %v5398_v9, 3  ;;  %v4870_v27 = vld [vmem:[#allocation5 + $0x30] sm:$0xff]  }
  0xba   :  { %v614_v41 = vrot.slane %v5387_v57, 4  ;;  %v615_v44 = vrot.slane %v5394_v5, 4  ;;  %v617_v45 = vrot.slane %v5398_v9, 4  ;;  %v4604_v46 = vpack.i.bf16 %v231_v33, %v229_v32 }
  0xbb   :  { %4585 = vrot.lane.b32.xlu0 %v4584_v11, %s5148_s8  ;;  %v4609_v47 = vpack.i.bf16 %v360_v38, %v358_v37  ;;  %v487_v48 = vsel %vm470_vm1, %v485_v34, %v486_v35  ;;  %v232_v49 = vrot.slane %v5416_v31, 1  ;;  %v489_v50 = vsel %vm470_vm1, %v486_v35, %v488_v40  ;;  %972 = vmatpush1.bf16.msra.mxu0 %v4868_v54  ;;  %v5479_v37 = vld [vmem:[#allocation2 + $0x90] sm:$0xff]  ;;  %v4871_v38 = vld [vmem:[#allocation5 + $0x38] sm:$0xff]  }
  0xbc   :  { %4590 = vrot.lane.b32.xlu1 %v4589_v26, %s5150_s2  ;;  %v234_v51 = vrot.slane %v5423_v36, 1  ;;  %v235_v52 = vrot.slane %v5430_v42, 1  ;;  %v361_v53 = vrot.slane %v5416_v31, 2  ;;  %v616_v55 = vsel %vm599_vm3, %v614_v41, %v615_v44  ;;  %973 = vmatprep.subr.bf16.mxu0 %v7087_v0  ;;  %v5470_v26 = vld [vmem:[#allocation2 + $0x88] sm:$0xff] }
  0xbd   :  { %v618_v56 = vsel %vm599_vm3, %v615_v44, %v617_v45  ;;  %v363_v58 = vrot.slane %v5423_v36, 2  ;;  %v364_v59 = vrot.slane %v5430_v42, 2  ;;  %v4614_v62 = vpack.i.bf16 %v489_v50, %v487_v48 }
  0xbe   :  { %v233_v63 = vsel %vm212_vm0, %v230_v23, %v232_v49  ;;  %v490_v4 = vrot.slane %v5416_v31, 3  ;;  %v492_v6 = vrot.slane %v5423_v36, 3  ;;  %v4619_v8 = vpack.i.bf16 %v618_v56, %v616_v55 }
  0xbf   :  { %4595 = vrot.lane.b32.xlu0 %v4594_v29, %s5149_s19  ;;  %v236_v10 = vsel %vm212_vm0, %v234_v51, %v235_v52  ;;  %v493_v11 = vrot.slane %v5430_v42, 3  ;;  %v619_v12 = vrot.slane %v5416_v31, 4  ;;  %v362_v13 = vsel %vm341_vm2, %v359_v28, %v361_v53  ;;  %974 = vmatpush1.bf16.msra.mxu0 %v4869_v61 }
  0xc0   :  { %4600 = vrot.lane.b32.xlu1 %v4599_v30, %s5151_s20  ;;  %v365_v14 = vsel %vm341_vm2, %v363_v58, %v364_v59  ;;  %v621_v15 = vrot.slane %v5423_v36, 4  ;;  %v622_v16 = vrot.slane %v5430_v42, 4  ;;  %v4624_v19 = vpack.i.bf16 %v236_v10, %v233_v63  ;;  %975 = vmatprep.subr.bf16.mxu0 %v7087_v0  ;;  %v5506_v10 = vld [vmem:[#allocation2 + $0xa8] sm:$0xff] }
  0xc1   :  { %v237_v20 = vrot.slane %v5448_v60, 1  ;;  %v4629_v21 = vpack.i.bf16 %v365_v14, %v362_v13  ;;  %v491_v22 = vsel %vm470_vm1, %v488_v40, %v490_v4  ;;  %v494_v23 = vsel %vm470_vm1, %v492_v6, %v493_v11 }
  0xc2   :  { %v239_v24 = vrot.slane %v163_v7, 1  ;;  %v620_v28 = vsel %vm599_vm3, %v617_v45, %v619_v12  ;;  %v623_v29 = vsel %vm599_vm3, %v621_v15, %v622_v16  ;;  %v366_v30 = vrot.slane %v5448_v60, 2 }
  0xc3   :  { %4605 = vrot.lane.b32.xlu0 %v4604_v46, %s5148_s8  ;;  %v368_v31 = vrot.slane %v163_v7, 2  ;;  %v495_v32 = vrot.slane %v5448_v60, 3  ;;  %v497_v33 = vrot.slane %v163_v7, 3  ;;  %v4634_v34 = vpack.i.bf16 %v494_v23, %v491_v22  ;;  %976 = vmatpush1.bf16.msra.mxu0 %v4870_v27 }
  0xc4   :  { %4610 = vrot.lane.b32.xlu1 %v4609_v47, %s5150_s2  ;;  %v238_v35 = vsel %vm212_vm0, %v235_v52, %v237_v20  ;;  %v4639_v40 = vpack.i.bf16 %v623_v29, %v620_v28  ;;  %v240_v41 = vsel %vm212_vm0, %v237_v20, %v239_v24  ;;  %v624_v43 = vrot.slane %v5448_v60, 4  ;;  %977 = vmatprep.subr.bf16.mxu0 %v7087_v0 }
  0xc5   :  { %v626_v44 = vrot.slane %v163_v7, 4  ;;  %v367_v45 = vsel %vm341_vm2, %v364_v59, %v366_v30  ;;  %v369_v46 = vsel %vm341_vm2, %v366_v30, %v368_v31  ;;  %v241_v47 = vrot.slane %v5468_v25, 1  ;;  %v167_v7 = vld [vmem:[#allocation2 + $0x98] sm:$0xf] }
  0xc6   :  { %v242_v48 = vrot.slane %v5470_v26, 1  ;;  %v496_v49 = vsel %vm470_vm1, %v493_v11, %v495_v32  ;;  %v498_v50 = vsel %vm470_vm1, %v495_v32, %v497_v33  ;;  %v244_v51 = vrot.slane %v5479_v37, 1 }
  0xc7   :  { %4615 = vrot.lane.b32.xlu0 %v4614_v62, %s5149_s19  ;;  %v370_v52 = vrot.slane %v5468_v25, 2  ;;  %v4644_v53 = vpack.i.bf16 %v240_v41, %v238_v35  ;;  %v371_v54 = vrot.slane %v5470_v26, 2  ;;  %v373_v55 = vrot.slane %v5479_v37, 2  ;;  %978 = vmatpush1.bf16.msra.mxu0 %v4871_v38  ;;  %v5529_v41 = vld [vmem:[#allocation2 + $0xb0] sm:$0xff] }
  0xc8   :  { %4620 = vrot.lane.b32.xlu1 %v4619_v8, %s5151_s20  ;;  %v4649_v56 = vpack.i.bf16 %v369_v46, %v367_v45  ;;  %v4654_v58 = vpack.i.bf16 %v498_v50, %v496_v49  ;;  %v625_v59 = vsel %vm599_vm3, %v622_v16, %v624_v43  ;;  %v627_v61 = vsel %vm599_vm3, %v624_v43, %v626_v44  ;;  %v5504_v8 = vld [vmem:[#allocation2 + $0xa0] sm:$0xff]  ;;  %v171_v43 = vld [vmem:[#allocation2 + $0xb8] sm:$0xf] }
  0xc9   :  { %979 = vmatprep.subr.bf16.mxu0 %v7087_v0  ;;  %v243_v62 = vsel %vm212_vm0, %v241_v47, %v242_v48  ;;  %v245_v63 = vsel %vm212_vm0, %v242_v48, %v244_v51  ;;  %v499_v4 = vrot.slane %v5468_v25, 3  ;;  %v500_v6 = vrot.slane %v5470_v26, 3 }
  0xca   :  { %v372_v11 = vsel %vm341_vm2, %v370_v52, %v371_v54  ;;  %v374_v12 = vsel %vm341_vm2, %v371_v54, %v373_v55  ;;  %v502_v13 = vrot.slane %v5479_v37, 3  ;;  %v628_v14 = vrot.slane %v5468_v25, 4 }
  0xcb   :  { %4625 = vrot.lane.b32.xlu0 %v4624_v19, %s5148_s8  ;;  %v4659_v15 = vpack.i.bf16 %v627_v61, %v625_v59  ;;  %v629_v16 = vrot.slane %v5470_v26, 4  ;;  %v631_v19 = vrot.slane %v5479_v37, 4  ;;  %v4664_v20 = vpack.i.bf16 %v245_v63, %v243_v62 }
  0xcc   :  { %4630 = vrot.lane.b32.xlu1 %v4629_v21, %s5150_s2  ;;  %v4669_v21 = vpack.i.bf16 %v374_v12, %v372_v11  ;;  %v501_v22 = vsel %vm470_vm1, %v499_v4, %v500_v6  ;;  %v246_v23 = vrot.slane %v167_v7, 1  ;;  %v248_v24 = vrot.slane %v5504_v8, 1 }
  0xcd   :  { %v249_v27 = vrot.slane %v5506_v10, 1  ;;  %v503_v28 = vsel %vm470_vm1, %v500_v6, %v502_v13  ;;  %v630_v29 = vsel %vm599_vm3, %v628_v14, %v629_v16  ;;  %v632_v30 = vsel %vm599_vm3, %v629_v16, %v631_v19  ;;  %v5550_v14 = vld [vmem:[#allocation2 + $0xc0] sm:$0xff]  ;;  %v5553_v16 = vld [vmem:[#allocation2 + $0xc8] sm:$0xff] }
  0xce   :  { %v375_v31 = vrot.slane %v167_v7, 2  ;;  %v377_v32 = vrot.slane %v5504_v8, 2  ;;  %v378_v33 = vrot.slane %v5506_v10, 2  ;;  %v4679_v35 = vpack.i.bf16 %v632_v30, %v630_v29 }
  0xcf   :  { %4635 = vrot.lane.b32.xlu0 %v4634_v34, %s5149_s19  ;;  %v4674_v34 = vpack.i.bf16 %v503_v28, %v501_v22  ;;  %v247_v38 = vsel %vm212_vm0, %v244_v51, %v246_v23  ;;  %v504_v45 = vrot.slane %v167_v7, 3  ;;  %v506_v46 = vrot.slane %v5504_v8, 3  ;;  %v4872_v22 = vld [vmem:[#allocation5 + $0x40] sm:$0x3f]  }
  0xd0   :  { %4640 = vrot.lane.b32.xlu1 %v4639_v40, %s5151_s20  ;;  %v250_v40 = vsel %vm212_vm0, %v248_v24, %v249_v27  ;;  %v376_v44 = vsel %vm341_vm2, %v373_v55, %v375_v31  ;;  %v507_v47 = vrot.slane %v5506_v10, 3  ;;  %v379_v48 = vsel %vm341_vm2, %v377_v32, %v378_v33 }
  0xd1   :  { %v633_v49 = vrot.slane %v167_v7, 4  ;;  %v635_v50 = vrot.slane %v5504_v8, 4  ;;  %v636_v51 = vrot.slane %v5506_v10, 4  ;;  %v251_v52 = vrot.slane %v5529_v41, 1 }
  0xd2   :  { %v4684_v54 = vpack.i.bf16 %v250_v40, %v247_v38  ;;  %v4689_v55 = vpack.i.bf16 %v379_v48, %v376_v44  ;;  %v380_v59 = vrot.slane %v5529_v41, 2  ;;  %v382_v63 = vrot.slane %v171_v43, 2 }
  0xd3   :  { %4645 = vrot.lane.b32.xlu0 %v4644_v53, %s5148_s8  ;;  %v253_v53 = vrot.slane %v171_v43, 1  ;;  %v634_v61 = vsel %vm599_vm3, %v631_v19, %v633_v49  ;;  %v637_v62 = vsel %vm599_vm3, %v635_v50, %v636_v51  ;;  %v509_v4 = vrot.slane %v5529_v41, 3  ;;  %v5555_v19 = vld [vmem:[#allocation2 + $0xd0] sm:$0xff] }
  0xd4   :  { %4650 = vrot.lane.b32.xlu1 %v4649_v56, %s5150_s2  ;;  %v505_v56 = vsel %vm470_vm1, %v502_v13, %v504_v45  ;;  %v252_v6 = vsel %vm212_vm0, %v249_v27, %v251_v52  ;;  %v511_v11 = vrot.slane %v171_v43, 3  ;;  %v638_v12 = vrot.slane %v5529_v41, 4 }
  0xd5   :  { %v254_v7 = vsel %vm212_vm0, %v251_v52, %v253_v53  ;;  %v383_v24 = vsel %vm341_vm2, %v380_v59, %v382_v63  ;;  %v510_v27 = vsel %vm470_vm1, %v507_v47, %v509_v4  ;;  %v255_v28 = vrot.slane %v5550_v14, 1  ;;  %v175_v52 = vld [vmem:[#allocation2 + $0xd8] sm:$0xf] }
  0xd6   :  { %v4704_v23 = vpack.i.bf16 %v254_v7, %v252_v6  ;;  %v512_v29 = vsel %vm470_vm1, %v509_v4, %v511_v11  ;;  %v639_v30 = vsel %vm599_vm3, %v636_v51, %v638_v12  ;;  %v256_v31 = vrot.slane %v5553_v16, 1 }
  0xd7   :  { %4655 = vrot.lane.b32.xlu0 %v4654_v58, %s5149_s19  ;;  %v508_v58 = vsel %vm470_vm1, %v506_v46, %v507_v47  ;;  %v258_v32 = vrot.slane %v5555_v19, 1  ;;  %v387_v38 = vrot.slane %v5555_v19, 2  ;;  %v4714_v44 = vpack.i.bf16 %v512_v29, %v510_v27 }
  0xd8   :  { %4660 = vrot.lane.b32.xlu1 %v4659_v15, %s5151_s20  ;;  %v4694_v13 = vpack.i.bf16 %v508_v58, %v505_v56  ;;  %v640_v15 = vrot.slane %v171_v43, 4  ;;  %v961_v43 = vsel %vm341_vm2, %v4872_v22, 0  ;;  %v257_v46 = vsel %vm212_vm0, %v255_v28, %v256_v31  ;;  %v5585_v58 = vld [vmem:[#allocation2 + $0xe0] sm:$0xff] }
  0xd9   :  { %980 = vmatpush1.bf16.msra.mxu0 %v961_v43  ;;  %v259_v47 = vsel %vm212_vm0, %v256_v31, %v258_v32  ;;  %v513_v50 = vrot.slane %v5550_v14, 3  ;;  %v514_v51 = vrot.slane %v5553_v16, 3  ;;  %v516_v53 = vrot.slane %v5555_v19, 3  ;;  %v179_v43 = vld [vmem:[#allocation2 + $0xf8] sm:$0xf] }
  0xda   :  { %v645_v56 = vrot.slane %v5555_v19, 4  ;;  %v260_v4 = vrot.slane %v175_v52, 1  ;;  %v262_v6 = vrot.slane %v5585_v58, 1  ;;  %v518_v29 = vrot.slane %v175_v52, 3 }
  0xdb   :  { %4665 = vrot.lane.b32.xlu0 %v4664_v20, %s5148_s8  ;;  %v4699_v20 = vpack.i.bf16 %v637_v62, %v634_v61  ;;  %v4724_v61 = vpack.i.bf16 %v259_v47, %v257_v46  ;;  %v515_v63 = vsel %vm470_vm1, %v513_v50, %v514_v51  ;;  %v517_v11 = vsel %vm470_vm1, %v514_v51, %v516_v53 }
  0xdc   :  { %4670 = vrot.lane.b32.xlu1 %v4669_v21, %s5150_s2  ;;  %v381_v21 = vsel %vm341_vm2, %v378_v33, %v380_v59  ;;  %v641_v33 = vsel %vm599_vm3, %v638_v12, %v640_v15  ;;  %v5587_v59 = vld [vmem:[#allocation2 + $0xe8] sm:$0xff]  ;;  %v389_v15 = vrot.slane %v175_v52, 2  ;;  %v4734_v22 = vpack.i.bf16 %v517_v11, %v515_v63 }
  0xdd   :  { %v4709_v40 = vpack.i.bf16 %v383_v24, %v381_v21  ;;  %v4719_v45 = vpack.i.bf16 %v641_v33, %v639_v30  ;;  %v263_v7 = vrot.slane %v5587_v59, 1  ;;  %v392_v21 = vrot.slane %v5587_v59, 2  ;;  %v5606_v33 = vld [vmem:[#allocation2 + $0xf0] sm:$0xff] }
  0xde   :  { %v261_v24 = vsel %vm212_vm0, %v258_v32, %v260_v4  ;;  %v390_v28 = vsel %vm341_vm2, %v387_v38, %v389_v15  ;;  %v520_v30 = vrot.slane %v5585_v58, 3  ;;  %v521_v31 = vrot.slane %v5587_v59, 3 }
  0xdf   :  { %4675 = vrot.lane.b32.xlu0 %v4674_v34, %s5149_s19  ;;  %v384_v34 = vrot.slane %v5550_v14, 2  ;;  %v264_v27 = vsel %vm212_vm0, %v262_v6, %v263_v7  ;;  %v650_v32 = vrot.slane %v5587_v59, 4  ;;  %v519_v46 = vsel %vm470_vm1, %v516_v53, %v518_v29 }
  0xe0   :  { %4680 = vrot.lane.b32.xlu1 %v4679_v35, %s5151_s20  ;;  %v385_v35 = vrot.slane %v5553_v16, 2  ;;  %v522_v47 = vsel %vm470_vm1, %v520_v30, %v521_v31  ;;  %v394_v51 = vrot.slane %v5606_v33, 2  ;;  %v525_v63 = vrot.slane %v179_v43, 3 }
  0xe1   :  { %v652_v6 = vrot.slane %v5606_v33, 4  ;;  %v654_v11 = vrot.slane %v179_v43, 4  ;;  %vm728_vm4 = vcmask 228352   ;;  %vm753_vm5 = vcmask 457728  }
  0xe2   :  { %v386_v48 = vsel %vm341_vm2, %v384_v34, %v385_v35  ;;  %v388_v49 = vsel %vm341_vm2, %v385_v35, %v387_v38  ;;  %v647_v35 = vrot.slane %v175_v52, 4  ;;  %v265_v38 = vrot.slane %v5606_v33, 1 }
  0xe3   :  { %4685 = vrot.lane.b32.xlu0 %v4684_v54, %s5148_s8  ;;  %v642_v54 = vrot.slane %v5550_v14, 4  ;;  %v4729_v62 = vpack.i.bf16 %v388_v49, %v386_v48  ;;  %v267_v48 = vrot.slane %v179_v43, 1  ;;  %v396_v52 = vrot.slane %v179_v43, 2 }
  0xe4   :  { %4690 = vrot.lane.b32.xlu1 %v4689_v55, %s5150_s2  ;;  %v643_v55 = vrot.slane %v5553_v16, 4  ;;  %v648_v49 = vsel %vm599_vm3, %v645_v56, %v647_v35  ;;  %vm778_vm6 = vcmask 687104   ;;  %vm803_vm7 = vcmask 916480  }
  0xe5   :  { %v268_v53 = vsel %vm212_vm0, %v265_v38, %v267_v48  ;;  %v397_v4 = vsel %vm341_vm2, %v394_v51, %v396_v52  ;;  %vm923_vm8 = vcmask 97280   ;;  %vm2571_vm9 = vcmask 1041409  }
  0xe6   :  { %v644_v12 = vsel %vm599_vm3, %v642_v54, %v643_v55  ;;  %v4754_v54 = vpack.i.bf16 %v522_v47, %v519_v46  ;;  %vm2573_vm10 = vcmask 1042434   ;;  %vm2575_vm11 = vcmask 1043459  }
  0xe7   :  { %4695 = vrot.lane.b32.xlu0 %v4694_v13, %s5149_s19  ;;  %v646_v13 = vsel %vm599_vm3, %v643_v55, %v645_v56  ;;  %v266_v55 = vsel %vm212_vm0, %v263_v7, %v265_v38  ;;  %v395_v56 = vsel %vm341_vm2, %v392_v21, %v394_v51  ;;  %vm2577_vm12 = vcmask 1044484  }
  0xe8   :  { %4700 = vrot.lane.b32.xlu1 %v4699_v20, %s5151_s20  ;;  %v391_v20 = vrot.slane %v5585_v58, 2  ;;  %v4769_v7 = vpack.i.bf16 %v397_v4, %v395_v56  ;;  %vm2579_vm13 = vcmask 1045509   ;;  %vm2581_vm14 = vcmask 1046534  }
  0xe9   :  { %vm2583_vm15 = vcmask 1047559   ;;  %vm3122_vm0 = vcmask 293888  }
  0xea   :  { %v393_v34 = vsel %vm341_vm2, %v391_v20, %v392_v21  ;;  %v653_v20 = vsel %vm599_vm3, %v650_v32, %v652_v6  ;;  %vm3271_vm2 = vcmask 1041408  }
  0xeb   :  { %4705 = vrot.lane.b32.xlu0 %v4704_v23, %s5148_s8  ;;  %v4739_v23 = vpack.i.bf16 %v646_v13, %v644_v12  ;;  %v4764_v12 = vpack.i.bf16 %v268_v53, %v266_v55 }
  0xec   :  { %4710 = vrot.lane.b32.xlu1 %v4709_v40, %s5150_s2  ;;  %v649_v40 = vrot.slane %v5585_v58, 4 }
  0xee   :  { %v651_v50 = vsel %vm599_vm3, %v649_v40, %v650_v32 }
  0xef   :  { %4715 = vrot.lane.b32.xlu0 %v4714_v44, %s5149_s19  ;;  %v4744_v44 = vpack.i.bf16 %v264_v27, %v261_v24 }
  0xf0   :  { %4720 = vrot.lane.b32.xlu1 %v4719_v45, %s5151_s20  ;;  %v4749_v45 = vpack.i.bf16 %v393_v34, %v390_v28 }
  0xf3   :  { %4725 = vrot.lane.b32.xlu0 %v4724_v61, %s5148_s8  ;;  %v4759_v61 = vpack.i.bf16 %v651_v50, %v648_v49 }
  0xf4   :  { %4730 = vrot.lane.b32.xlu1 %v4729_v62, %s5150_s2  ;;  %v523_v62 = vrot.slane %v5606_v33, 3 }
  0xf6   :  { %v524_v13 = vsel %vm470_vm1, %v521_v31, %v523_v62  ;;  %v526_v15 = vsel %vm470_vm1, %v523_v62, %v525_v63  ;;  %vm3131_vm1 = vcmask 588800  }
  0xf7   :  { %4735 = vrot.lane.b32.xlu0 %v4734_v22, %s5149_s19  ;;  %v655_v22 = vsel %vm599_vm3, %v652_v6, %v654_v11  ;;  %v4774_v21 = vpack.i.bf16 %v526_v15, %v524_v13  ;;  %vm3149_vm3 = vcmask 130048  }
  0xf8   :  { %4740 = vrot.lane.b32.xlu1 %v4739_v23, %s5151_s20  ;;  %v4779_v23 = vpack.i.bf16 %v655_v22, %v653_v20 }
  0xfb   :  { %4745 = vrot.lane.b32.xlu0 %v4744_v44, %s5148_s8 }
  0xfc   :  { %4750 = vrot.lane.b32.xlu1 %v4749_v45, %s5150_s2 }
  0xff   :  { %4755 = vrot.lane.b32.xlu0 %v4754_v54, %s5149_s19 }
 0x100   :  { %4760 = vrot.lane.b32.xlu1 %v4759_v61, %s5151_s20 }
 0x103   :  { %4765 = vrot.lane.b32.xlu0 %v4764_v12, %s5148_s8 }
 0x104   :  { %4770 = vrot.lane.b32.xlu1 %v4769_v7, %s5150_s2 }
 0x107   :  { %4775 = vrot.lane.b32.xlu0 %v4774_v21, %s5149_s19 }
 0x108   :  { %4780 = vrot.lane.b32.xlu1 %v4779_v23, %s5151_s20 }
 0x11d   :  { %v4546_v24 = vpop.permute.xlu0 %4545 }
 0x11e   :  { %v4556_v27 = vpop.permute.xlu1 %4555  ;;  %v4548_v28 = vunpack.i.h.bf16 %v4546_v24  ;;  %v4547_v29 = vunpack.i.l.bf16 %v4546_v24 }
 0x11f   :  { %v4558_v31 = vunpack.i.h.bf16 %v4556_v27  ;;  %v4557_v34 = vunpack.i.l.bf16 %v4556_v27 }
 0x120   :  { %v730_v43 = vsel %vm728_vm4, %v5336_v2, %v4548_v28  ;;  %v729_v44 = vsel %vm728_vm4, %v5334_v1, %v4547_v29 }
 0x121   :  { %v4551_v30 = vpop.permute.xlu0 %4550 }
 0x122   :  { %v4553_v35 = vunpack.i.h.bf16 %v4551_v30  ;;  %v4552_v40 = vunpack.i.l.bf16 %v4551_v30  ;;  %v4561_v32 = vpop.permute.xlu1 %4560 }
 0x123   :  { %v4563_v38 = vunpack.i.h.bf16 %v4561_v32  ;;  %v4562_v45 = vunpack.i.l.bf16 %v4561_v32 }
 0x124   :  { %v754_v46 = vsel %vm753_vm5, %v729_v44, %v4552_v40  ;;  %v755_v47 = vsel %vm753_vm5, %v730_v43, %v4553_v35 }
 0x125   :  { %v4566_v48 = vpop.permute.xlu0 %4565  ;;  %v829_v49 = vpack.c.bf16 %v4563_v38, %v4562_v45  ;;  %v779_v50 = vsel %vm778_vm6, %v754_v46, %v4557_v34  ;;  %v780_v51 = vsel %vm778_vm6, %v755_v47, %v4558_v31 }
 0x126   :  { %v4568_v52 = vunpack.i.h.bf16 %v4566_v48  ;;  %v4567_v54 = vunpack.i.l.bf16 %v4566_v48  ;;  %v4571_v55 = vpop.permute.xlu1 %4570  ;;  %v804_v2 = vsel %vm803_vm7, %v779_v50, %v4562_v45  ;;  %v805_v1 = vsel %vm803_vm7, %v780_v51, %v4563_v38 }
 0x127   :  { %v4573_v61 = vunpack.i.h.bf16 %v4571_v55  ;;  %v4572_v53 = vunpack.i.l.bf16 %v4571_v55  ;;  %4265 = vmatprep.mubr.msk.bf16.mxu0 %vm923_vm8, %v829_v49  ;;  %v828_v62 = vpack.c.bf16 %v805_v1, %v804_v2 }
 0x128   :  { %v732_v63 = vsel %vm728_vm4, %v5352_v17, %v4568_v52  ;;  %v731_v56 = vsel %vm728_vm4, %v5338_v3, %v4567_v54 }
 0x129   :  { %v756_v4 = vsel %vm753_vm5, %v731_v56, %v4572_v53  ;;  %v757_v6 = vsel %vm753_vm5, %v732_v63, %v4573_v61  ;;  %v4576_v11 = vpop.permute.xlu0 %4575  ;;  %996 = vmatmul.mubr.bf16.vlgmr.msra.gmra.mrb[0].mxu0 %v828_v62 }
 0x12a   :  { %v4578_v12 = vunpack.i.h.bf16 %v4576_v11  ;;  %v4577_v7 = vunpack.i.l.bf16 %v4576_v11  ;;  %v4581_v13 = vpop.permute.xlu1 %4580 }
 0x12b   :  { %v4583_v15 = vunpack.i.h.bf16 %v4581_v13  ;;  %v4582_v20 = vunpack.i.l.bf16 %v4581_v13 }
 0x12c   :  { %v781_v22 = vsel %vm778_vm6, %v756_v4, %v4577_v7  ;;  %v782_v21 = vsel %vm778_vm6, %v757_v6, %v4578_v12 }
 0x12d   :  { %v831_v23 = vpack.c.bf16 %v4583_v15, %v4582_v20  ;;  %v4586_v17 = vpop.permute.xlu0 %4585  ;;  %v806_v24 = vsel %vm803_vm7, %v781_v22, %v4582_v20  ;;  %v807_v3 = vsel %vm803_vm7, %v782_v21, %v4583_v15 }
 0x12e   :  { %v4588_v27 = vunpack.i.h.bf16 %v4586_v17  ;;  %v4587_v28 = vunpack.i.l.bf16 %v4586_v17  ;;  %v4591_v29 = vpop.permute.xlu1 %4590  ;;  %v830_v30 = vpack.c.bf16 %v807_v3, %v806_v24 }
 0x12f   :  { %v4593_v31 = vunpack.i.h.bf16 %v4591_v29  ;;  %v4592_v34 = vunpack.i.l.bf16 %v4591_v29  ;;  %4266 = vmatprep.mubr.msk.bf16.mxu0 %vm923_vm8, %v831_v23 }
 0x130   :  { %v734_v35 = vsel %vm728_vm4, %v5372_v39, %v4588_v27  ;;  %v733_v40 = vsel %vm728_vm4, %v5354_v18, %v4587_v28 }
 0x131   :  { %v758_v32 = vsel %vm753_vm5, %v733_v40, %v4592_v34  ;;  %v759_v43 = vsel %vm753_vm5, %v734_v35, %v4593_v31  ;;  %v4596_v44 = vpop.permute.xlu0 %4595  ;;  %1004 = vmatmul.mubr.bf16.gmra.mrb[4].mxu0 %v830_v30 }
 0x132   :  { %v4598_v38 = vunpack.i.h.bf16 %v4596_v44  ;;  %v4597_v45 = vunpack.i.l.bf16 %v4596_v44  ;;  %v4601_v46 = vpop.permute.xlu1 %4600 }
 0x133   :  { %v4603_v47 = vunpack.i.h.bf16 %v4601_v46  ;;  %v4602_v48 = vunpack.i.l.bf16 %v4601_v46 }
 0x134   :  { %v783_v49 = vsel %vm778_vm6, %v758_v32, %v4597_v45  ;;  %v784_v50 = vsel %vm778_vm6, %v759_v43, %v4598_v38 }
 0x135   :  { %v833_v51 = vpack.c.bf16 %v4603_v47, %v4602_v48  ;;  %v4606_v39 = vpop.permute.xlu0 %4605  ;;  %v808_v52 = vsel %vm803_vm7, %v783_v49, %v4602_v48  ;;  %v809_v18 = vsel %vm803_vm7, %v784_v50, %v4603_v47 }
 0x136   :  { %v4608_v54 = vunpack.i.h.bf16 %v4606_v39  ;;  %v4607_v55 = vunpack.i.l.bf16 %v4606_v39  ;;  %v4611_v2 = vpop.permute.xlu1 %4610  ;;  %v832_v1 = vpack.c.bf16 %v809_v18, %v808_v52 }
 0x137   :  { %v4613_v61 = vunpack.i.h.bf16 %v4611_v2  ;;  %v4612_v53 = vunpack.i.l.bf16 %v4611_v2  ;;  %4267 = vmatprep.mubr.msk.bf16.mxu0 %vm923_vm8, %v833_v51 }
 0x138   :  { %v736_v62 = vsel %vm728_vm4, %v5394_v5, %v4608_v54  ;;  %v735_v63 = vsel %vm728_vm4, %v5387_v57, %v4607_v55 }
 0x139   :  { %v760_v56 = vsel %vm753_vm5, %v735_v63, %v4612_v53  ;;  %v761_v4 = vsel %vm753_vm5, %v736_v62, %v4613_v61  ;;  %v4616_v6 = vpop.permute.xlu0 %4615  ;;  %1012 = vmatmul.mubr.bf16.gmra.mrb[8].mxu0 %v832_v1 }
 0x13a   :  { %v4618_v11 = vunpack.i.h.bf16 %v4616_v6  ;;  %v4617_v12 = vunpack.i.l.bf16 %v4616_v6  ;;  %v4621_v7 = vpop.permute.xlu1 %4620 }
 0x13b   :  { %v4623_v13 = vunpack.i.h.bf16 %v4621_v7  ;;  %v4622_v15 = vunpack.i.l.bf16 %v4621_v7 }
 0x13c   :  { %v785_v20 = vsel %vm778_vm6, %v760_v56, %v4617_v12  ;;  %v786_v22 = vsel %vm778_vm6, %v761_v4, %v4618_v11 }
 0x13d   :  { %v835_v21 = vpack.c.bf16 %v4623_v13, %v4622_v15  ;;  %v4626_v5 = vpop.permute.xlu0 %4625  ;;  %v810_v23 = vsel %vm803_vm7, %v785_v20, %v4622_v15  ;;  %v811_v57 = vsel %vm803_vm7, %v786_v22, %v4623_v13 }
 0x13e   :  { %v4628_v17 = vunpack.i.h.bf16 %v4626_v5  ;;  %v4627_v24 = vunpack.i.l.bf16 %v4626_v5  ;;  %v4631_v3 = vpop.permute.xlu1 %4630  ;;  %v834_v27 = vpack.c.bf16 %v811_v57, %v810_v23 }
 0x13f   :  { %v4633_v28 = vunpack.i.h.bf16 %v4631_v3  ;;  %v4632_v29 = vunpack.i.l.bf16 %v4631_v3  ;;  %4268 = vmatprep.mubr.msk.bf16.mxu0 %vm923_vm8, %v835_v21 }
 0x140   :  { %v738_v30 = vsel %vm728_vm4, %v5423_v36, %v4628_v17  ;;  %v737_v31 = vsel %vm728_vm4, %v5398_v9, %v4627_v24 }
 0x141   :  { %v762_v34 = vsel %vm753_vm5, %v737_v31, %v4632_v29  ;;  %v763_v35 = vsel %vm753_vm5, %v738_v30, %v4633_v28  ;;  %v4636_v40 = vpop.permute.xlu0 %4635  ;;  %1020 = vmatmul.mubr.bf16.gmra.mrb[12].mxu0 %v834_v27 }
 0x142   :  { %v4638_v32 = vunpack.i.h.bf16 %v4636_v40  ;;  %v4637_v43 = vunpack.i.l.bf16 %v4636_v40  ;;  %v4641_v44 = vpop.permute.xlu1 %4640 }
 0x143   :  { %v4643_v38 = vunpack.i.h.bf16 %v4641_v44  ;;  %v4642_v45 = vunpack.i.l.bf16 %v4641_v44 }
 0x144   :  { %v787_v46 = vsel %vm778_vm6, %v762_v34, %v4637_v43  ;;  %v788_v47 = vsel %vm778_vm6, %v763_v35, %v4638_v32 }
 0x145   :  { %v837_v48 = vpack.c.bf16 %v4643_v38, %v4642_v45  ;;  %v4646_v36 = vpop.permute.xlu0 %4645  ;;  %v812_v49 = vsel %vm803_vm7, %v787_v46, %v4642_v45  ;;  %v813_v9 = vsel %vm803_vm7, %v788_v47, %v4643_v38 }
 0x146   :  { %v4648_v50 = vunpack.i.h.bf16 %v4646_v36  ;;  %v4647_v51 = vunpack.i.l.bf16 %v4646_v36  ;;  %v4651_v39 = vpop.permute.xlu1 %4650  ;;  %v836_v52 = vpack.c.bf16 %v813_v9, %v812_v49 }
 0x147   :  { %v4653_v18 = vunpack.i.h.bf16 %v4651_v39  ;;  %v4652_v54 = vunpack.i.l.bf16 %v4651_v39  ;;  %4269 = vmatprep.mubr.msk.bf16.mxu0 %vm923_vm8, %v837_v48 }
 0x148   :  { %v740_v55 = vsel %vm728_vm4, %v5448_v60, %v4648_v50  ;;  %v739_v2 = vsel %vm728_vm4, %v5430_v42, %v4647_v51 }
 0x149   :  { %v764_v1 = vsel %vm753_vm5, %v739_v2, %v4652_v54  ;;  %v765_v61 = vsel %vm753_vm5, %v740_v55, %v4653_v18  ;;  %v4656_v53 = vpop.permute.xlu0 %4655  ;;  %1028 = vmatmul.mubr.bf16.gmra.mrb[16].mxu0 %v836_v52 }
 0x14a   :  { %v4658_v62 = vunpack.i.h.bf16 %v4656_v53  ;;  %v4657_v63 = vunpack.i.l.bf16 %v4656_v53  ;;  %v4661_v56 = vpop.permute.xlu1 %4660 }
 0x14b   :  { %v4663_v4 = vunpack.i.h.bf16 %v4661_v56  ;;  %v4662_v6 = vunpack.i.l.bf16 %v4661_v56 }
 0x14c   :  { %v789_v11 = vsel %vm778_vm6, %v764_v1, %v4657_v63  ;;  %v790_v12 = vsel %vm778_vm6, %v765_v61, %v4658_v62 }
 0x14d   :  { %v839_v7 = vpack.c.bf16 %v4663_v4, %v4662_v6  ;;  %v4666_v60 = vpop.permute.xlu0 %4665  ;;  %v814_v13 = vsel %vm803_vm7, %v789_v11, %v4662_v6  ;;  %v815_v42 = vsel %vm803_vm7, %v790_v12, %v4663_v4 }
 0x14e   :  { %v4668_v15 = vunpack.i.h.bf16 %v4666_v60  ;;  %v4667_v20 = vunpack.i.l.bf16 %v4666_v60  ;;  %v4671_v22 = vpop.permute.xlu1 %4670  ;;  %v838_v21 = vpack.c.bf16 %v815_v42, %v814_v13 }
 0x14f   :  { %v4673_v5 = vunpack.i.h.bf16 %v4671_v22  ;;  %v4672_v23 = vunpack.i.l.bf16 %v4671_v22  ;;  %4270 = vmatprep.mubr.msk.bf16.mxu0 %vm923_vm8, %v839_v7 }
 0x150   :  { %v742_v57 = vsel %vm728_vm4, %v5470_v26, %v4668_v15  ;;  %v741_v17 = vsel %vm728_vm4, %v5468_v25, %v4667_v20 }
 0x151   :  { %v766_v24 = vsel %vm753_vm5, %v741_v17, %v4672_v23  ;;  %v767_v3 = vsel %vm753_vm5, %v742_v57, %v4673_v5  ;;  %v4676_v27 = vpop.permute.xlu0 %4675  ;;  %1036 = vmatmul.mubr.bf16.gmra.mrb[20].mxu0 %v838_v21 }
 0x152   :  { %v4678_v28 = vunpack.i.h.bf16 %v4676_v27  ;;  %v4677_v29 = vunpack.i.l.bf16 %v4676_v27  ;;  %v4681_v30 = vpop.permute.xlu1 %4680 }
 0x153   :  { %v4683_v31 = vunpack.i.h.bf16 %v4681_v30  ;;  %v4682_v34 = vunpack.i.l.bf16 %v4681_v30 }
 0x154   :  { %v791_v35 = vsel %vm778_vm6, %v766_v24, %v4677_v29  ;;  %v792_v40 = vsel %vm778_vm6, %v767_v3, %v4678_v28 }
 0x155   :  { %v841_v32 = vpack.c.bf16 %v4683_v31, %v4682_v34  ;;  %v4686_v26 = vpop.permute.xlu0 %4685  ;;  %v816_v43 = vsel %vm803_vm7, %v791_v35, %v4682_v34  ;;  %v817_v25 = vsel %vm803_vm7, %v792_v40, %v4683_v31 }
 0x156   :  { %v4688_v44 = vunpack.i.h.bf16 %v4686_v26  ;;  %v4687_v38 = vunpack.i.l.bf16 %v4686_v26  ;;  %v4691_v45 = vpop.permute.xlu1 %4690  ;;  %v840_v46 = vpack.c.bf16 %v817_v25, %v816_v43 }
 0x157   :  { %v4693_v47 = vunpack.i.h.bf16 %v4691_v45  ;;  %v4692_v48 = vunpack.i.l.bf16 %v4691_v45  ;;  %4271 = vmatprep.mubr.msk.bf16.mxu0 %vm923_vm8, %v841_v32 }
 0x158   :  { %v744_v36 = vsel %vm728_vm4, %v5504_v8, %v4688_v44  ;;  %v743_v49 = vsel %vm728_vm4, %v5479_v37, %v4687_v38 }
 0x159   :  { %v768_v9 = vsel %vm753_vm5, %v743_v49, %v4692_v48  ;;  %v769_v50 = vsel %vm753_vm5, %v744_v36, %v4693_v47  ;;  %v4696_v51 = vpop.permute.xlu0 %4695  ;;  %1044 = vmatmul.mubr.bf16.gmra.mrb[24].mxu0 %v840_v46 }
 0x15a   :  { %v4698_v39 = vunpack.i.h.bf16 %v4696_v51  ;;  %v4697_v52 = vunpack.i.l.bf16 %v4696_v51  ;;  %v4701_v18 = vpop.permute.xlu1 %4700 }
 0x15b   :  { %v4703_v54 = vunpack.i.h.bf16 %v4701_v18  ;;  %v4702_v55 = vunpack.i.l.bf16 %v4701_v18 }
 0x15c   :  { %v793_v2 = vsel %vm778_vm6, %v768_v9, %v4697_v52  ;;  %v794_v1 = vsel %vm778_vm6, %v769_v50, %v4698_v39 }
 0x15d   :  { %v843_v61 = vpack.c.bf16 %v4703_v54, %v4702_v55  ;;  %v4706_v8 = vpop.permute.xlu0 %4705  ;;  %v818_v53 = vsel %vm803_vm7, %v793_v2, %v4702_v55  ;;  %v819_v37 = vsel %vm803_vm7, %v794_v1, %v4703_v54 }
 0x15e   :  { %v4708_v62 = vunpack.i.h.bf16 %v4706_v8  ;;  %v4707_v63 = vunpack.i.l.bf16 %v4706_v8  ;;  %v4711_v56 = vpop.permute.xlu1 %4710  ;;  %v842_v4 = vpack.c.bf16 %v819_v37, %v818_v53 }
 0x15f   :  { %v4713_v6 = vunpack.i.h.bf16 %v4711_v56  ;;  %v4712_v11 = vunpack.i.l.bf16 %v4711_v56  ;;  %4272 = vmatprep.mubr.msk.bf16.mxu0 %vm923_vm8, %v843_v61 }
 0x160   :  { %v746_v12 = vsel %vm728_vm4, %v5529_v41, %v4708_v62  ;;  %v745_v7 = vsel %vm728_vm4, %v5506_v10, %v4707_v63 }
 0x161   :  { %v770_v60 = vsel %vm753_vm5, %v745_v7, %v4712_v11  ;;  %v771_v13 = vsel %vm753_vm5, %v746_v12, %v4713_v6  ;;  %v4716_v42 = vpop.permute.xlu0 %4715  ;;  %1052 = vmatmul.mubr.bf16.gmra.mrb[28].mxu0 %v842_v4 }
 0x162   :  { %v4718_v15 = vunpack.i.h.bf16 %v4716_v42  ;;  %v4717_v20 = vunpack.i.l.bf16 %v4716_v42  ;;  %v4721_v22 = vpop.permute.xlu1 %4720 }
 0x163   :  { %v4723_v21 = vunpack.i.h.bf16 %v4721_v22  ;;  %v4722_v5 = vunpack.i.l.bf16 %v4721_v22 }
 0x164   :  { %v795_v23 = vsel %vm778_vm6, %v770_v60, %v4717_v20  ;;  %v796_v57 = vsel %vm778_vm6, %v771_v13, %v4718_v15 }
 0x165   :  { %v845_v17 = vpack.c.bf16 %v4723_v21, %v4722_v5  ;;  %v4726_v41 = vpop.permute.xlu0 %4725  ;;  %v820_v24 = vsel %vm803_vm7, %v795_v23, %v4722_v5  ;;  %v821_v10 = vsel %vm803_vm7, %v796_v57, %v4723_v21 }
 0x166   :  { %v4728_v3 = vunpack.i.h.bf16 %v4726_v41  ;;  %v4727_v27 = vunpack.i.l.bf16 %v4726_v41  ;;  %v4731_v28 = vpop.permute.xlu1 %4730  ;;  %v844_v29 = vpack.c.bf16 %v821_v10, %v820_v24 }
 0x167   :  { %v4733_v30 = vunpack.i.h.bf16 %v4731_v28  ;;  %v4732_v31 = vunpack.i.l.bf16 %v4731_v28  ;;  %4273 = vmatprep.mubr.msk.bf16.mxu0 %vm923_vm8, %v845_v17 }
 0x168   :  { %v748_v34 = vsel %vm728_vm4, %v5553_v16, %v4728_v3  ;;  %v747_v35 = vsel %vm728_vm4, %v5550_v14, %v4727_v27 }
 0x169   :  { %v772_v40 = vsel %vm753_vm5, %v747_v35, %v4732_v31  ;;  %v773_v32 = vsel %vm753_vm5, %v748_v34, %v4733_v30  ;;  %v4736_v26 = vpop.permute.xlu0 %4735  ;;  %1060 = vmatmul.mubr.bf16.gmra.mrb[32].mxu0 %v844_v29 }
 0x16a   :  { %v4738_v43 = vunpack.i.h.bf16 %v4736_v26  ;;  %v4737_v25 = vunpack.i.l.bf16 %v4736_v26  ;;  %v4741_v44 = vpop.permute.xlu1 %4740 }
 0x16b   :  { %v4743_v38 = vunpack.i.h.bf16 %v4741_v44  ;;  %v4742_v45 = vunpack.i.l.bf16 %v4741_v44 }
 0x16c   :  { %v797_v46 = vsel %vm778_vm6, %v772_v40, %v4737_v25  ;;  %v798_v47 = vsel %vm778_vm6, %v773_v32, %v4738_v43 }
 0x16d   :  { %v847_v48 = vpack.c.bf16 %v4743_v38, %v4742_v45  ;;  %v4746_v16 = vpop.permute.xlu0 %4745  ;;  %v822_v36 = vsel %vm803_vm7, %v797_v46, %v4742_v45  ;;  %v823_v14 = vsel %vm803_vm7, %v798_v47, %v4743_v38 }
 0x16e   :  { %v4748_v49 = vunpack.i.h.bf16 %v4746_v16  ;;  %v4747_v9 = vunpack.i.l.bf16 %v4746_v16  ;;  %v4751_v50 = vpop.permute.xlu1 %4750  ;;  %v846_v51 = vpack.c.bf16 %v823_v14, %v822_v36 }
 0x16f   :  { %v4753_v39 = vunpack.i.h.bf16 %v4751_v50  ;;  %v4752_v52 = vunpack.i.l.bf16 %v4751_v50  ;;  %4274 = vmatprep.mubr.msk.bf16.mxu0 %vm923_vm8, %v847_v48 }
 0x170   :  { %v750_v18 = vsel %vm728_vm4, %v5585_v58, %v4748_v49  ;;  %v749_v54 = vsel %vm728_vm4, %v5555_v19, %v4747_v9 }
 0x171   :  { %v774_v55 = vsel %vm753_vm5, %v749_v54, %v4752_v52  ;;  %v775_v2 = vsel %vm753_vm5, %v750_v18, %v4753_v39  ;;  %v4756_v1 = vpop.permute.xlu0 %4755  ;;  %1068 = vmatmul.mubr.bf16.gmra.mrb[36].mxu0 %v846_v51 }
 0x172   :  { %v4758_v61 = vunpack.i.h.bf16 %v4756_v1  ;;  %v4757_v8 = vunpack.i.l.bf16 %v4756_v1  ;;  %v4761_v53 = vpop.permute.xlu1 %4760 }
 0x173   :  { %v4763_v37 = vunpack.i.h.bf16 %v4761_v53  ;;  %v4762_v62 = vunpack.i.l.bf16 %v4761_v53 }
 0x174   :  { %v799_v63 = vsel %vm778_vm6, %v774_v55, %v4757_v8  ;;  %v800_v56 = vsel %vm778_vm6, %v775_v2, %v4758_v61 }
 0x175   :  { %v849_v4 = vpack.c.bf16 %v4763_v37, %v4762_v62  ;;  %v4766_v58 = vpop.permute.xlu0 %4765  ;;  %v824_v6 = vsel %vm803_vm7, %v799_v63, %v4762_v62  ;;  %v825_v19 = vsel %vm803_vm7, %v800_v56, %v4763_v37 }
 0x176   :  { %v4768_v11 = vunpack.i.h.bf16 %v4766_v58  ;;  %v4767_v12 = vunpack.i.l.bf16 %v4766_v58  ;;  %v4771_v7 = vpop.permute.xlu1 %4770  ;;  %v848_v60 = vpack.c.bf16 %v825_v19, %v824_v6 }
 0x177   :  { %v4773_v13 = vunpack.i.h.bf16 %v4771_v7  ;;  %v4772_v42 = vunpack.i.l.bf16 %v4771_v7  ;;  %4275 = vmatprep.mubr.msk.bf16.mxu0 %vm923_vm8, %v849_v4 }
 0x178   :  { %v752_v15 = vsel %vm728_vm4, %v5606_v33, %v4768_v11  ;;  %v751_v20 = vsel %vm728_vm4, %v5587_v59, %v4767_v12  ;;  %vm3258_vm4 = vcmask 424960  }
 0x179   :  { %v776_v22 = vsel %vm753_vm5, %v751_v20, %v4772_v42  ;;  %v777_v21 = vsel %vm753_vm5, %v752_v15, %v4773_v13  ;;  %v4776_v5 = vpop.permute.xlu0 %4775  ;;  %1076 = vmatmul.mubr.bf16.gmra.mrb[40].mxu0 %v848_v60  ;;  %v5153_v20 = vmov 1983009808   ;;  %vm3140_vm5 = vcmask 883712  }
 0x17a   :  { %v4778_v23 = vunpack.i.h.bf16 %v4776_v5  ;;  %v4777_v57 = vunpack.i.l.bf16 %v4776_v5  ;;  %v4781_v17 = vpop.permute.xlu1 %4780 }
 0x17b   :  { %v4783_v41 = vunpack.i.h.bf16 %v4781_v17  ;;  %v4782_v24 = vunpack.i.l.bf16 %v4781_v17 }
 0x17c   :  { %v801_v10 = vsel %vm778_vm6, %v776_v22, %v4777_v57  ;;  %v802_v3 = vsel %vm778_vm6, %v777_v21, %v4778_v23  ;;  %v1269_v22 = vunpack.c.l.s4 %v5153_v20  ;;  %v1271_v21 = vlaneseq  ;;  %v5865_v57 = vld [vmem:[#allocation7] ss:$0 sm:$0xff] }
 0x17d   :  { %v851_v27 = vpack.c.bf16 %v4783_v41, %v4782_v24  ;;  %v826_v33 = vsel %vm803_vm7, %v801_v10, %v4782_v24  ;;  %v827_v59 = vsel %vm803_vm7, %v802_v3, %v4783_v41  ;;  %vm5160_vm6 = vmmov 0  }
 0x17e   :  { %v850_v28 = vpack.c.bf16 %v827_v59, %v826_v33  ;;  %v1270_v5 = vunpack.c.0.s8 %v1269_v22  ;;  %v1272_v23 = vshrl.u32 %v1271_v21, 7  ;;  %vm3787_vm7 = vcmask 261120  }
 0x17f   :  { %4276 = vmatprep.mubr.msk.bf16.mxu0 %vm923_vm8, %v851_v27  ;;  %vm4179_vm8 = vcmask 1040384  }
 0x180   :  { %v5867_v41 = vsub.s32 %v1270_v5, %v1272_v23 }
 0x181   :  { %1084 = vmatmul.mubr.bf16.gmra.mrb[44].mxu0 %v850_v28 }
 0x1fc   :  { %v5769_v29 = vpop.f32.mrb[0].mxu0 }
 0x1fd   :  { %1116 = vrot.lane.b32.xlu0 %v5769_v29, %s5152_s27  ;;  %v999_v30 = vpop.f32.mrb[1].mxu0 }
 0x1fe   :  { %v5773_v31 = vpop.f32.mrb[2].mxu0 }
 0x1ff   :  { %v1002_v34 = vpop.f32.mrb[3].mxu0 }
 0x201   :  { %1118 = vrot.lane.b32.xlu0 %v5773_v31, %s5152_s27 }
 0x204   :  { %v5777_v35 = vpop.f32.mrb[4].mxu0 }
 0x205   :  { %1120 = vrot.lane.b32.xlu0 %v5777_v35, %s5152_s27  ;;  %v1007_v40 = vpop.f32.mrb[5].mxu0 }
 0x206   :  { %v5781_v32 = vpop.f32.mrb[6].mxu0 }
 0x207   :  { %1122 = vrot.lane.b32.xlu1 %v5781_v32, %s5152_s27  ;;  %v1010_v26 = vpop.f32.mrb[7].mxu0 }
 0x208   :  { %v5875_v26 = vsub.s32 0, %v1272_v23 }
 0x20c   :  { %v5785_v43 = vpop.f32.mrb[8].mxu0 }
 0x20d   :  { %1124 = vrot.lane.b32.xlu1 %v5785_v43, %s5152_s27  ;;  %v1015_v25 = vpop.f32.mrb[9].mxu0 }
 0x20e   :  { %v5789_v44 = vpop.f32.mrb[10].mxu0 }
 0x20f   :  { %v1018_v38 = vpop.f32.mrb[11].mxu0 }
 0x211   :  { %1126 = vrot.lane.b32.xlu1 %v5789_v44, %s5152_s27 }
 0x214   :  { %v5793_v45 = vpop.f32.mrb[12].mxu0 }
 0x215   :  { %1128 = vrot.lane.b32.xlu0 %v5793_v45, %s5152_s27  ;;  %v1023_v46 = vpop.f32.mrb[13].mxu0 }
 0x216   :  { %v5797_v47 = vpop.f32.mrb[14].mxu0 }
 0x217   :  { %v1026_v48 = vpop.f32.mrb[15].mxu0 }
 0x219   :  { %1130 = vrot.lane.b32.xlu0 %v5797_v47, %s5152_s27 }
 0x21c   :  { %v5801_v16 = vpop.f32.mrb[16].mxu0 }
 0x21d   :  { %1132 = vrot.lane.b32.xlu0 %v5801_v16, %s5152_s27  ;;  %v1031_v36 = vpop.f32.mrb[17].mxu0 }
 0x21e   :  { %v5805_v14 = vpop.f32.mrb[18].mxu0 }
 0x21f   :  { %1134 = vrot.lane.b32.xlu1 %v5805_v14, %s5152_s27  ;;  %v1034_v49 = vpop.f32.mrb[19].mxu0 }
 0x224   :  { %v5809_v9 = vpop.f32.mrb[20].mxu0 }
 0x225   :  { %1136 = vrot.lane.b32.xlu1 %v5809_v9, %s5152_s27  ;;  %v1039_v50 = vpop.f32.mrb[21].mxu0 }
 0x226   :  { %v5813_v51 = vpop.f32.mrb[22].mxu0 }
 0x227   :  { %v1042_v39 = vpop.f32.mrb[23].mxu0 }
 0x229   :  { %1138 = vrot.lane.b32.xlu1 %v5813_v51, %s5152_s27 }
 0x22c   :  { %v5817_v52 = vpop.f32.mrb[24].mxu0 }
 0x22d   :  { %1140 = vrot.lane.b32.xlu0 %v5817_v52, %s5152_s27  ;;  %v1047_v18 = vpop.f32.mrb[25].mxu0 }
 0x22e   :  { %v5821_v54 = vpop.f32.mrb[26].mxu0 }
 0x22f   :  { %v1050_v55 = vpop.f32.mrb[27].mxu0 }
 0x231   :  { %1142 = vrot.lane.b32.xlu0 %v5821_v54, %s5152_s27 }
 0x234   :  { %v5825_v2 = vpop.f32.mrb[28].mxu0 }
 0x235   :  { %1144 = vrot.lane.b32.xlu0 %v5825_v2, %s5152_s27  ;;  %v1055_v1 = vpop.f32.mrb[29].mxu0 }
 0x236   :  { %v5829_v61 = vpop.f32.mrb[30].mxu0 }
 0x237   :  { %1146 = vrot.lane.b32.xlu1 %v5829_v61, %s5152_s27  ;;  %v1058_v8 = vpop.f32.mrb[31].mxu0 }
 0x23c   :  { %v5833_v53 = vpop.f32.mrb[32].mxu0 }
 0x23d   :  { %1148 = vrot.lane.b32.xlu1 %v5833_v53, %s5152_s27  ;;  %v1063_v37 = vpop.f32.mrb[33].mxu0 }
 0x23e   :  { %v5837_v62 = vpop.f32.mrb[34].mxu0 }
 0x23f   :  { %7114 = vst [vmem:[#allocation24_spill] sm:$0xff] %v5837_v62  ;;  %v1066_v63 = vpop.f32.mrb[35].mxu0 }
 0x241   :  { %1150 = vrot.lane.b32.xlu1 %v5837_v62, %s5152_s27 }
 0x244   :  { %v5841_v56 = vpop.f32.mrb[36].mxu0 }
 0x245   :  { %7115 = vst [vmem:[#allocation25_spill] sm:$0xff] %v5841_v56  ;;  %1152 = vrot.lane.b32.xlu0 %v5841_v56, %s5152_s27  ;;  %v1071_v4 = vpop.f32.mrb[37].mxu0 }
 0x246   :  { %v5845_v58 = vpop.f32.mrb[38].mxu0 }
 0x247   :  { %7116 = vst [vmem:[#allocation26_spill] sm:$0xff] %v5845_v58  ;;  %v1074_v6 = vpop.f32.mrb[39].mxu0 }
 0x249   :  { %1154 = vrot.lane.b32.xlu0 %v5845_v58, %s5152_s27 }
 0x24c   :  { %v5849_v19 = vpop.f32.mrb[40].mxu0 }
 0x24d   :  { %7117 = vst [vmem:[#allocation27_spill] sm:$0xff] %v5849_v19  ;;  %1156 = vrot.lane.b32.xlu0 %v5849_v19, %s5152_s27  ;;  %v1079_v11 = vpop.f32.mrb[41].mxu0 }
 0x24e   :  { %v5853_v12 = vpop.f32.mrb[42].mxu0 }
 0x24f   :  { %7118 = vst [vmem:[#allocation28_spill] sm:$0xff] %v5853_v12  ;;  %1158 = vrot.lane.b32.xlu1 %v5853_v12, %s5152_s27  ;;  %v1082_v7 = vpop.f32.mrb[43].mxu0 }
 0x254   :  { %v5857_v60 = vpop.f32.mrb[44].mxu0 }
 0x255   :  { %7119 = vst [vmem:[#allocation29_spill] sm:$0xff] %v5857_v60  ;;  %1160 = vrot.lane.b32.xlu1 %v5857_v60, %s5152_s27  ;;  %v1087_v13 = vpop.f32.mrb[45].mxu0 }
 0x256   :  { %v5861_v42 = vpop.f32.mrb[46].mxu0 }
 0x257   :  { %7120 = vst [vmem:[#allocation30_spill] sm:$0xff] %v5861_v42  ;;  %v1090_v15 = vpop.f32.mrb[47].mxu0 }
 0x259   :  { %1162 = vrot.lane.b32.xlu1 %v5861_v42, %s5152_s27 }
 0x26f   :  { %v1117_v17 = vpop.permute.xlu0 %1116 }
 0x270   :  { %v1188_v24 = vmax.f32 %v5769_v29, %v1117_v17 }
 0x272   :  { %v1219_v10 = vadd.f32 %v5865_v57, %v1188_v24 }
 0x273   :  { %v1119_v3 = vpop.permute.xlu0 %1118 }
 0x274   :  { %v1267_v27 = vcombine.high %v1219_v10, %v1219_v10  ;;  %v1274_v33 = vrot.slane %v1219_v10, %v5867_v41  ;;  %v1189_v59 = vmax.f32 %v5773_v31, %v1119_v3 }
 0x276   :  { %v1281_v28 = vrot.slane %v1267_v27, %v5867_v41  ;;  %v1282_v30 = vcombine.high %v1274_v33, %v1274_v33  ;;  %v4278_v34 = vrot.slane %v1274_v33, 9  ;;  %v1220_v40 = vadd.f32 %v5865_v57, %v1189_v59 }
 0x277   :  { %v1121_v25 = vpop.permute.xlu0 %1120 }
 0x278   :  { %v1283_v38 = vcombine.high %v1281_v28, %v1281_v28  ;;  %v4279_v29 = vrot.slane %v1282_v30, 9  ;;  %v4280_v46 = vrot.slane %v1281_v28, 9  ;;  %v2059_v48 = vmax.f32 %v1274_v33, %v4278_v34 }
 0x279   :  { %v1284_v36 = vcombine.high %v1220_v40, %v1220_v40  ;;  %v1291_v49 = vrot.slane %v1220_v40, %v5867_v41  ;;  %v1190_v31 = vmax.f32 %v5777_v35, %v1121_v25  ;;  %v1123_v4 = vpop.permute.xlu1 %1122 }
 0x27a   :  { %v4281_v50 = vrot.slane %v1283_v38, 9  ;;  %v2060_v39 = vmax.f32 %v1282_v30, %v4279_v29  ;;  %v2061_v18 = vmax.f32 %v1281_v28, %v4280_v46  ;;  %v2155_v55 = vmax.f32 %v2059_v48, 0.0 }
 0x27b   :  { %v1298_v1 = vrot.slane %v1284_v36, %v5867_v41  ;;  %v1299_v8 = vcombine.high %v1291_v49, %v1291_v49  ;;  %v4282_v37 = vrot.slane %v1291_v49, 9  ;;  %v1221_v63 = vadd.f32 %v5865_v57, %v1190_v31 }
 0x27c   :  { %v2062_v6 = vmax.f32 %v1283_v38, %v4281_v50  ;;  %v2156_v11 = vmax.f32 %v2060_v39, 0.0  ;;  %v2157_v7 = vmax.f32 %v2061_v18, 0.0  ;;  %v2318_v13 = vrot.slane %v2155_v55, %v5875_v26 }
 0x27d   :  { %v1300_v15 = vcombine.high %v1298_v1, %v1298_v1  ;;  %v4283_v20 = vrot.slane %v1299_v8, 9  ;;  %v4284_v22 = vrot.slane %v1298_v1, 9  ;;  %v2063_v35 = vmax.f32 %v1291_v49, %v4282_v37 }
 0x27e   :  { %v2158_v21 = vmax.f32 %v2062_v6, 0.0  ;;  %v2322_v5 = vrot.slane %v2156_v11, %v5875_v26  ;;  %v2326_v23 = vrot.slane %v2157_v7, %v5875_v26  ;;  %v1301_v17 = vcombine.high %v1221_v63, %v1221_v63 }
 0x27f   :  { %v4285_v24 = vrot.slane %v1300_v15, 9  ;;  %v2064_v10 = vmax.f32 %v1299_v8, %v4283_v20  ;;  %v2065_v3 = vmax.f32 %v1298_v1, %v4284_v22  ;;  %v2159_v27 = vmax.f32 %v2063_v35, 0.0  ;;  %v1125_v33 = vpop.permute.xlu1 %1124 }
 0x280   :  { %v5885_v59 = vrot.slane %v2158_v21, %v5875_v26  ;;  %v2572_v28 = vsel %vm2571_vm9, %v2322_v5, %v2318_v13  ;;  %v2682_v30 = vsel %vm2571_vm9, %v2326_v23, %v2322_v5  ;;  %v1308_v34 = vrot.slane %v1221_v63, %v5867_v41 }
 0x281   :  { %v5891_v40 = vsel %vm2573_vm10, %v2326_v23, %v2572_v28  ;;  %v2066_v25 = vmax.f32 %v1300_v15, %v4285_v24  ;;  %v2160_v38 = vmax.f32 %v2064_v10, 0.0  ;;  %v2161_v29 = vmax.f32 %v2065_v3, 0.0 }
 0x282   :  { %7121 = vst [vmem:[#allocation31_spill] sm:$0xff] %v5891_v40  ;;  %v5895_v46 = vsel %vm2571_vm9, %v5885_v59, %v2326_v23  ;;  %v5898_v48 = vrot.slane %v2159_v27, %v5875_v26  ;;  %v1315_v36 = vrot.slane %v1301_v17, %v5867_v41  ;;  %v1316_v49 = vcombine.high %v1308_v34, %v1308_v34 }
 0x283   :  { %v2162_v31 = vmax.f32 %v2066_v25, 0.0  ;;  %v5902_v50 = vrot.slane %v2160_v38, %v5875_v26  ;;  %v5905_v39 = vrot.slane %v2161_v29, %v5875_v26  ;;  %v4286_v18 = vrot.slane %v1308_v34, 9  ;;  %v1127_v55 = vpop.permute.xlu1 %1126 }
 0x284   :  { %v5907_v1 = vcombine.high %v1315_v36, %v1315_v36  ;;  %v4287_v8 = vrot.slane %v1316_v49, 9  ;;  %v4288_v37 = vrot.slane %v1315_v36, 9  ;;  %v1191_v63 = vmax.f32 %v5781_v32, %v1123_v4 }
 0x285   :  { %7122 = vst [vmem:[#allocation32_spill] sm:$0xff] %v5905_v39  ;;  %v5911_v6 = vrot.slane %v2162_v31, %v5875_v26  ;;  %v2067_v11 = vmax.f32 %v1308_v34, %v4286_v18  ;;  %v1192_v7 = vmax.f32 %v5785_v43, %v1125_v33  ;;  %v1193_v13 = vmax.f32 %v5789_v44, %v1127_v55 }
 0x286   :  { %v5916_v20 = vmax.f32 %v1316_v49, %v4287_v8  ;;  %v5918_v22 = vmax.f32 %v1315_v36, %v4288_v37  ;;  %v1222_v35 = vadd.f32 %v5865_v57, %v1191_v63  ;;  %v2683_v43 = vsel %vm2573_vm10, %v5885_v59, %v2682_v30 }
 0x287   :  { %7123 = vst [vmem:[#allocation33_spill] sm:$0xff] %v5911_v6  ;;  %v2163_v21 = vmax.f32 %v2067_v11, 0.0  ;;  %v1223_v5 = vadd.f32 %v5865_v57, %v1192_v7  ;;  %v1224_v32 = vadd.f32 %v5865_v57, %v1193_v13  ;;  %v5923_v4 = vpop.permute.xlu0 %1128  ;;  %v5932_v24 = vsel %vm2575_vm11, %v5898_v48, %v2683_v43 }
 0x288   :  { %v1318_v23 = vcombine.high %v1222_v35, %v1222_v35  ;;  %v1325_v44 = vrot.slane %v1222_v35, %v5867_v41  ;;  %v1194_v17 = vmax.f32 %v5793_v45, %v5923_v4 }
 0x289   :  { %v5935_v10 = vrot.slane %v2163_v21, %v5875_v26  ;;  %v1335_v3 = vcombine.high %v1223_v5, %v1223_v5  ;;  %v1342_v27 = vrot.slane %v1223_v5, %v5867_v41  ;;  %v1352_v33 = vcombine.high %v1224_v32, %v1224_v32 }
 0x28a   :  { %v1332_v28 = vrot.slane %v1318_v23, %v5867_v41  ;;  %v1333_v30 = vcombine.high %v1325_v44, %v1325_v44  ;;  %v4290_v34 = vrot.slane %v1325_v44, 9  ;;  %v1359_v25 = vrot.slane %v1224_v32, %v5867_v41 }
 0x28b   :  { %v1349_v38 = vrot.slane %v1335_v3, %v5867_v41  ;;  %v1350_v45 = vcombine.high %v1342_v27, %v1342_v27  ;;  %v4294_v29 = vrot.slane %v1342_v27, 9  ;;  %v1366_v36 = vrot.slane %v1352_v33, %v5867_v41  ;;  %v1131_v5 = vpop.permute.xlu0 %1130 }
 0x28c   :  { %v1334_v49 = vcombine.high %v1332_v28, %v1332_v28  ;;  %v4291_v31 = vrot.slane %v1333_v30, 9  ;;  %v4292_v18 = vrot.slane %v1332_v28, 9  ;;  %v2071_v55 = vmax.f32 %v1325_v44, %v4290_v34 }
 0x28d   :  { %v1351_v8 = vcombine.high %v1349_v38, %v1349_v38  ;;  %v4295_v37 = vrot.slane %v1350_v45, 9  ;;  %v4296_v63 = vrot.slane %v1349_v38, 9  ;;  %v2075_v11 = vmax.f32 %v1342_v27, %v4294_v29 }
 0x28e   :  { %v4293_v7 = vrot.slane %v1334_v49, 9  ;;  %v2072_v13 = vmax.f32 %v1333_v30, %v4291_v31  ;;  %v2073_v35 = vmax.f32 %v1332_v28, %v4292_v18  ;;  %v2167_v21 = vmax.f32 %v2071_v55, 0.0 }
 0x28f   :  { %v4297_v32 = vrot.slane %v1351_v8, 9  ;;  %v2076_v4 = vmax.f32 %v1350_v45, %v4295_v37  ;;  %v2077_v43 = vmax.f32 %v1349_v38, %v4296_v63  ;;  %v2171_v23 = vmax.f32 %v2075_v11, 0.0  ;;  %v1133_v11 = vpop.permute.xlu0 %1132 }
 0x290   :  { %v2074_v3 = vmax.f32 %v1334_v49, %v4293_v7  ;;  %v2168_v33 = vmax.f32 %v2072_v13, 0.0  ;;  %v2169_v0 = vmax.f32 %v2073_v35, 0.0  ;;  %v2350_v15 = vrot.slane %v2167_v21, %v5875_v26 }
 0x291   :  { %v2078_v44 = vmax.f32 %v1351_v8, %v4297_v32  ;;  %v2172_v34 = vmax.f32 %v2076_v4, 0.0  ;;  %v2173_v40 = vmax.f32 %v2077_v43, 0.0  ;;  %v5944_v27 = vrot.slane %v2171_v23, %v5875_v26  ;;  %v5967_v35 = vpop.permute.xlu1 %1134 }
 0x292   :  { %v2170_v30 = vmax.f32 %v2074_v3, 0.0  ;;  %v2354_v28 = vrot.slane %v2168_v33, %v5875_v26  ;;  %v2358_v29 = vrot.slane %v2169_v0, %v5875_v26  ;;  %v1367_v31 = vcombine.high %v1359_v25, %v1359_v25 }
 0x293   :  { %7124 = vst [vmem:[#allocation34_spill] sm:$0xff] %v5944_v27  ;;  %v2174_v45 = vmax.f32 %v2078_v44, 0.0  ;;  %v5949_v38 = vrot.slane %v2172_v34, %v5875_v26  ;;  %v5952_v49 = vrot.slane %v2173_v40, %v5875_v26  ;;  %v5954_v18 = vcombine.high %v1366_v36, %v1366_v36 }
 0x294   :  { %v5957_v55 = vrot.slane %v2170_v30, %v5875_v26  ;;  %v2585_v8 = vsel %vm2571_vm9, %v2354_v28, %v2350_v15  ;;  %v2689_v37 = vsel %vm2571_vm9, %v2358_v29, %v2354_v28  ;;  %v4298_v63 = vrot.slane %v1359_v25, 9 }
 0x295   :  { %7125 = vst [vmem:[#allocation35_spill] sm:$0xff] %v5949_v38  ;;  %7126 = vst [vmem:[#allocation36_spill] sm:$0xff] %v5952_v49  ;;  %v5962_v0 = vsel %vm2573_vm10, %v2358_v29, %v2585_v8  ;;  %v5965_v7 = vrot.slane %v2174_v45, %v5875_v26  ;;  %v4299_v13 = vrot.slane %v1367_v31, 9  ;;  %v4300_v40 = vrot.slane %v1366_v36, 9 }
 0x296   :  { %7127 = vst [vmem:[#allocation37_spill] sm:$0xff] %v5962_v0  ;;  %v5971_v21 = vsel %vm2571_vm9, %v5957_v55, %v2358_v29  ;;  %v2079_v32 = vmax.f32 %v1359_v25, %v4298_v63  ;;  %v1225_v4 = vadd.f32 %v5865_v57, %v1194_v17  ;;  %v1195_v3 = vmax.f32 %v5797_v47, %v1131_v5 }
 0x297   :  { %7128 = vst [vmem:[#allocation38_spill] sm:$0xff] %v5965_v7  ;;  %v5975_v43 = vmax.f32 %v1367_v31, %v4299_v13  ;;  %v5977_v23 = vmax.f32 %v1366_v36, %v4300_v40  ;;  %v1196_v33 = vmax.f32 %v5801_v16, %v1133_v11  ;;  %v1197_v28 = vmax.f32 %v5805_v14, %v5967_v35 }
 0x298   :  { %v2175_v44 = vmax.f32 %v2079_v32, 0.0  ;;  %v1369_v34 = vcombine.high %v1225_v4, %v1225_v4  ;;  %v1376_v30 = vrot.slane %v1225_v4, %v5867_v41  ;;  %v1226_v29 = vadd.f32 %v5865_v57, %v1195_v3 }
 0x299   :  { %v1227_v25 = vadd.f32 %v5865_v57, %v1196_v33  ;;  %v2685_v17 = vsel %vm2577_vm12, %v5902_v50, %v5932_v24  ;;  %v5991_v47 = vsel %vm2573_vm10, %v5957_v55, %v2689_v37 }
 0x29a   :  { %v5994_v16 = vrot.slane %v2175_v44, %v5875_v26  ;;  %v1383_v36 = vrot.slane %v1369_v34, %v5867_v41  ;;  %v1384_v5 = vcombine.high %v1376_v30, %v1376_v30  ;;  %v4302_v31 = vrot.slane %v1376_v30, 9 }
 0x29b   :  { %v1386_v14 = vcombine.high %v1226_v29, %v1226_v29  ;;  %v1393_v45 = vrot.slane %v1226_v29, %v5867_v41  ;;  %v1403_v8 = vcombine.high %v1227_v25, %v1227_v25  ;;  %v1410_v63 = vrot.slane %v1227_v25, %v5867_v41 }
 0x29c   :  { %v1385_v11 = vcombine.high %v1383_v36, %v1383_v36  ;;  %v4303_v13 = vrot.slane %v1384_v5, 9  ;;  %v4304_v24 = vrot.slane %v1383_v36, 9  ;;  %v2083_v40 = vmax.f32 %v1376_v30, %v4302_v31 }
 0x29d   :  { %v1400_v37 = vrot.slane %v1386_v14, %v5867_v41  ;;  %v1401_v35 = vcombine.high %v1393_v45, %v1393_v45  ;;  %v4306_v32 = vrot.slane %v1393_v45, 9  ;;  %v1417_v4 = vrot.slane %v1403_v8, %v5867_v41 }
 0x29e   :  { %v4305_v3 = vrot.slane %v1385_v11, 9  ;;  %v2084_v33 = vmax.f32 %v1384_v5, %v4303_v13  ;;  %v2085_v44 = vmax.f32 %v1383_v36, %v4304_v24  ;;  %v2179_v34 = vmax.f32 %v2083_v40, 0.0 }
 0x29f   :  { %v1402_v29 = vcombine.high %v1400_v37, %v1400_v37  ;;  %v4307_v15 = vrot.slane %v1401_v35, 9  ;;  %v4308_v25 = vrot.slane %v1400_v37, 9  ;;  %v2087_v0 = vmax.f32 %v1393_v45, %v4306_v32 }
 0x2a0   :  { %v2086_v42 = vmax.f32 %v1385_v11, %v4305_v3  ;;  %v2180_v60 = vmax.f32 %v2084_v33, 0.0  ;;  %v2181_v30 = vmax.f32 %v2085_v44, 0.0  ;;  %v2382_v31 = vrot.slane %v2179_v34, %v5875_v26 }
 0x2a1   :  { %v4309_v14 = vrot.slane %v1402_v29, 9  ;;  %v2088_v12 = vmax.f32 %v1401_v35, %v4307_v15  ;;  %v2089_v19 = vmax.f32 %v1400_v37, %v4308_v25  ;;  %v2183_v58 = vmax.f32 %v2087_v0, 0.0 }
 0x2a2   :  { %v2182_v8 = vmax.f32 %v2086_v42, 0.0  ;;  %v2386_v56 = vrot.slane %v2180_v60, %v5875_v26  ;;  %v2390_v36 = vrot.slane %v2181_v30, %v5875_v26  ;;  %v1418_v5 = vcombine.high %v1410_v63, %v1410_v63 }
 0x2a3   :  { %v2090_v13 = vmax.f32 %v1402_v29, %v4309_v14  ;;  %v2184_v24 = vmax.f32 %v2088_v12, 0.0  ;;  %v2185_v40 = vmax.f32 %v2089_v19, 0.0  ;;  %v6005_v45 = vrot.slane %v2183_v58, %v5875_v26  ;;  %v1137_v29 = vpop.permute.xlu1 %1136 }
 0x2a4   :  { %v6008_v11 = vrot.slane %v2182_v8, %v5875_v26  ;;  %v2592_v32 = vsel %vm2571_vm9, %v2386_v56, %v2382_v31  ;;  %v6012_v15 = vsel %vm2571_vm9, %v2390_v36, %v2386_v56  ;;  %v6014_v42 = vcombine.high %v1417_v4, %v1417_v4 }
 0x2a5   :  { %7129 = vst [vmem:[#allocation39_spill] sm:$0xff] %v6005_v45  ;;  %v6017_v60 = vsel %vm2573_vm10, %v2390_v36, %v2592_v32  ;;  %v2186_v0 = vmax.f32 %v2090_v13, 0.0  ;;  %v6020_v12 = vrot.slane %v2184_v24, %v5875_v26  ;;  %v6023_v58 = vrot.slane %v2185_v40, %v5875_v26 }
 0x2a6   :  { %7130 = vst [vmem:[#allocation40_spill] sm:$0xff] %v6008_v11  ;;  %7131 = vst [vmem:[#allocation41_spill] sm:$0xff] %v6014_v42  ;;  %v6027_v19 = vsel %vm2571_vm9, %v6008_v11, %v2390_v36  ;;  %v4310_v37 = vrot.slane %v1410_v63, 9  ;;  %v4311_v35 = vrot.slane %v1418_v5, 9  ;;  %v4312_v56 = vrot.slane %v1417_v4, 9 }
 0x2a7   :  { %7132 = vst [vmem:[#allocation42_spill] sm:$0xff] %v6017_v60  ;;  %7133 = vst [vmem:[#allocation43_spill] sm:$0xff] %v6020_v12  ;;  %v6030_v3 = vrot.slane %v2186_v0, %v5875_v26  ;;  %v1228_v44 = vadd.f32 %v5865_v57, %v1197_v28  ;;  %v2686_v34 = vsel %vm2579_vm13, %v5905_v39, %v2685_v17 }
 0x2a8   :  { %7134 = vst [vmem:[#allocation44_spill] sm:$0xff] %v6023_v58  ;;  %v2091_v25 = vmax.f32 %v1410_v63, %v4310_v37  ;;  %v6036_v30 = vmax.f32 %v1418_v5, %v4311_v35  ;;  %v6038_v31 = vmax.f32 %v1417_v4, %v4312_v56  ;;  %v2687_v14 = vsel %vm2581_vm14, %v5911_v6, %v2686_v34 }
 0x2a9   :  { %7135 = vst [vmem:[#allocation45_spill] sm:$0xff] %v6030_v3  ;;  %v1420_v8 = vcombine.high %v1228_v44, %v1228_v44  ;;  %v1427_v36 = vrot.slane %v1228_v44, %v5867_v41  ;;  %v2688_v13 = vsel %vm2583_vm15, %v5935_v10, %v2687_v14  ;;  %v2691_v28 = vsel %vm2575_vm11, %v5944_v27, %v5991_v47 }
 0x2aa   :  { %7136 = vst [vmem:[#allocation46_spill] sm:$0xff] %v6038_v31  ;;  %v2187_v17 = vmax.f32 %v2091_v25, 0.0  ;;  %v2692_v63 = vsel %vm2577_vm12, %v5949_v38, %v2691_v28  ;;  %v1198_v4 = vmax.f32 %v5809_v9, %v1137_v29  ;;  %v2164_v5 = vmax.f32 %v5916_v20, 0.0 }
 0x2ab   :  { %v1434_v24 = vrot.slane %v1420_v8, %v5867_v41  ;;  %v1435_v40 = vcombine.high %v1427_v36, %v1427_v36  ;;  %v4314_v32 = vrot.slane %v1427_v36, 9  ;;  %v2693_v0 = vsel %vm2579_vm13, %v5952_v49, %v2692_v63 }
 0x2ac   :  { %v6056_v37 = vrot.slane %v2187_v17, %v5875_v26  ;;  %v2694_v47 = vsel %vm2581_vm14, %v5965_v7, %v2693_v0  ;;  %v1229_v35 = vadd.f32 %v5865_v57, %v1198_v4  ;;  %v2176_v56 = vmax.f32 %v5975_v43, 0.0 }
 0x2ad   :  { %v1436_v9 = vcombine.high %v1434_v24, %v1434_v24  ;;  %v4315_v44 = vrot.slane %v1435_v40, 9  ;;  %v4316_v20 = vrot.slane %v1434_v24, 9  ;;  %v2095_v34 = vmax.f32 %v1427_v36, %v4314_v32 }
 0x2ae   :  { %v2695_v29 = vsel %vm2583_vm15, %v5994_v16, %v2694_v47  ;;  %v1437_v25 = vcombine.high %v1229_v35, %v1229_v35  ;;  %v1444_v14 = vrot.slane %v1229_v35, %v5867_v41  ;;  %v6066_v8 = vrot.slane %v2164_v5, %v5875_v26 }
 0x2af   :  { %v4317_v28 = vrot.slane %v1436_v9, 9  ;;  %v2096_v17 = vmax.f32 %v1435_v40, %v4315_v44  ;;  %v2097_v63 = vmax.f32 %v1434_v24, %v4316_v20  ;;  %v2191_v0 = vmax.f32 %v2095_v34, 0.0 }
 0x2b0   :  { %v4784_v4 = vpack.i.bf16 %v2695_v29, %v2688_v13  ;;  %v1451_v43 = vrot.slane %v1437_v25, %v5867_v41  ;;  %v1452_v33 = vcombine.high %v1444_v14, %v1444_v14  ;;  %v4318_v60 = vrot.slane %v1444_v14, 9 }
 0x2b1   :  { %v2098_v42 = vmax.f32 %v1436_v9, %v4317_v28  ;;  %v2192_v36 = vmax.f32 %v2096_v17, 0.0  ;;  %v2193_v32 = vmax.f32 %v2097_v63, 0.0  ;;  %v2414_v47 = vrot.slane %v2191_v0, %v5875_v26 }
 0x2b2   :  { %4785 = vrot.lane.b32.xlu0 %v4784_v4, %s5154_s28  ;;  %v1453_v35 = vcombine.high %v1451_v43, %v1451_v43  ;;  %v4319_v5 = vrot.slane %v1452_v33, 9  ;;  %v4320_v62 = vrot.slane %v1451_v43, 9  ;;  %v2099_v31 = vmax.f32 %v1444_v14, %v4318_v60 }
 0x2b3   :  { %v2194_v40 = vmax.f32 %v2098_v42, 0.0  ;;  %v2418_v24 = vrot.slane %v2192_v36, %v5875_v26  ;;  %v2422_v13 = vrot.slane %v2193_v32, %v5875_v26  ;;  %v6074_v44 = vrot.slane %v2176_v56, %v5875_v26 }
 0x2b4   :  { %v4321_v9 = vrot.slane %v1453_v35, 9  ;;  %v2100_v20 = vmax.f32 %v1452_v33, %v4319_v5  ;;  %v2101_v34 = vmax.f32 %v1451_v43, %v4320_v62  ;;  %v2195_v29 = vmax.f32 %v2099_v31, 0.0  ;;  %v1139_v5 = vpop.permute.xlu1 %1138 }
 0x2b5   :  { %v6077_v25 = vrot.slane %v2194_v40, %v5875_v26  ;;  %v2599_v28 = vsel %vm2571_vm9, %v2418_v24, %v2414_v47  ;;  %v6081_v17 = vsel %vm2571_vm9, %v2422_v13, %v2418_v24  ;;  %v2803_v42 = vsel %vm2573_vm10, %v5898_v48, %v5895_v46  ;;  %v6115_v40 = vpop.permute.xlu0 %1140 }
 0x2b6   :  { %v6087_v60 = vsel %vm2573_vm10, %v2422_v13, %v2599_v28  ;;  %v2102_v56 = vmax.f32 %v1453_v35, %v4321_v9  ;;  %v2196_v14 = vmax.f32 %v2100_v20, 0.0  ;;  %v2197_v33 = vmax.f32 %v2101_v34, 0.0 }
 0x2b7   :  { %7137 = vst [vmem:[#allocation47_spill] sm:$0xff] %v6077_v25  ;;  %7138 = vst [vmem:[#allocation48_spill] sm:$0xff] %v6087_v60  ;;  %v6091_v62 = vsel %vm2571_vm9, %v6077_v25, %v2422_v13  ;;  %v6094_v31 = vrot.slane %v2195_v29, %v5875_v26  ;;  %v2804_v63 = vsel %vm2575_vm11, %v5902_v50, %v2803_v42  ;;  %v2165_v35 = vmax.f32 %v5918_v22, 0.0 }
 0x2b8   :  { %v2810_v46 = vsel %vm2573_vm10, %v5944_v27, %v5971_v21  ;;  %v2198_v0 = vmax.f32 %v2102_v56, 0.0  ;;  %v6102_v4 = vrot.slane %v2196_v14, %v5875_v26  ;;  %v6105_v43 = vrot.slane %v2197_v33, %v5875_v26 }
 0x2b9   :  { %7139 = vst [vmem:[#allocation49_spill] sm:$0xff] %v6094_v31  ;;  %v2805_v36 = vsel %vm2577_vm12, %v5905_v39, %v2804_v63  ;;  %v2811_v47 = vsel %vm2575_vm11, %v5949_v38, %v2810_v46  ;;  %v2177_v21 = vmax.f32 %v5977_v23, 0.0  ;;  %v2922_v20 = vsel %vm2571_vm9, %v5898_v48, %v5885_v59 }
 0x2ba   :  { %7140 = vst [vmem:[#allocation50_spill] sm:$0xff] %v6102_v4  ;;  %7141 = vst [vmem:[#allocation51_spill] sm:$0xff] %v6105_v43  ;;  %v2806_v32 = vsel %vm2579_vm13, %v5911_v6, %v2805_v36  ;;  %v6118_v24 = vrot.slane %v2198_v0, %v5875_v26  ;;  %v2812_v9 = vsel %vm2577_vm12, %v5952_v49, %v2811_v47  ;;  %v7143_v0 = vrot.slane %v5907_v1, 9 }
 0x2bb   :  { %v2807_v13 = vsel %vm2581_vm14, %v5935_v10, %v2806_v32  ;;  %v2813_v23 = vsel %vm2579_vm13, %v5965_v7, %v2812_v9  ;;  %v6132_v34 = vrot.slane %v2165_v35, %v5875_v26  ;;  %v6135_v29 = vrot.slane %v2177_v21, %v5875_v26 }
 0x2bc   :  { %7142 = vst [vmem:[#allocation52_spill] sm:$0xff] %v6118_v24  ;;  %v2808_v22 = vsel %vm2583_vm15, %v6066_v8, %v2807_v13  ;;  %v2814_v28 = vsel %vm2581_vm14, %v5994_v16, %v2813_v23  ;;  %v2923_v42 = vsel %vm2573_vm10, %v5902_v50, %v2922_v20  ;;  %v2929_v56 = vsel %vm2571_vm9, %v5944_v27, %v5957_v55  ;;  %v1143_v20 = vpop.permute.xlu0 %1142 }
 0x2bd   :  { %v1199_v14 = vmax.f32 %v5813_v51, %v1139_v5  ;;  %v2815_v33 = vsel %vm2583_vm15, %v6074_v44, %v2814_v28  ;;  %v2924_v63 = vsel %vm2575_vm11, %v5905_v39, %v2923_v42  ;;  %v2930_v46 = vsel %vm2573_vm10, %v5949_v38, %v2929_v56 }
 0x2be   :  { %v2070_v36 = vmax.f32 %v5907_v1, %v7143_v0  ;;  %v4789_v32 = vpack.i.bf16 %v2815_v33, %v2808_v22  ;;  %v2925_v47 = vsel %vm2577_vm12, %v5911_v6, %v2924_v63  ;;  %v2931_v51 = vsel %vm2575_vm11, %v5952_v49, %v2930_v46 }
 0x2bf   :  { %v1230_v35 = vadd.f32 %v5865_v57, %v1199_v14  ;;  %v2926_v21 = vsel %vm2579_vm13, %v5935_v10, %v2925_v47  ;;  %v2932_v5 = vsel %vm2577_vm12, %v5965_v7, %v2931_v51  ;;  %v7144_v13 = vrot.slane %v5954_v18, 9 }
 0x2c0   :  { %v2166_v1 = vmax.f32 %v2070_v36, 0.0  ;;  %4790 = vrot.lane.b32.xlu1 %v4789_v32, %s5155_s29  ;;  %v2927_v22 = vsel %vm2581_vm14, %v6066_v8, %v2926_v21  ;;  %v2933_v23 = vsel %vm2579_vm13, %v5994_v16, %v2932_v5  ;;  %v3042_v51 = vsel %vm2571_vm9, %v5902_v50, %v5898_v48 }
 0x2c1   :  { %v2082_v9 = vmax.f32 %v5954_v18, %v7144_v13  ;;  %v1454_v28 = vcombine.high %v1230_v35, %v1230_v35  ;;  %v1461_v42 = vrot.slane %v1230_v35, %v5867_v41  ;;  %v2928_v56 = vsel %vm2583_vm15, %v6132_v34, %v2927_v22 }
 0x2c2   :  { %v2934_v18 = vsel %vm2581_vm14, %v6074_v44, %v2933_v23  ;;  %v3013_v33 = vrot.slane %v2166_v1, %v5875_v26  ;;  %v3049_v35 = vsel %vm2571_vm9, %v5949_v38, %v5944_v27  ;;  %v3043_v1 = vsel %vm2573_vm10, %v5905_v39, %v3042_v51 }
 0x2c3   :  { %v2178_v14 = vmax.f32 %v2082_v9, 0.0  ;;  %v2935_v63 = vsel %vm2583_vm15, %v6135_v29, %v2934_v18  ;;  %v1468_v46 = vrot.slane %v1454_v28, %v5867_v41  ;;  %v1469_v0 = vcombine.high %v1461_v42, %v1461_v42  ;;  %v4873_v18 = vld [vmem:[#allocation8] sm:$0xff]  }
 0x2c4   :  { %v4322_v36 = vrot.slane %v1461_v42, 9  ;;  %v4794_v32 = vpack.i.bf16 %v2935_v63, %v2928_v56  ;;  %v3050_v22 = vsel %vm2573_vm10, %v5952_v49, %v3049_v35  ;;  %v1200_v23 = vmax.f32 %v5817_v52, %v6115_v40  ;;  %v6197_v56 = vpop.permute.xlu0 %1144  ;;  %3276 = vmatpush1.bf16.msra.mxu1 %v4873_v18  ;;  %v4874_v40 = vld [vmem:[#allocation8 + $0x8] sm:$0xff]  }
 0x2c5   :  { %v3017_v47 = vrot.slane %v2178_v14, %v5875_v26  ;;  %v6187_v21 = vcombine.high %v1468_v46, %v1468_v46  ;;  %v4323_v5 = vrot.slane %v1469_v0, 9  ;;  %v4324_v13 = vrot.slane %v1468_v46, 9 }
 0x2c6   :  { %v2103_v9 = vmax.f32 %v1461_v42, %v4322_v36  ;;  %4795 = vrot.lane.b32.xlu0 %v4794_v32, %s5156_s11  ;;  %v1201_v28 = vmax.f32 %v5821_v54, %v1143_v20  ;;  %v3044_v32 = vsel %vm2575_vm11, %v5911_v6, %v3043_v1  ;;  %v3051_v51 = vsel %vm2575_vm11, %v5965_v7, %v3050_v22 }
 0x2c7   :  { %v6200_v42 = vmax.f32 %v1469_v0, %v4323_v5  ;;  %v6202_v63 = vmax.f32 %v1468_v46, %v4324_v13  ;;  %v1231_v52 = vadd.f32 %v5865_v57, %v1200_v23  ;;  %v3045_v46 = vsel %vm2577_vm12, %v5935_v10, %v3044_v32 }
 0x2c8   :  { %v2199_v36 = vmax.f32 %v2103_v9, 0.0  ;;  %v1232_v54 = vadd.f32 %v5865_v57, %v1201_v28  ;;  %v3052_v0 = vsel %vm2577_vm12, %v5994_v16, %v3051_v51  ;;  %v1202_v35 = vmax.f32 %v5825_v2, %v6197_v56 }
 0x2c9   :  { %v7145_v5 = vmov 0   ;;  %v3046_v13 = vsel %vm2579_vm13, %v6066_v8, %v3045_v46  ;;  %v3053_v9 = vsel %vm2579_vm13, %v6074_v44, %v3052_v0  ;;  %v1471_v1 = vcombine.high %v1231_v52, %v1231_v52  ;;  %v4875_v44 = vld [vmem:[#allocation8 + $0x10] sm:$0xff]  }
 0x2ca   :  { %v6211_v20 = vrot.slane %v2199_v36, %v5875_v26  ;;  %3277 = vmatprep.subr.bf16.mxu1 %v7145_v5  ;;  %v1478_v22 = vrot.slane %v1231_v52, %v5867_v41  ;;  %v3047_v10 = vsel %vm2581_vm14, %v6132_v34, %v3046_v13  ;;  %v3054_v16 = vsel %vm2581_vm14, %v6135_v29, %v3053_v9 }
 0x2cb   :  { %v1488_v23 = vcombine.high %v1232_v54, %v1232_v54  ;;  %v1495_v2 = vrot.slane %v1232_v54, %v5867_v41  ;;  %v3048_v28 = vsel %vm2583_vm15, %v3013_v33, %v3047_v10  ;;  %v3055_v56 = vsel %vm2583_vm15, %v3017_v47, %v3054_v16  ;;  %3278 = vmatpush1.bf16.msra.mxu1 %v4874_v40  ;;  %v4876_v16 = vld [vmem:[#allocation8 + $0x18] sm:$0xff]  }
 0x2cc   :  { %v1485_v8 = vrot.slane %v1471_v1, %v5867_v41  ;;  %v1486_v18 = vcombine.high %v1478_v22, %v1478_v22  ;;  %v4799_v36 = vpack.i.bf16 %v3055_v56, %v3048_v28  ;;  %v4326_v32 = vrot.slane %v1478_v22, 9  ;;  %3279 = vmatprep.subr.bf16.mxu1 %v7145_v5 }
 0x2cd   :  { %v1502_v51 = vrot.slane %v1488_v23, %v5867_v41  ;;  %v1503_v34 = vcombine.high %v1495_v2, %v1495_v2  ;;  %v4330_v54 = vrot.slane %v1495_v2, 9 }
 0x2ce   :  { %v1487_v29 = vcombine.high %v1485_v8, %v1485_v8  ;;  %v4327_v52 = vrot.slane %v1486_v18, 9  ;;  %v4328_v46 = vrot.slane %v1485_v8, 9  ;;  %4800 = vrot.lane.b32.xlu1 %v4799_v36, %s5157_s13  ;;  %v2107_v33 = vmax.f32 %v1478_v22, %v4326_v32 }
 0x2cf   :  { %v1504_v47 = vcombine.high %v1502_v51, %v1502_v51  ;;  %v4331_v0 = vrot.slane %v1503_v34, 9  ;;  %v4332_v13 = vrot.slane %v1502_v51, 9  ;;  %v2111_v10 = vmax.f32 %v1495_v2, %v4330_v54  ;;  %3280 = vmatpush1.bf16.msra.mxu1 %v4875_v44 }
 0x2d0   :  { %v4329_v40 = vrot.slane %v1487_v29, 9  ;;  %v2108_v9 = vmax.f32 %v1486_v18, %v4327_v52  ;;  %v2109_v1 = vmax.f32 %v1485_v8, %v4328_v46  ;;  %v2203_v23 = vmax.f32 %v2107_v33, 0.0  ;;  %3281 = vmatprep.subr.bf16.mxu1 %v7145_v5  ;;  %v1147_v18 = vpop.permute.xlu1 %1146 }
 0x2d1   :  { %v4333_v28 = vrot.slane %v1504_v47, 9  ;;  %v2112_v56 = vmax.f32 %v1503_v34, %v4331_v0  ;;  %v2113_v14 = vmax.f32 %v1502_v51, %v4332_v13  ;;  %v2207_v36 = vmax.f32 %v2111_v10, 0.0  ;;  %v4877_v51 = vld [vmem:[#allocation8 + $0x20] sm:$0xff]  }
 0x2d2   :  { %v2110_v60 = vmax.f32 %v1487_v29, %v4329_v40  ;;  %v2204_v7 = vmax.f32 %v2108_v9, 0.0  ;;  %v2205_v49 = vmax.f32 %v2109_v1, 0.0  ;;  %v2446_v22 = vrot.slane %v2203_v23, %v5875_v26  ;;  %v4878_v40 = vld [vmem:[#allocation8 + $0x28] sm:$0xff]  }
 0x2d3   :  { %v2114_v32 = vmax.f32 %v1504_v47, %v4333_v28  ;;  %v2208_v6 = vmax.f32 %v2112_v56, 0.0  ;;  %v2209_v38 = vmax.f32 %v2113_v14, 0.0  ;;  %v6241_v34 = vrot.slane %v2207_v36, %v5875_v26  ;;  %3282 = vmatpush1.bf16.msra.mxu1 %v4876_v16 }
 0x2d4   :  { %v2206_v8 = vmax.f32 %v2110_v60, 0.0  ;;  %v2450_v2 = vrot.slane %v2204_v7, %v5875_v26  ;;  %v2454_v44 = vrot.slane %v2205_v49, %v5875_v26  ;;  %v1233_v14 = vadd.f32 %v5865_v57, %v1202_v35  ;;  %3283 = vmatprep.subr.bf16.mxu1 %v7145_v5 }
 0x2d5   :  { %v2210_v29 = vmax.f32 %v2114_v32, 0.0  ;;  %v6244_v52 = vrot.slane %v2208_v6, %v5875_v26  ;;  %v6247_v46 = vrot.slane %v2209_v38, %v5875_v26  ;;  %v1203_v54 = vmax.f32 %v5829_v61, %v1147_v18 }
 0x2d6   :  { %v6252_v7 = vrot.slane %v2206_v8, %v5875_v26  ;;  %v2606_v49 = vsel %vm2571_vm9, %v2450_v2, %v2446_v22  ;;  %v6256_v60 = vsel %vm2571_vm9, %v2454_v44, %v2450_v2  ;;  %v1505_v33 = vcombine.high %v1233_v14, %v1233_v14 }
 0x2d7   :  { %v6260_v6 = vsel %vm2573_vm10, %v2454_v44, %v2606_v49  ;;  %v6263_v38 = vrot.slane %v2210_v29, %v5875_v26  ;;  %v1512_v35 = vrot.slane %v1233_v14, %v5867_v41  ;;  %v1234_v0 = vadd.f32 %v5865_v57, %v1203_v54  ;;  %3284 = vmatpush1.bf16.msra.mxu1 %v4877_v51  ;;  %v1149_v51 = vpop.permute.xlu1 %1148  ;;  %v4879_v29 = vld [vmem:[#allocation8 + $0x30] sm:$0xff]  }
 0x2d8   :  { %7146 = vst [vmem:[#allocation53_spill] sm:$0xff] %v6260_v6  ;;  %v6268_v47 = vsel %vm2571_vm9, %v6252_v7, %v2454_v44  ;;  %v2697_v13 = vsel %vm2573_vm10, %v6008_v11, %v6012_v15  ;;  %v2704_v61 = vsel %vm2573_vm10, %v6077_v25, %v6081_v17  ;;  %v1519_v9 = vrot.slane %v1505_v33, %v5867_v41 }
 0x2d9   :  { %v1520_v1 = vcombine.high %v1512_v35, %v1512_v35  ;;  %v4334_v10 = vrot.slane %v1512_v35, 9  ;;  %v2698_v16 = vsel %vm2575_vm11, %v6005_v45, %v2697_v13  ;;  %3285 = vmatprep.subr.bf16.mxu1 %v7145_v5  ;;  %v1522_v23 = vcombine.high %v1234_v0, %v1234_v0 }
 0x2da   :  { %v1529_v28 = vrot.slane %v1234_v0, %v5867_v41  ;;  %v2699_v15 = vsel %vm2577_vm12, %v6020_v12, %v2698_v16  ;;  %v2705_v17 = vsel %vm2575_vm11, %v6094_v31, %v2704_v61  ;;  %v6286_v56 = vcombine.high %v1519_v9, %v1519_v9 }
 0x2db   :  { %v4335_v36 = vrot.slane %v1520_v1, 9  ;;  %v4336_v22 = vrot.slane %v1519_v9, 9  ;;  %v2115_v32 = vmax.f32 %v1512_v35, %v4334_v10  ;;  %v1536_v18 = vrot.slane %v1522_v23, %v5867_v41  ;;  %3286 = vmatpush1.bf16.msra.mxu1 %v4878_v40 }
 0x2dc   :  { %v1537_v8 = vcombine.high %v1529_v28, %v1529_v28  ;;  %v4338_v2 = vrot.slane %v1529_v28, 9  ;;  %v2700_v44 = vsel %vm2579_vm13, %v6023_v58, %v2699_v15  ;;  %3287 = vmatprep.subr.bf16.mxu1 %v7145_v5  ;;  %v2706_v16 = vsel %vm2577_vm12, %v6102_v4, %v2705_v17 }
 0x2dd   :  { %v6292_v49 = vmax.f32 %v1520_v1, %v4335_v36  ;;  %v6294_v54 = vmax.f32 %v1519_v9, %v4336_v22  ;;  %v2211_v33 = vmax.f32 %v2115_v32, 0.0  ;;  %v1538_v35 = vcombine.high %v1536_v18, %v1536_v18  ;;  %v4880_v22 = vld [vmem:[#allocation8 + $0x38] sm:$0xff]  }
 0x2de   :  { %v4339_v0 = vrot.slane %v1537_v8, 9  ;;  %v4340_v13 = vrot.slane %v1536_v18, 9  ;;  %v2119_v61 = vmax.f32 %v1529_v28, %v4338_v2  ;;  %v2701_v40 = vsel %vm2581_vm14, %v6030_v3, %v2700_v44 }
 0x2df   :  { %v6298_v10 = vrot.slane %v2211_v33, %v5875_v26  ;;  %v1204_v1 = vmax.f32 %v5833_v53, %v1149_v51  ;;  %v4341_v9 = vrot.slane %v1538_v35, 9  ;;  %3288 = vmatpush1.bf16.msra.mxu1 %v4879_v29  ;;  %v2702_v28 = vsel %vm2583_vm15, %v6056_v37, %v2701_v40 }
 0x2e0   :  { %v2120_v23 = vmax.f32 %v1537_v8, %v4339_v0  ;;  %v2121_v15 = vmax.f32 %v1536_v18, %v4340_v13  ;;  %v2215_v36 = vmax.f32 %v2119_v61, 0.0  ;;  %v2707_v32 = vsel %vm2579_vm13, %v6105_v43, %v2706_v16  ;;  %3289 = vmatprep.subr.bf16.mxu1 %v7145_v5  ;;  %v4881_v61 = vld [vmem:[#allocation8 + $0x40] sm:$0xff]  }
 0x2e1   :  { %v1235_v2 = vadd.f32 %v5865_v57, %v1204_v1  ;;  %v2188_v44 = vmax.f32 %v6036_v30, 0.0  ;;  %v2122_v17 = vmax.f32 %v1538_v35, %v4341_v9  ;;  %v2708_v8 = vsel %vm2581_vm14, %v6118_v24, %v2707_v32 }
 0x2e2   :  { %v2216_v53 = vmax.f32 %v2120_v23, 0.0  ;;  %v2217_v51 = vmax.f32 %v2121_v15, 0.0  ;;  %v2478_v18 = vrot.slane %v2215_v36, %v5875_v26  ;;  %v2200_v0 = vmax.f32 %v6200_v42, 0.0 }
 0x2e3   :  { %v1539_v29 = vcombine.high %v1235_v2, %v1235_v2  ;;  %v1546_v33 = vrot.slane %v1235_v2, %v5867_v41  ;;  %v2218_v13 = vmax.f32 %v2122_v17, 0.0  ;;  %v2709_v35 = vsel %vm2583_vm15, %v6211_v20, %v2708_v8  ;;  %3290 = vmatpush1.bf16.msra.mxu1 %v4880_v22 }
 0x2e4   :  { %v2482_v57 = vrot.slane %v2216_v53, %v5875_v26  ;;  %v2486_v30 = vrot.slane %v2217_v51, %v5875_v26  ;;  %v4804_v40 = vpack.i.bf16 %v2709_v35, %v2702_v28  ;;  %3291 = vmatprep.subr.bf16.mxu1 %v7145_v5  ;;  %v6331_v36 = vrot.slane %v2188_v44, %v5875_v26  ;;  %v7148_v35 = vld [vmem:[#allocation46_spill] sm:$0xff] }
 0x2e5   :  { %v1553_v16 = vrot.slane %v1539_v29, %v5867_v41  ;;  %v1554_v1 = vcombine.high %v1546_v33, %v1546_v33  ;;  %v4342_v9 = vrot.slane %v1546_v33, 9  ;;  %v6324_v23 = vrot.slane %v2218_v13, %v5875_v26 }
 0x2e6   :  { %v2613_v42 = vsel %vm2571_vm9, %v2482_v57, %v2478_v18  ;;  %v6328_v15 = vsel %vm2571_vm9, %v2486_v30, %v2482_v57  ;;  %4805 = vrot.lane.b32.xlu0 %v4804_v40, %s5154_s28  ;;  %v6342_v51 = vrot.slane %v2200_v0, %v5875_v26  ;;  %v2817_v44 = vsel %vm2573_vm10, %v6005_v45, %v6027_v19  ;;  %v4882_v18 = vld [vmem:[#allocation8 + $0x48] sm:$0xff]  }
 0x2e7   :  { %v6334_v22 = vsel %vm2573_vm10, %v2486_v30, %v2613_v42  ;;  %v1555_v28 = vcombine.high %v1553_v16, %v1553_v16  ;;  %v4343_v32 = vrot.slane %v1554_v1, 9  ;;  %v4344_v2 = vrot.slane %v1553_v16, 9  ;;  %3292 = vmatpush1.bf16.msra.mxu1 %v4881_v61 }
 0x2e8   :  { %7147 = vst [vmem:[#allocation54_spill] sm:$0xff] %v6334_v22  ;;  %v6339_v17 = vsel %vm2571_vm9, %v6324_v23, %v2486_v30  ;;  %v2123_v53 = vmax.f32 %v1546_v33, %v4342_v9  ;;  %v2818_v57 = vsel %vm2575_vm11, %v6020_v12, %v2817_v44  ;;  %3293 = vmatprep.subr.bf16.mxu1 %v7145_v5  ;;  %v2189_v19 = vmax.f32 %v7148_v35, 0.0 }
 0x2e9   :  { %v4345_v8 = vrot.slane %v1555_v28, 9  ;;  %v2124_v29 = vmax.f32 %v1554_v1, %v4343_v32  ;;  %v2125_v13 = vmax.f32 %v1553_v16, %v4344_v2  ;;  %v2819_v33 = vsel %vm2577_vm12, %v6023_v58, %v2818_v57 }
 0x2ea   :  { %v2219_v30 = vmax.f32 %v2123_v53, 0.0  ;;  %v2824_v0 = vsel %vm2573_vm10, %v6094_v31, %v6091_v62  ;;  %v2820_v16 = vsel %vm2579_vm13, %v6030_v3, %v2819_v33  ;;  %v2201_v2 = vmax.f32 %v6202_v63, 0.0  ;;  %v4883_v62 = vld [vmem:[#allocation8 + $0x50] sm:$0xff]  }
 0x2eb   :  { %v2126_v61 = vmax.f32 %v1555_v28, %v4345_v8  ;;  %v2220_v40 = vmax.f32 %v2124_v29, 0.0  ;;  %v2221_v9 = vmax.f32 %v2125_v13, 0.0  ;;  %v2821_v42 = vsel %vm2581_vm14, %v6056_v37, %v2820_v16  ;;  %3294 = vmatpush1.bf16.msra.mxu1 %v4882_v18  ;;  %v1151_v29 = vpop.permute.xlu1 %1150 }
 0x2ec   :  { %v6359_v1 = vrot.slane %v2219_v30, %v5875_v26  ;;  %v2825_v32 = vsel %vm2575_vm11, %v6102_v4, %v2824_v0  ;;  %v2822_v8 = vsel %vm2583_vm15, %v6331_v36, %v2821_v42  ;;  %3295 = vmatprep.subr.bf16.mxu1 %v7145_v5  ;;  %v6378_v63 = vrot.slane %v2189_v19, %v5875_v26  ;;  %v1153_v42 = vpop.permute.xlu0 %1152 }
 0x2ed   :  { %v2222_v53 = vmax.f32 %v2126_v61, 0.0  ;;  %v6367_v28 = vrot.slane %v2220_v40, %v5875_v26  ;;  %v6370_v44 = vrot.slane %v2221_v9, %v5875_v26  ;;  %v2826_v13 = vsel %vm2577_vm12, %v6105_v43, %v2825_v32  ;;  %v7149_v9 = vld [vmem:[#allocation24_spill] sm:$0xff] }
 0x2ee   :  { %v6381_v18 = vrot.slane %v2201_v2, %v5875_v26  ;;  %v2936_v57 = vsel %vm2571_vm9, %v6005_v45, %v6008_v11  ;;  %v2827_v33 = vsel %vm2579_vm13, %v6118_v24, %v2826_v13  ;;  %v2943_v35 = vsel %vm2571_vm9, %v6094_v31, %v6077_v25  ;;  %v7150_v13 = vld [vmem:[#allocation41_spill] sm:$0xff] }
 0x2ef   :  { %v6387_v30 = vrot.slane %v2222_v53, %v5875_v26  ;;  %v2937_v0 = vsel %vm2573_vm10, %v6020_v12, %v2936_v57  ;;  %v2828_v19 = vsel %vm2581_vm14, %v6211_v20, %v2827_v33  ;;  %v2944_v40 = vsel %vm2573_vm10, %v6102_v4, %v2943_v35  ;;  %3296 = vmatpush1.bf16.msra.mxu1 %v4883_v62  ;;  %v6417_v35 = vld [vmem:[#allocation7] ss:$0 sm:$0xff] }
 0x2f0   :  { %v2938_v61 = vsel %vm2575_vm11, %v6023_v58, %v2937_v0  ;;  %v1205_v16 = vmax.f32 %v7149_v9, %v1151_v29  ;;  %v2829_v32 = vsel %vm2583_vm15, %v6342_v51, %v2828_v19  ;;  %v2945_v53 = vsel %vm2575_vm11, %v6105_v43, %v2944_v40  ;;  %3297 = vmatprep.subr.bf16.mxu1 %v7145_v5 }
 0x2f1   :  { %v2939_v2 = vsel %vm2577_vm12, %v6030_v3, %v2938_v61  ;;  %v7151_v57 = vrot.slane %v7150_v13, 9  ;;  %v4809_v0 = vpack.i.bf16 %v2829_v32, %v2822_v8  ;;  %v2946_v62 = vsel %vm2577_vm12, %v6118_v24, %v2945_v53 }
 0x2f2   :  { %v2940_v29 = vsel %vm2579_vm13, %v6056_v37, %v2939_v2  ;;  %v1236_v19 = vadd.f32 %v6417_v35, %v1205_v16  ;;  %v2947_v40 = vsel %vm2579_vm13, %v6211_v20, %v2946_v62  ;;  %v7152_v9 = vrot.slane %v6187_v21, 9 }
 0x2f3   :  { %v2094_v33 = vmax.f32 %v7150_v13, %v7151_v57  ;;  %v2941_v61 = vsel %vm2581_vm14, %v6331_v36, %v2940_v29  ;;  %4810 = vrot.lane.b32.xlu1 %v4809_v0, %s5155_s29  ;;  %v2948_v2 = vsel %vm2581_vm14, %v6342_v51, %v2947_v40 }
 0x2f4   :  { %v2106_v5 = vmax.f32 %v6187_v21, %v7152_v9  ;;  %v2942_v32 = vsel %vm2583_vm15, %v6378_v63, %v2941_v61  ;;  %v1556_v16 = vcombine.high %v1236_v19, %v1236_v19  ;;  %v1563_v53 = vrot.slane %v1236_v19, %v5867_v41  ;;  %v1155_v9 = vpop.permute.xlu0 %1154 }
 0x2f5   :  { %v2190_v8 = vmax.f32 %v2094_v33, 0.0  ;;  %v2949_v13 = vsel %vm2583_vm15, %v6381_v18, %v2948_v2  ;;  %v3056_v21 = vsel %vm2571_vm9, %v6020_v12, %v6005_v45 }
 0x2f6   :  { %v2202_v57 = vmax.f32 %v2106_v5, 0.0  ;;  %v4814_v33 = vpack.i.bf16 %v2949_v13, %v2942_v32  ;;  %v1570_v0 = vrot.slane %v1556_v16, %v5867_v41  ;;  %v1571_v62 = vcombine.high %v1563_v53, %v1563_v53 }
 0x2f7   :  { %v3021_v29 = vrot.slane %v2190_v8, %v5875_v26  ;;  %v4346_v61 = vrot.slane %v1563_v53, 9  ;;  %v3057_v19 = vsel %vm2573_vm10, %v6023_v58, %v3056_v21  ;;  %v3063_v5 = vsel %vm2571_vm9, %v6102_v4, %v6094_v31  ;;  %v7153_v8 = vld [vmem:[#allocation25_spill] sm:$0xff]  ;;  %v7154_v58 = vld [vmem:[#allocation26_spill] sm:$0xff] }
 0x2f8   :  { %v3025_v40 = vrot.slane %v2202_v57, %v5875_v26  ;;  %v1206_v2 = vmax.f32 %v7153_v8, %v1153_v42  ;;  %4815 = vrot.lane.b32.xlu0 %v4814_v33, %s5156_s11  ;;  %v6448_v14 = vcombine.high %v1570_v0, %v1570_v0  ;;  %v4347_v32 = vrot.slane %v1571_v62, 9 }
 0x2f9   :  { %v4348_v16 = vrot.slane %v1570_v0, 9  ;;  %v2127_v13 = vmax.f32 %v1563_v53, %v4346_v61  ;;  %v3058_v12 = vsel %vm2575_vm11, %v6030_v3, %v3057_v19  ;;  %v3064_v57 = vsel %vm2573_vm10, %v6105_v43, %v3063_v5 }
 0x2fa   :  { %v1237_v21 = vadd.f32 %v6417_v35, %v1206_v2  ;;  %v1207_v45 = vmax.f32 %v7154_v58, %v1155_v9  ;;  %v6457_v42 = vmax.f32 %v1571_v62, %v4347_v32  ;;  %v3059_v53 = vsel %vm2577_vm12, %v6056_v37, %v3058_v12 }
 0x2fb   :  { %v6459_v33 = vmax.f32 %v1570_v0, %v4348_v16  ;;  %v2223_v8 = vmax.f32 %v2127_v13, 0.0  ;;  %v3065_v61 = vsel %vm2575_vm11, %v6118_v24, %v3064_v57  ;;  %v3060_v58 = vsel %vm2579_vm13, %v6331_v36, %v3059_v53 }
 0x2fc   :  { %v1573_v19 = vcombine.high %v1237_v21, %v1237_v21  ;;  %v1580_v5 = vrot.slane %v1237_v21, %v5867_v41  ;;  %v3066_v0 = vsel %vm2577_vm12, %v6211_v20, %v3065_v61  ;;  %v1238_v62 = vadd.f32 %v6417_v35, %v1207_v45  ;;  %v1157_v21 = vpop.permute.xlu0 %1156 }
 0x2fd   :  { %v6467_v2 = vrot.slane %v2223_v8, %v5875_v26  ;;  %v3061_v12 = vsel %vm2581_vm14, %v6378_v63, %v3060_v58  ;;  %v3067_v37 = vsel %vm2579_vm13, %v6342_v51, %v3066_v0 }
 0x2fe   :  { %v1587_v9 = vrot.slane %v1573_v19, %v5867_v41  ;;  %v1588_v32 = vcombine.high %v1580_v5, %v1580_v5  ;;  %v3062_v16 = vsel %vm2583_vm15, %v3021_v29, %v3061_v12  ;;  %v3068_v13 = vsel %vm2581_vm14, %v6381_v18, %v3067_v37  ;;  %v7155_v12 = vld [vmem:[#allocation27_spill] sm:$0xff] }
 0x2ff   :  { %v4350_v36 = vrot.slane %v1580_v5, 9  ;;  %v1590_v57 = vcombine.high %v1238_v62, %v1238_v62  ;;  %v3069_v20 = vsel %vm2583_vm15, %v3025_v40, %v3068_v13  ;;  %v1597_v51 = vrot.slane %v1238_v62, %v5867_v41 }
 0x300   :  { %v1589_v45 = vcombine.high %v1587_v9, %v1587_v9  ;;  %v4351_v8 = vrot.slane %v1588_v32, 9  ;;  %v4352_v53 = vrot.slane %v1587_v9, 9  ;;  %v4819_v63 = vpack.i.bf16 %v3069_v20, %v3062_v16 }
 0x301   :  { %v2131_v61 = vmax.f32 %v1580_v5, %v4350_v36  ;;  %v1604_v19 = vrot.slane %v1590_v57, %v5867_v41  ;;  %v1208_v4 = vmax.f32 %v7155_v12, %v1157_v21  ;;  %v1605_v37 = vcombine.high %v1597_v51, %v1597_v51 }
 0x302   :  { %v4353_v58 = vrot.slane %v1589_v45, 9  ;;  %v2132_v0 = vmax.f32 %v1588_v32, %v4351_v8  ;;  %v2133_v29 = vmax.f32 %v1587_v9, %v4352_v53  ;;  %4820 = vrot.lane.b32.xlu1 %v4819_v63, %s5157_s13  ;;  %v4354_v40 = vrot.slane %v1597_v51, 9  ;;  %v1159_v8 = vpop.permute.xlu1 %1158 }
 0x303   :  { %v2227_v18 = vmax.f32 %v2131_v61, 0.0  ;;  %v1606_v24 = vcombine.high %v1604_v19, %v1604_v19  ;;  %v4356_v16 = vrot.slane %v1604_v19, 9  ;;  %v4355_v62 = vrot.slane %v1605_v37, 9 }
 0x304   :  { %v2134_v13 = vmax.f32 %v1589_v45, %v4353_v58  ;;  %v2228_v3 = vmax.f32 %v2132_v0, 0.0  ;;  %v2229_v43 = vmax.f32 %v2133_v29, 0.0  ;;  %v2135_v57 = vmax.f32 %v1597_v51, %v4354_v40 }
 0x305   :  { %v2510_v5 = vrot.slane %v2227_v18, %v5875_v26  ;;  %v4357_v36 = vrot.slane %v1606_v24, 9  ;;  %v2137_v21 = vmax.f32 %v1604_v19, %v4356_v16  ;;  %v2136_v53 = vmax.f32 %v1605_v37, %v4355_v62 }
 0x306   :  { %v2230_v20 = vmax.f32 %v2134_v13, 0.0  ;;  %v2514_v9 = vrot.slane %v2228_v3, %v5875_v26  ;;  %v2518_v32 = vrot.slane %v2229_v43, %v5875_v26  ;;  %v2231_v61 = vmax.f32 %v2135_v57, 0.0  ;;  %v1161_v40 = vpop.permute.xlu1 %1160 }
 0x307   :  { %v2138_v63 = vmax.f32 %v1606_v24, %v4357_v36  ;;  %v1239_v45 = vadd.f32 %v6417_v35, %v1208_v4  ;;  %v2233_v51 = vmax.f32 %v2137_v21, 0.0  ;;  %v2232_v43 = vmax.f32 %v2136_v53, 0.0 }
 0x308   :  { %v6492_v58 = vrot.slane %v2230_v20, %v5875_v26  ;;  %v2620_v0 = vsel %vm2571_vm9, %v2514_v9, %v2510_v5  ;;  %v6496_v29 = vsel %vm2571_vm9, %v2518_v32, %v2514_v9  ;;  %v6502_v12 = vrot.slane %v2231_v61, %v5875_v26  ;;  %v7157_v5 = vld [vmem:[#allocation28_spill] sm:$0xff] }
 0x309   :  { %v6499_v3 = vsel %vm2573_vm10, %v2518_v32, %v2620_v0  ;;  %v2234_v19 = vmax.f32 %v2138_v63, 0.0  ;;  %v6509_v24 = vrot.slane %v2233_v51, %v5875_v26  ;;  %v1607_v18 = vcombine.high %v1239_v45, %v1239_v45  ;;  %v7158_v63 = vld [vmem:[#allocation29_spill] sm:$0xff] }
 0x30a   :  { %7156 = vst [vmem:[#allocation46_spill] sm:$0xff] %v6499_v3  ;;  %v6506_v4 = vsel %vm2571_vm9, %v6492_v58, %v2518_v32  ;;  %v1614_v37 = vrot.slane %v1239_v45, %v5867_v41  ;;  %v6513_v13 = vrot.slane %v2232_v43, %v5875_v26  ;;  %v1209_v62 = vmax.f32 %v7157_v5, %v1159_v8 }
 0x30b   :  { %v6516_v16 = vrot.slane %v2234_v19, %v5875_v26  ;;  %v2711_v36 = vsel %vm2573_vm10, %v6252_v7, %v6256_v60  ;;  %v1621_v57 = vrot.slane %v1607_v18, %v5867_v41  ;;  %v2718_v8 = vsel %vm2573_vm10, %v6324_v23, %v6328_v15 }
 0x30c   :  { %v1622_v20 = vcombine.high %v1614_v37, %v1614_v37  ;;  %v4358_v9 = vrot.slane %v1614_v37, 9  ;;  %v2712_v32 = vsel %vm2575_vm11, %v6241_v34, %v2711_v36  ;;  %v1240_v21 = vadd.f32 %v6417_v35, %v1209_v62 }
 0x30d   :  { %v2713_v53 = vsel %vm2577_vm12, %v6244_v52, %v2712_v32  ;;  %v1210_v61 = vmax.f32 %v7158_v63, %v1161_v40  ;;  %v6532_v45 = vcombine.high %v1621_v57, %v1621_v57  ;;  %v4360_v0 = vrot.slane %v1621_v57, 9 }
 0x30e   :  { %v4359_v60 = vrot.slane %v1622_v20, 9  ;;  %v2139_v51 = vmax.f32 %v1614_v37, %v4358_v9  ;;  %v1624_v43 = vcombine.high %v1240_v21, %v1240_v21  ;;  %v1631_v19 = vrot.slane %v1240_v21, %v5867_v41 }
 0x30f   :  { %v2714_v18 = vsel %vm2579_vm13, %v6247_v46, %v2713_v53  ;;  %v2719_v5 = vsel %vm2575_vm11, %v6359_v1, %v2718_v8  ;;  %v6542_v15 = vmax.f32 %v1621_v57, %v4360_v0  ;;  %v1241_v57 = vadd.f32 %v6417_v35, %v1210_v61 }
 0x310   :  { %v6540_v36 = vmax.f32 %v1622_v20, %v4359_v60  ;;  %v2235_v40 = vmax.f32 %v2139_v51, 0.0  ;;  %v1638_v32 = vrot.slane %v1624_v43, %v5867_v41  ;;  %v1639_v63 = vcombine.high %v1631_v19, %v1631_v19 }
 0x311   :  { %v4362_v37 = vrot.slane %v1631_v19, 9  ;;  %v2715_v9 = vsel %vm2581_vm14, %v6263_v38, %v2714_v18  ;;  %v2720_v20 = vsel %vm2577_vm12, %v6367_v28, %v2719_v5  ;;  %v1641_v62 = vcombine.high %v1241_v57, %v1241_v57 }
 0x312   :  { %v6548_v21 = vrot.slane %v2235_v40, %v5875_v26  ;;  %v2716_v53 = vsel %vm2583_vm15, %v6298_v10, %v2715_v9  ;;  %v1640_v8 = vcombine.high %v1638_v32, %v1638_v32  ;;  %v4363_v60 = vrot.slane %v1639_v63, 9 }
 0x313   :  { %v4364_v0 = vrot.slane %v1638_v32, 9  ;;  %v2143_v51 = vmax.f32 %v1631_v19, %v4362_v37  ;;  %v2721_v43 = vsel %vm2579_vm13, %v6370_v44, %v2720_v20  ;;  %v1648_v18 = vrot.slane %v1241_v57, %v5867_v41 }
 0x314   :  { %v2212_v40 = vmax.f32 %v6292_v49, 0.0  ;;  %v4365_v31 = vrot.slane %v1640_v8, 9  ;;  %v2144_v25 = vmax.f32 %v1639_v63, %v4363_v60  ;;  %v2722_v5 = vsel %vm2581_vm14, %v6387_v30, %v2721_v43 }
 0x315   :  { %v2145_v9 = vmax.f32 %v1638_v32, %v4364_v0  ;;  %v2239_v11 = vmax.f32 %v2143_v51, 0.0  ;;  %v1655_v61 = vrot.slane %v1641_v62, %v5867_v41  ;;  %v1656_v3 = vcombine.high %v1648_v18, %v1648_v18 }
 0x316   :  { %v4366_v22 = vrot.slane %v1648_v18, 9  ;;  %v2146_v19 = vmax.f32 %v1640_v8, %v4365_v31  ;;  %v2240_v37 = vmax.f32 %v2144_v25, 0.0  ;;  %v2723_v57 = vsel %vm2583_vm15, %v6467_v2, %v2722_v5 }
 0x317   :  { %v2241_v6 = vmax.f32 %v2145_v9, 0.0  ;;  %v2542_v20 = vrot.slane %v2239_v11, %v5875_v26  ;;  %v1657_v49 = vcombine.high %v1655_v61, %v1655_v61  ;;  %v4367_v39 = vrot.slane %v1656_v3, 9 }
 0x318   :  { %v4368_v63 = vrot.slane %v1655_v61, 9  ;;  %v2242_v32 = vmax.f32 %v2146_v19, 0.0  ;;  %v2546_v60 = vrot.slane %v2240_v37, %v5875_v26  ;;  %v4824_v51 = vpack.i.bf16 %v2723_v57, %v2716_v53 }
 0x319   :  { %v2550_v0 = vrot.slane %v2241_v6, %v5875_v26  ;;  %v4369_v62 = vrot.slane %v1657_v49, 9  ;;  %v2147_v43 = vmax.f32 %v1648_v18, %v4366_v22  ;;  %v2148_v27 = vmax.f32 %v1656_v3, %v4367_v39 }
 0x31a   :  { %v2149_v31 = vmax.f32 %v1655_v61, %v4368_v63  ;;  %v6568_v25 = vrot.slane %v2242_v32, %v5875_v26  ;;  %v2627_v11 = vsel %vm2571_vm9, %v2546_v60, %v2542_v20  ;;  %4825 = vrot.lane.b32.xlu0 %v4824_v51, %s5154_s28  ;;  %v2224_v9 = vmax.f32 %v6457_v42, 0.0 }
 0x31b   :  { %v6572_v8 = vsel %vm2571_vm9, %v2550_v0, %v2546_v60  ;;  %v6577_v5 = vsel %vm2573_vm10, %v2550_v0, %v2627_v11  ;;  %v2150_v6 = vmax.f32 %v1657_v49, %v4369_v62  ;;  %v2243_v53 = vmax.f32 %v2147_v43, 0.0 }
 0x31c   :  { %v2244_v22 = vmax.f32 %v2148_v27, 0.0  ;;  %v6581_v39 = vsel %vm2571_vm9, %v6568_v25, %v2550_v0  ;;  %v2245_v3 = vmax.f32 %v2149_v31, 0.0  ;;  %v2789_v18 = vrot.slane %v2212_v40, %v5875_v26 }
 0x31d   :  { %v2793_v61 = vrot.slane %v2224_v9, %v5875_v26  ;;  %v2246_v19 = vmax.f32 %v2150_v6, 0.0  ;;  %v6586_v37 = vrot.slane %v2243_v53, %v5875_v26  ;;  %v2831_v27 = vsel %vm2573_vm10, %v6241_v34, %v6268_v47 }
 0x31e   :  { %v6589_v42 = vrot.slane %v2244_v22, %v5875_v26  ;;  %v6595_v20 = vrot.slane %v2245_v3, %v5875_v26  ;;  %v2832_v57 = vsel %vm2575_vm11, %v6244_v52, %v2831_v27  ;;  %v2838_v40 = vsel %vm2573_vm10, %v6359_v1, %v6339_v17 }
 0x31f   :  { %v2213_v49 = vmax.f32 %v6294_v54, 0.0  ;;  %v6604_v63 = vrot.slane %v2246_v19, %v5875_v26  ;;  %v2833_v32 = vsel %vm2577_vm12, %v6247_v46, %v2832_v57  ;;  %v2839_v47 = vsel %vm2575_vm11, %v6367_v28, %v2838_v40 }
 0x320   :  { %v2225_v60 = vmax.f32 %v6459_v33, 0.0  ;;  %v2834_v0 = vsel %vm2579_vm13, %v6263_v38, %v2833_v32  ;;  %v2840_v51 = vsel %vm2577_vm12, %v6370_v44, %v2839_v47  ;;  %v2950_v54 = vsel %vm2571_vm9, %v6241_v34, %v6252_v7 }
 0x321   :  { %v2909_v17 = vrot.slane %v2213_v49, %v5875_v26  ;;  %v2835_v62 = vsel %vm2581_vm14, %v6298_v10, %v2834_v0  ;;  %v2841_v43 = vsel %vm2579_vm13, %v6387_v30, %v2840_v51  ;;  %v2951_v31 = vsel %vm2573_vm10, %v6244_v52, %v2950_v54 }
 0x322   :  { %v2913_v33 = vrot.slane %v2225_v60, %v5875_v26  ;;  %v2836_v11 = vsel %vm2583_vm15, %v2789_v18, %v2835_v62  ;;  %v2842_v9 = vsel %vm2581_vm14, %v6467_v2, %v2841_v43  ;;  %v2952_v6 = vsel %vm2575_vm11, %v6247_v46, %v2951_v31 }
 0x323   :  { %v2957_v53 = vsel %vm2571_vm9, %v6359_v1, %v6324_v23  ;;  %v2843_v22 = vsel %vm2583_vm15, %v2793_v61, %v2842_v9  ;;  %v2953_v3 = vsel %vm2577_vm12, %v6263_v38, %v2952_v6  ;;  %v7159_v27 = vrot.slane %v6286_v56, 9 }
 0x324   :  { %v2958_v19 = vsel %vm2573_vm10, %v6367_v28, %v2957_v53  ;;  %v4829_v40 = vpack.i.bf16 %v2843_v22, %v2836_v11  ;;  %v2954_v49 = vsel %vm2579_vm13, %v6298_v10, %v2953_v3  ;;  %v7160_v47 = vrot.slane %v6448_v14, 9  ;;  %v1163_v11 = vpop.permute.xlu1 %1162 }
 0x325   :  { %v2118_v57 = vmax.f32 %v6286_v56, %v7159_v27  ;;  %v2959_v32 = vsel %vm2575_vm11, %v6370_v44, %v2958_v19  ;;  %v2955_v0 = vsel %vm2581_vm14, %v2789_v18, %v2954_v49  ;;  %v3070_v56 = vsel %vm2571_vm9, %v6244_v52, %v6241_v34 }
 0x326   :  { %v2130_v60 = vmax.f32 %v6448_v14, %v7160_v47  ;;  %v2960_v51 = vsel %vm2577_vm12, %v6387_v30, %v2959_v32  ;;  %4830 = vrot.lane.b32.xlu1 %v4829_v40, %s5155_s29  ;;  %v2956_v62 = vsel %vm2583_vm15, %v2909_v17, %v2955_v0  ;;  %v3071_v14 = vsel %vm2573_vm10, %v6247_v46, %v3070_v56  ;;  %v7161_v47 = vld [vmem:[#allocation30_spill] sm:$0xff] }
 0x327   :  { %v2214_v54 = vmax.f32 %v2118_v57, 0.0  ;;  %v2961_v43 = vsel %vm2579_vm13, %v6467_v2, %v2960_v51  ;;  %v3072_v53 = vsel %vm2575_vm11, %v6263_v38, %v3071_v14  ;;  %v3077_v22 = vsel %vm2571_vm9, %v6367_v28, %v6359_v1 }
 0x328   :  { %v2226_v31 = vmax.f32 %v2130_v60, 0.0  ;;  %v2962_v9 = vsel %vm2581_vm14, %v2793_v61, %v2961_v43  ;;  %v3073_v27 = vsel %vm2577_vm12, %v6298_v10, %v3072_v53  ;;  %v3078_v57 = vsel %vm2573_vm10, %v6370_v44, %v3077_v22 }
 0x329   :  { %v3029_v6 = vrot.slane %v2214_v54, %v5875_v26  ;;  %v2963_v3 = vsel %vm2583_vm15, %v2913_v33, %v2962_v9  ;;  %v3074_v49 = vsel %vm2579_vm13, %v2789_v18, %v3073_v27  ;;  %v3079_v32 = vsel %vm2575_vm11, %v6387_v30, %v3078_v57 }
 0x32a   :  { %v3033_v19 = vrot.slane %v2226_v31, %v5875_v26  ;;  %v4834_v40 = vpack.i.bf16 %v2963_v3, %v2956_v62  ;;  %v1211_v60 = vmax.f32 %v7161_v47, %v1163_v11  ;;  %v3075_v0 = vsel %vm2581_vm14, %v2909_v17, %v3074_v49 }
 0x32b   :  { %v3080_v51 = vsel %vm2577_vm12, %v6467_v2, %v3079_v32  ;;  %v2725_v10 = vsel %vm2573_vm10, %v6492_v58, %v6496_v29  ;;  %v2732_v54 = vsel %vm2573_vm10, %v6568_v25, %v6572_v8  ;;  %v3076_v18 = vsel %vm2583_vm15, %v3029_v6, %v3075_v0 }
 0x32c   :  { %4835 = vrot.lane.b32.xlu0 %v4834_v40, %s5156_s11  ;;  %v3081_v56 = vsel %vm2579_vm13, %v2793_v61, %v3080_v51  ;;  %v1242_v62 = vadd.f32 %v6417_v35, %v1211_v60  ;;  %v2726_v17 = vsel %vm2575_vm11, %v6502_v12, %v2725_v10  ;;  %v2733_v43 = vsel %vm2575_vm11, %v6586_v37, %v2732_v54 }
 0x32d   :  { %v3082_v2 = vsel %vm2581_vm14, %v2913_v33, %v3081_v56  ;;  %v2727_v29 = vsel %vm2577_vm12, %v6513_v13, %v2726_v17  ;;  %v2236_v8 = vmax.f32 %v6540_v36, 0.0  ;;  %v2734_v9 = vsel %vm2577_vm12, %v6589_v42, %v2733_v43 }
 0x32e   :  { %v3083_v31 = vsel %vm2583_vm15, %v3033_v19, %v3082_v2  ;;  %v1658_v14 = vcombine.high %v1242_v62, %v1242_v62  ;;  %v1665_v61 = vrot.slane %v1242_v62, %v5867_v41  ;;  %v2728_v35 = vsel %vm2579_vm13, %v6509_v24, %v2727_v29 }
 0x32f   :  { %v4839_v11 = vpack.i.bf16 %v3083_v31, %v3076_v18  ;;  %v2729_v33 = vsel %vm2581_vm14, %v6516_v16, %v2728_v35  ;;  %v6708_v6 = vrot.slane %v2236_v8, %v5875_v26  ;;  %v2735_v19 = vsel %vm2579_vm13, %v6595_v20, %v2734_v9 }
 0x330   :  { %v1672_v36 = vrot.slane %v1658_v14, %v5867_v41  ;;  %v1673_v53 = vcombine.high %v1665_v61, %v1665_v61  ;;  %v4370_v22 = vrot.slane %v1665_v61, 9  ;;  %v2730_v3 = vsel %vm2583_vm15, %v6548_v21, %v2729_v33 }
 0x331   :  { %4840 = vrot.lane.b32.xlu1 %v4839_v11, %s5157_s13  ;;  %v2845_v27 = vsel %vm2573_vm10, %v6502_v12, %v6506_v4  ;;  %v2852_v57 = vsel %vm2573_vm10, %v6586_v37, %v6581_v39  ;;  %v2237_v40 = vmax.f32 %v6542_v15, 0.0  ;;  %v2736_v0 = vsel %vm2581_vm14, %v6604_v63, %v2735_v19 }
 0x332   :  { %v1674_v49 = vcombine.high %v1672_v36, %v1672_v36  ;;  %v4371_v32 = vrot.slane %v1673_v53, 9  ;;  %v4372_v47 = vrot.slane %v1672_v36, 9  ;;  %v2151_v60 = vmax.f32 %v1665_v61, %v4370_v22 }
 0x333   :  { %v2846_v51 = vsel %vm2575_vm11, %v6513_v13, %v2845_v27  ;;  %v2853_v10 = vsel %vm2575_vm11, %v6589_v42, %v2852_v57  ;;  %v2917_v4 = vrot.slane %v2237_v40, %v5875_v26  ;;  %v2964_v17 = vsel %vm2571_vm9, %v6502_v12, %v6492_v58 }
 0x334   :  { %v4373_v54 = vrot.slane %v1674_v49, 9  ;;  %v2152_v18 = vmax.f32 %v1673_v53, %v4371_v32  ;;  %v2153_v39 = vmax.f32 %v1672_v36, %v4372_v47  ;;  %v2247_v56 = vmax.f32 %v2151_v60, 0.0 }
 0x335   :  { %v2847_v15 = vsel %vm2577_vm12, %v6509_v24, %v2846_v51  ;;  %v2854_v62 = vsel %vm2577_vm12, %v6595_v20, %v2853_v10  ;;  %v2971_v2 = vsel %vm2571_vm9, %v6586_v37, %v6568_v25  ;;  %v2965_v35 = vsel %vm2573_vm10, %v6513_v13, %v2964_v17 }
 0x336   :  { %v2681_v29 = vrot.slane %v2247_v56, %v5875_v26  ;;  %v2248_v43 = vmax.f32 %v2152_v18, 0.0  ;;  %v2848_v8 = vsel %vm2579_vm13, %v6516_v16, %v2847_v15  ;;  %v2855_v31 = vsel %vm2579_vm13, %v6604_v63, %v2854_v62 }
 0x337   :  { %v2849_v14 = vsel %vm2581_vm14, %v6548_v21, %v2848_v8  ;;  %v2249_v61 = vmax.f32 %v2153_v39, 0.0  ;;  %v2972_v11 = vsel %vm2573_vm10, %v6589_v42, %v2971_v2  ;;  %v2966_v27 = vsel %vm2575_vm11, %v6509_v24, %v2965_v35 }
 0x338   :  { %v2737_v33 = vsel %vm2583_vm15, %v2681_v29, %v2736_v0  ;;  %v2801_v9 = vrot.slane %v2248_v43, %v5875_v26  ;;  %v2850_v36 = vsel %vm2583_vm15, %v6708_v6, %v2849_v14  ;;  %v2856_v53 = vsel %vm2581_vm14, %v2681_v29, %v2855_v31 }
 0x339   :  { %v4844_v22 = vpack.i.bf16 %v2737_v33, %v2730_v3  ;;  %v2921_v19 = vrot.slane %v2249_v61, %v5875_v26  ;;  %v2973_v57 = vsel %vm2575_vm11, %v6595_v20, %v2972_v11  ;;  %v2967_v32 = vsel %vm2577_vm12, %v6516_v16, %v2966_v27  ;;  %v4791_v61 = vpop.permute.xlu1 %4790 }
 0x33a   :  { %v2857_v40 = vsel %vm2583_vm15, %v2801_v9, %v2856_v53  ;;  %v2974_v47 = vsel %vm2577_vm12, %v6604_v63, %v2973_v57  ;;  %v7162_v60 = vrot.slane %v6532_v45, 9  ;;  %v2968_v51 = vsel %vm2579_vm13, %v6548_v21, %v2967_v32  ;;  %v7164_v57 = vld [vmem:[#allocation37_spill] sm:$0xff] }
 0x33b   :  { %4845 = vrot.lane.b32.xlu0 %v4844_v22, %s5154_s28  ;;  %v4849_v0 = vpack.i.bf16 %v2857_v40, %v2850_v36  ;;  %v2975_v10 = vsel %vm2579_vm13, %v2681_v29, %v2974_v47  ;;  %v2154_v18 = vmax.f32 %v1674_v49, %v4373_v54  ;;  %v2969_v39 = vsel %vm2581_vm14, %v6708_v6, %v2968_v51  ;;  %v4786_v54 = vpop.permute.xlu0 %4785  ;;  %v7163_v36 = vld [vmem:[#allocation31_spill] sm:$0xff]  ;;  %v7165_v47 = vld [vmem:[#allocation34_spill] sm:$0xff] }
 0x33c   :  { %v2142_v3 = vmax.f32 %v6532_v45, %v7162_v60  ;;  %v2976_v56 = vsel %vm2581_vm14, %v2801_v9, %v2975_v10  ;;  %v3084_v62 = vsel %vm2571_vm9, %v6513_v13, %v6502_v12  ;;  %v2970_v45 = vsel %vm2583_vm15, %v2917_v4, %v2969_v39  ;;  %v7167_v51 = vld [vmem:[#allocation35_spill] sm:$0xff]  ;;  %v7168_v10 = vld [vmem:[#allocation33_spill] sm:$0xff] }
 0x33d   :  { %4850 = vrot.lane.b32.xlu1 %v4849_v0, %s5155_s29  ;;  %v2977_v17 = vsel %vm2583_vm15, %v2921_v19, %v2976_v56  ;;  %v2250_v2 = vmax.f32 %v2154_v18, 0.0  ;;  %v3085_v49 = vsel %vm2573_vm10, %v6509_v24, %v3084_v62  ;;  %v3091_v14 = vsel %vm2571_vm9, %v6589_v42, %v6586_v37  ;;  %v7166_v0 = vld [vmem:[#allocation32_spill] sm:$0xff] }
 0x33e   :  { %v2238_v15 = vmax.f32 %v2142_v3, 0.0  ;;  %v4854_v43 = vpack.i.bf16 %v2977_v17, %v2970_v45  ;;  %v3086_v31 = vsel %vm2575_vm11, %v6516_v16, %v3085_v49  ;;  %v3092_v33 = vsel %vm2573_vm10, %v6595_v20, %v3091_v14  ;;  %v7169_v18 = vld [vmem:[#allocation36_spill] sm:$0xff] }
 0x33f   :  { %v3041_v35 = vrot.slane %v2250_v2, %v5875_v26  ;;  %v3087_v11 = vsel %vm2577_vm12, %v6548_v21, %v3086_v31  ;;  %v2576_v53 = vsel %vm2575_vm11, %v5885_v59, %v7163_v36  ;;  %v3093_v27 = vsel %vm2575_vm11, %v6604_v63, %v3092_v33  ;;  %v4796_v39 = vpop.permute.xlu0 %4795 }
 0x340   :  { %v3037_v8 = vrot.slane %v2238_v15, %v5875_v26  ;;  %4855 = vrot.lane.b32.xlu0 %v4854_v43, %s5156_s11  ;;  %v3088_v22 = vsel %vm2579_vm13, %v6708_v6, %v3087_v11  ;;  %v2578_v26 = vsel %vm2577_vm12, %v5898_v48, %v2576_v53  ;;  %v2587_v21 = vsel %vm2575_vm11, %v5957_v55, %v7164_v57  ;;  %v7170_v15 = vld [vmem:[#allocation38_spill] sm:$0xff]  ;;  %v4801_v17 = vpop.permute.xlu1 %4800 }
 0x341   :  { %v3089_v40 = vsel %vm2581_vm14, %v2917_v4, %v3088_v22  ;;  %v3094_v32 = vsel %vm2577_vm12, %v2681_v29, %v3093_v27  ;;  %v2580_v59 = vsel %vm2579_vm13, %v5902_v50, %v2578_v26  ;;  %v2588_v6 = vsel %vm2577_vm12, %v7165_v47, %v2587_v21  ;;  %v4884_v43 = vld [vmem:[#allocation8 + $0x58] ss:$0 sps:$4 sm:$0x33]  }
 0x342   :  { %v3090_v60 = vsel %vm2583_vm15, %v3037_v8, %v3089_v40  ;;  %v3095_v3 = vsel %vm2579_vm13, %v2801_v9, %v3094_v32  ;;  %v2582_v48 = vsel %vm2581_vm14, %v7166_v0, %v2580_v59  ;;  %v2589_v55 = vsel %vm2579_vm13, %v7167_v51, %v2588_v6  ;;  %v7171_v40 = vld [vmem:[#allocation53_spill] sm:$0xff]  ;;  %v7172_v47 = vld [vmem:[#allocation54_spill] sm:$0xff] }
 0x343   :  { %v3096_v4 = vsel %vm2581_vm14, %v2921_v19, %v3095_v3  ;;  %v2584_v29 = vsel %vm2583_vm15, %v7168_v10, %v2582_v48  ;;  %v2590_v50 = vsel %vm2581_vm14, %v7169_v18, %v2589_v55  ;;  %v4788_v62 = vunpack.i.h.bf16 %v4786_v54  ;;  %v7176_v55 = vld [vmem:[#allocation48_spill] sm:$0xff] }
 0x344   :  { %v3097_v56 = vsel %vm2583_vm15, %v3041_v35, %v3096_v4  ;;  %v2591_v9 = vsel %vm2583_vm15, %v7170_v15, %v2590_v50  ;;  %v4787_v45 = vunpack.i.l.bf16 %v4786_v54  ;;  %v4793_v49 = vunpack.i.h.bf16 %v4791_v61  ;;  %v7181_v50 = vld [vmem:[#allocation50_spill] sm:$0xff] }
 0x345   :  { %v4859_v2 = vpack.i.bf16 %v3097_v56, %v3090_v60  ;;  %v4792_v19 = vunpack.i.l.bf16 %v4791_v61  ;;  %v3124_v8 = vsel %vm3122_vm0, %v2591_v9, %v4788_v62  ;;  %v4798_v14 = vunpack.i.h.bf16 %v4796_v39  ;;  %v7182_v56 = vld [vmem:[#allocation44_spill] sm:$0xff]  ;;  %v7183_v9 = vld [vmem:[#allocation51_spill] sm:$0xff] }
 0x346   :  { %v3123_v31 = vsel %vm3122_vm0, %v2584_v29, %v4787_v45  ;;  %v4797_v11 = vunpack.i.l.bf16 %v4796_v39  ;;  %v3133_v35 = vsel %vm3131_vm1, %v3124_v8, %v4793_v49  ;;  %v4803_v36 = vunpack.i.h.bf16 %v4801_v17  ;;  %v7184_v49 = vld [vmem:[#allocation45_spill] sm:$0xff] }
 0x347   :  { %4860 = vrot.lane.b32.xlu1 %v4859_v2, %s5157_s13  ;;  %v3132_v33 = vsel %vm3131_vm1, %v3123_v31, %v4792_v19  ;;  %v4802_v54 = vunpack.i.l.bf16 %v4801_v17  ;;  %v3273_v61 = vsel %vm3271_vm2, %v4884_v43, 0  ;;  %v3142_v57 = vsel %vm3140_vm5, %v3133_v35, %v4798_v14  ;;  %v7185_v43 = vld [vmem:[#allocation52_spill] sm:$0xff] }
 0x348   :  { %v3151_v22 = vsel %vm3149_vm3, %v4798_v14, %v4803_v36  ;;  %v3141_v27 = vsel %vm3140_vm5, %v3132_v33, %v4797_v11  ;;  %3298 = vmatpush1.bf16.msra.mxu1 %v3273_v61  ;;  %v2608_v32 = vsel %vm2575_vm11, %v6252_v7, %v7171_v40  ;;  %v2615_v6 = vsel %vm2575_vm11, %v6324_v23, %v7172_v47  ;;  %v7173_v23 = vld [vmem:[#allocation46_spill] sm:$0xff] }
 0x349   :  { %v3150_v53 = vsel %vm3149_vm3, %v4797_v11, %v4802_v54  ;;  %v3158_v21 = vpack.c.bf16 %v3142_v57, %v3141_v27  ;;  %v2609_v59 = vsel %vm2577_vm12, %v6241_v34, %v2608_v32  ;;  %v2616_v3 = vsel %vm2577_vm12, %v6359_v1, %v2615_v6 }
 0x34a   :  { %v3159_v26 = vpack.c.bf16 %v3151_v22, %v3150_v53  ;;  %v2610_v60 = vsel %vm2579_vm13, %v6244_v52, %v2609_v59  ;;  %v2617_v7 = vsel %vm2579_vm13, %v6367_v28, %v2616_v3  ;;  %v2622_v51 = vsel %vm2575_vm11, %v6492_v58, %v7173_v23 }
 0x34b   :  { %v2611_v0 = vsel %vm2581_vm14, %v6247_v46, %v2610_v60  ;;  %v2618_v48 = vsel %vm2581_vm14, %v6370_v44, %v2617_v7  ;;  %v2629_v52 = vsel %vm2575_vm11, %v6568_v25, %v6577_v5  ;;  %v2623_v1 = vsel %vm2577_vm12, %v6502_v12, %v2622_v51  ;;  %v7174_v5 = vld [vmem:[#allocation42_spill] sm:$0xff] }
 0x34c   :  { %4386 = vmatprep.mubr.msk.bf16.mxu1 %vm3258_vm4, %v3159_v26  ;;  %v2612_v34 = vsel %vm2583_vm15, %v6263_v38, %v2611_v0  ;;  %v2619_v46 = vsel %vm2583_vm15, %v6387_v30, %v2618_v48  ;;  %v2630_v38 = vsel %vm2577_vm12, %v6586_v37, %v2629_v52  ;;  %v2624_v28 = vsel %vm2579_vm13, %v6513_v13, %v2623_v1  ;;  %v7175_v37 = vld [vmem:[#allocation40_spill] sm:$0xff] }
 0x34d   :  { %3308 = vmatmul.mubr.bf16.vlgmr.msra.gmra.mrb[0].mxu1 %v3158_v21  ;;  %v2631_v44 = vsel %vm2579_vm13, %v6589_v42, %v2630_v38  ;;  %v2625_v58 = vsel %vm2581_vm14, %v6509_v24, %v2624_v28  ;;  %v2594_v13 = vsel %vm2575_vm11, %v7175_v37, %v7174_v5  ;;  %v7177_v42 = vld [vmem:[#allocation47_spill] sm:$0xff] }
 0x34e   :  { %v2632_v25 = vsel %vm2581_vm14, %v6595_v20, %v2631_v44  ;;  %v6880_v30 = vsel %vm2583_vm15, %v6516_v16, %v2625_v58  ;;  %v2601_v4 = vsel %vm2575_vm11, %v7177_v42, %v7176_v55  ;;  %v7178_v24 = vld [vmem:[#allocation39_spill] sm:$0xff]  ;;  %v7179_v20 = vld [vmem:[#allocation49_spill] sm:$0xff] }
 0x34f   :  { %v6884_v12 = vsel %vm2583_vm15, %v6604_v63, %v2632_v25  ;;  %v2595_v10 = vsel %vm2577_vm12, %v7178_v24, %v2594_v13  ;;  %v2602_v29 = vsel %vm2577_vm12, %v7179_v20, %v2601_v4  ;;  %v7180_v16 = vld [vmem:[#allocation43_spill] sm:$0xff] }
 0x350   :  { %v2596_v18 = vsel %vm2579_vm13, %v7180_v16, %v2595_v10  ;;  %v2603_v63 = vsel %vm2579_vm13, %v7181_v50, %v2602_v29 }
 0x351   :  { %v2597_v15 = vsel %vm2581_vm14, %v7182_v56, %v2596_v18  ;;  %v2604_v62 = vsel %vm2581_vm14, %v7183_v9, %v2603_v63 }
 0x352   :  { %v2598_v19 = vsel %vm2583_vm15, %v7184_v49, %v2597_v15  ;;  %v2605_v8 = vsel %vm2583_vm15, %v7185_v43, %v2604_v62 }
 0x358   :  { %v4806_v39 = vpop.permute.xlu0 %4805 }
 0x359   :  { %v4808_v45 = vunpack.i.h.bf16 %v4806_v39  ;;  %v4807_v17 = vunpack.i.l.bf16 %v4806_v39 }
 0x35b   :  { %v3126_v11 = vsel %vm3122_vm0, %v2605_v8, %v4808_v45  ;;  %v3125_v35 = vsel %vm3122_vm0, %v2598_v19, %v4807_v17 }
 0x365   :  { %v4811_v2 = vpop.permute.xlu1 %4810 }
 0x366   :  { %v4813_v31 = vunpack.i.h.bf16 %v4811_v2  ;;  %v4812_v14 = vunpack.i.l.bf16 %v4811_v2 }
 0x368   :  { %v3135_v61 = vsel %vm3131_vm1, %v3126_v11, %v4813_v31  ;;  %v3134_v53 = vsel %vm3131_vm1, %v3125_v35, %v4812_v14 }
 0x36a   :  { %v4816_v33 = vpop.permute.xlu0 %4815 }
 0x36b   :  { %v4818_v36 = vunpack.i.h.bf16 %v4816_v33  ;;  %v4817_v54 = vunpack.i.l.bf16 %v4816_v33 }
 0x36d   :  { %v3143_v22 = vsel %vm3140_vm5, %v3134_v53, %v4817_v54  ;;  %v3144_v27 = vsel %vm3140_vm5, %v3135_v61, %v4818_v36 }
 0x36e   :  { %v3160_v26 = vpack.c.bf16 %v3144_v27, %v3143_v22 }
 0x374   :  { %v4821_v57 = vpop.permute.xlu1 %4820 }
 0x375   :  { %v4823_v21 = vunpack.i.h.bf16 %v4821_v57  ;;  %v4822_v40 = vunpack.i.l.bf16 %v4821_v57  ;;  %v5159_v57 = vmov 0.0  }
 0x376   :  { %4459 = vmatprep.subr.bf16.mxu1 %v5159_v57 }
 0x377   :  { %v3153_v32 = vsel %vm3149_vm3, %v4818_v36, %v4823_v21  ;;  %v3152_v59 = vsel %vm3149_vm3, %v4817_v54, %v4822_v40  ;;  %v6953_v40 = vld [vmem:[#allocation10] ss:$0 sm:$0xff] }
 0x378   :  { %v3161_v47 = vpack.c.bf16 %v3153_v32, %v3152_v59 }
 0x37a   :  { %4387 = vmatprep.mubr.msk.bf16.mxu1 %vm3258_vm4, %v3161_v47 }
 0x37b   :  { %3316 = vmatmul.mubr.bf16.gmra.mrb[4].mxu1 %v3160_v26  ;;  %v4885_v26 = vld [vmem:[#allocation11] sm:$0xff]  }
 0x37c   :  { %4460 = vmatpush3.bf16.msra.mxu1 %v4885_v26 }
 0x37d   :  { %4461 = vmatprep.subr.bf16.mxu1 %v5159_v57 }
 0x38c   :  { %v4826_v6 = vpop.permute.xlu0 %4825 }
 0x38d   :  { %v4828_v60 = vunpack.i.h.bf16 %v4826_v6  ;;  %v4827_v3 = vunpack.i.l.bf16 %v4826_v6 }
 0x38f   :  { %v3128_v23 = vsel %vm3122_vm0, %v2619_v46, %v4828_v60  ;;  %v3127_v51 = vsel %vm3122_vm0, %v2612_v34, %v4827_v3 }
 0x398   :  { %v4831_v0 = vpop.permute.xlu1 %4830 }
 0x399   :  { %v4833_v7 = vunpack.i.h.bf16 %v4831_v0  ;;  %v4832_v48 = vunpack.i.l.bf16 %v4831_v0 }
 0x39b   :  { %v3137_v28 = vsel %vm3131_vm1, %v3128_v23, %v4833_v7  ;;  %v3136_v44 = vsel %vm3131_vm1, %v3127_v51, %v4832_v48 }
 0x39e   :  { %v4836_v52 = vpop.permute.xlu0 %4835 }
 0x39f   :  { %v4838_v1 = vunpack.i.h.bf16 %v4836_v52  ;;  %v4837_v38 = vunpack.i.l.bf16 %v4836_v52 }
 0x3a1   :  { %v3145_v58 = vsel %vm3140_vm5, %v3136_v44, %v4837_v38  ;;  %v3146_v25 = vsel %vm3140_vm5, %v3137_v28, %v4838_v1 }
 0x3a2   :  { %v3162_v5 = vpack.c.bf16 %v3146_v25, %v3145_v58 }
 0x3a3   :  { %v4841_v37 = vpop.permute.xlu1 %4840 }
 0x3a4   :  { %v4843_v13 = vunpack.i.h.bf16 %v4841_v37  ;;  %v4842_v55 = vunpack.i.l.bf16 %v4841_v37 }
 0x3a6   :  { %v3155_v42 = vsel %vm3149_vm3, %v4838_v1, %v4843_v13  ;;  %v3154_v46 = vsel %vm3149_vm3, %v4837_v38, %v4842_v55 }
 0x3a7   :  { %v3163_v34 = vpack.c.bf16 %v3155_v42, %v3154_v46  ;;  %v4886_v46 = vld [vmem:[#allocation11 + $0x8] sm:$0xff]  }
 0x3a8   :  { %4462 = vmatpush3.bf16.msra.mxu1 %v4886_v46 }
 0x3a9   :  { %4388 = vmatprep.mubr.msk.bf16.mxu1 %vm3258_vm4, %v3163_v34  ;;  %4467 = vmatprep.subr.bf16.mxu1 %v5159_v57 }
 0x3aa   :  { %3324 = vmatmul.mubr.bf16.gmra.mrb[8].mxu1 %v3162_v5 }
 0x3ad   :  { %v4846_v4 = vpop.permute.xlu0 %4845 }
 0x3ae   :  { %v4848_v24 = vunpack.i.h.bf16 %v4846_v4  ;;  %v4847_v10 = vunpack.i.l.bf16 %v4846_v4 }
 0x3af   :  { %v4851_v20 = vpop.permute.xlu1 %4850 }
 0x3b0   :  { %v4853_v29 = vunpack.i.h.bf16 %v4851_v20  ;;  %v4852_v16 = vunpack.i.l.bf16 %v4851_v20  ;;  %v3130_v18 = vsel %vm3122_vm0, %v6884_v12, %v4848_v24  ;;  %v3129_v50 = vsel %vm3122_vm0, %v6880_v30, %v4847_v10 }
 0x3b2   :  { %v4856_v63 = vpop.permute.xlu0 %4855  ;;  %v3139_v15 = vsel %vm3131_vm1, %v3130_v18, %v4853_v29  ;;  %v3138_v9 = vsel %vm3131_vm1, %v3129_v50, %v4852_v16 }
 0x3b3   :  { %v4858_v39 = vunpack.i.h.bf16 %v4856_v63  ;;  %v4857_v56 = vunpack.i.l.bf16 %v4856_v63 }
 0x3b5   :  { %v3147_v62 = vsel %vm3140_vm5, %v3138_v9, %v4857_v56  ;;  %v3148_v45 = vsel %vm3140_vm5, %v3139_v15, %v4858_v39 }
 0x3b6   :  { %v3164_v17 = vpack.c.bf16 %v3148_v45, %v3147_v62 }
 0x3b9   :  { %v4861_v2 = vpop.permute.xlu1 %4860 }
 0x3ba   :  { %v4863_v49 = vunpack.i.h.bf16 %v4861_v2  ;;  %v4862_v19 = vunpack.i.l.bf16 %v4861_v2 }
 0x3bc   :  { %v3157_v12 = vsel %vm3149_vm3, %v4858_v39, %v4863_v49  ;;  %v3156_v43 = vsel %vm3149_vm3, %v4857_v56, %v4862_v19 }
 0x3bd   :  { %v3165_v30 = vpack.c.bf16 %v3157_v12, %v3156_v43 }
 0x3bf   :  { %4389 = vmatprep.mubr.msk.bf16.mxu1 %vm3258_vm4, %v3165_v30 }
 0x3c0   :  { %3332 = vmatmul.mubr.bf16.gmra.mrb[12].mxu1 %v3164_v17 }
 0x3c1   :  { %4463 = vmatprep.mubr.msk.bf16.mxu1 %vm5160_vm6, %v5159_v57 }
 0x420   :  { %v3309_v8 = vpop.f32.mrb[0].mxu1 }
 0x421   :  { %3348 = vrot.lane.b32.xlu0 %v3309_v8, %s5158_s1  ;;  %v3311_v31 = vpop.f32.mrb[1].mxu1 }
 0x422   :  { %v3312_v14 = vpop.f32.mrb[2].mxu1 }
 0x423   :  { %v3314_v11 = vpop.f32.mrb[3].mxu1 }
 0x425   :  { %3350 = vrot.lane.b32.xlu0 %v3312_v14, %s5158_s1 }
 0x44e   :  { %v6937_v35 = vpop.f32.mrb[4].mxu1 }
 0x44f   :  { %3352 = vrot.lane.b32.xlu1 %v6937_v35, %s5158_s1  ;;  %v3319_v33 = vpop.f32.mrb[5].mxu1 }
 0x450   :  { %v6940_v36 = vpop.f32.mrb[6].mxu1 }
 0x451   :  { %v3322_v54 = vpop.f32.mrb[7].mxu1 }
 0x453   :  { %3354 = vrot.lane.b32.xlu1 %v6940_v36, %s5158_s1 }
 0x47d   :  { %v6943_v61 = vpop.f32.mrb[8].mxu1 }
 0x47e   :  { %3356 = vrot.lane.b32.xlu0 %v6943_v61, %s5158_s1  ;;  %v3327_v53 = vpop.f32.mrb[9].mxu1 }
 0x47f   :  { %v6946_v22 = vpop.f32.mrb[10].mxu1 }
 0x480   :  { %3358 = vrot.lane.b32.xlu1 %v6946_v22, %s5158_s1  ;;  %v3330_v27 = vpop.f32.mrb[11].mxu1 }
 0x493   :  { %v6951_v21 = vpop.f32.mrb[12].mxu1  ;;  %v3349_v32 = vpop.permute.xlu0 %3348 }
 0x494   :  { %3360 = vrot.lane.b32.xlu0 %v6951_v21, %s5158_s1  ;;  %v3335_v59 = vpop.f32.mrb[13].mxu1  ;;  %v3372_v47 = vmax.f32 %v3309_v8, %v3349_v32 }
 0x495   :  { %v6956_v6 = vpop.f32.mrb[14].mxu1 }
 0x496   :  { %3362 = vrot.lane.b32.xlu1 %v6956_v6, %s5158_s1  ;;  %v3338_v60 = vpop.f32.mrb[15].mxu1  ;;  %v3387_v3 = vadd.f32 %v6953_v40, %v3372_v47 }
 0x497   :  { %v3351_v0 = vpop.permute.xlu0 %3350 }
 0x498   :  { %v3403_v7 = vcombine.high %v3387_v3, %v3387_v3  ;;  %v3410_v48 = vrot.slane %v3387_v3, %v5867_v41  ;;  %v3373_v23 = vmax.f32 %v3312_v14, %v3351_v0 }
 0x49a   :  { %v3417_v51 = vrot.slane %v3403_v7, %v5867_v41  ;;  %v3418_v52 = vcombine.high %v3410_v48, %v3410_v48  ;;  %v4391_v1 = vrot.slane %v3410_v48, 9  ;;  %v3388_v38 = vadd.f32 %v6953_v40, %v3373_v23 }
 0x49c   :  { %v3419_v28 = vcombine.high %v3417_v51, %v3417_v51  ;;  %v4392_v44 = vrot.slane %v3418_v52, 9  ;;  %v4393_v58 = vrot.slane %v3417_v51, 9  ;;  %v3667_v25 = vmax.f32 %v3410_v48, %v4391_v1 }
 0x49d   :  { %v3420_v5 = vcombine.high %v3388_v38, %v3388_v38  ;;  %v3427_v37 = vrot.slane %v3388_v38, %v5867_v41 }
 0x49e   :  { %v4394_v13 = vrot.slane %v3419_v28, 9  ;;  %v3668_v55 = vmax.f32 %v3418_v52, %v4392_v44  ;;  %v3669_v42 = vmax.f32 %v3417_v51, %v4393_v58  ;;  %v3699_v20 = vmax.f32 %v3667_v25, 0.0 }
 0x49f   :  { %v3434_v34 = vrot.slane %v3420_v5, %v5867_v41  ;;  %v3435_v4 = vcombine.high %v3427_v37, %v3427_v37  ;;  %v4395_v24 = vrot.slane %v3427_v37, 9 }
 0x4a0   :  { %v3670_v10 = vmax.f32 %v3419_v28, %v4394_v13  ;;  %v3700_v63 = vmax.f32 %v3668_v55, 0.0  ;;  %v3701_v39 = vmax.f32 %v3669_v42, 0.0  ;;  %v3732_v17 = vpack.c.bf16 %v3699_v20, %v3699_v20 }
 0x4a1   :  { %v3436_v29 = vcombine.high %v3434_v34, %v3434_v34  ;;  %v4396_v16 = vrot.slane %v3435_v4, 9  ;;  %v4397_v18 = vrot.slane %v3434_v34, 9  ;;  %v3671_v50 = vmax.f32 %v3427_v37, %v4395_v24 }
 0x4a2   :  { %v3702_v45 = vmax.f32 %v3670_v10, 0.0  ;;  %v3838_v43 = vpack.c.bf16 %v3700_v63, %v3700_v63  ;;  %v3938_v30 = vpack.c.bf16 %v3701_v39, %v3701_v39  ;;  %v3752_v33 = vunpack.c.l.b16 %v3732_v17 }
 0x4a3   :  { %v4398_v56 = vrot.slane %v3436_v29, 9  ;;  %v3672_v15 = vmax.f32 %v3435_v4, %v4396_v16  ;;  %v3673_v9 = vmax.f32 %v3434_v34, %v4397_v18  ;;  %v3703_v62 = vmax.f32 %v3671_v50, 0.0 }
 0x4a4   :  { %v4038_v54 = vpack.c.bf16 %v3702_v45, %v3702_v45  ;;  %v3859_v59 = vunpack.c.l.b16 %v3838_v43  ;;  %v3959_v47 = vunpack.c.l.b16 %v3938_v30 }
 0x4a5   :  { %v3674_v2 = vmax.f32 %v3436_v29, %v4398_v56  ;;  %v3704_v49 = vmax.f32 %v3672_v15, 0.0  ;;  %v3705_v19 = vmax.f32 %v3673_v9, 0.0  ;;  %v3733_v12 = vpack.c.bf16 %v3703_v62, %v3703_v62 }
 0x4a6   :  { %v4059_v48 = vunpack.c.l.b16 %v4038_v54 }
 0x4a7   :  { %v3706_v8 = vmax.f32 %v3674_v2, 0.0  ;;  %v3753_v31 = vunpack.c.l.b16 %v3733_v12  ;;  %v3839_v14 = vpack.c.bf16 %v3704_v49, %v3704_v49  ;;  %v3939_v11 = vpack.c.bf16 %v3705_v19, %v3705_v19 }
 0x4a9   :  { %v3760_v53 = vrot.slane %v3753_v31, 7  ;;  %v3860_v27 = vunpack.c.l.b16 %v3839_v14  ;;  %v3960_v26 = vunpack.c.l.b16 %v3939_v11  ;;  %v4039_v32 = vpack.c.bf16 %v3706_v8, %v3706_v8 }
 0x4ab   :  { %v3761_v60 = vsel %vm2571_vm9, %v3760_v53, %v3752_v33  ;;  %v3867_v3 = vrot.slane %v3860_v27, 7  ;;  %v3967_v0 = vrot.slane %v3960_v26, 7  ;;  %v4060_v7 = vunpack.c.l.b16 %v4039_v32 }
 0x4ad   :  { %v3868_v23 = vsel %vm2571_vm9, %v3867_v3, %v3859_v59  ;;  %v3968_v51 = vsel %vm2571_vm9, %v3967_v0, %v3959_v47  ;;  %v4067_v52 = vrot.slane %v4060_v7, 7 }
 0x4af   :  { %v6972_v1 = vsel %vm2571_vm9, %v4067_v52, %v4059_v48  ;;  %vm4175_vm9 = vcmask 408576  }
 0x4c1   :  { %v3353_v38 = vpop.permute.xlu1 %3352 }
 0x4c2   :  { %v3374_v28 = vmax.f32 %v6937_v35, %v3353_v38 }
 0x4c4   :  { %v3389_v44 = vadd.f32 %v6953_v40, %v3374_v28 }
 0x4c5   :  { %v3355_v58 = vpop.permute.xlu1 %3354 }
 0x4c6   :  { %v3437_v25 = vcombine.high %v3389_v44, %v3389_v44  ;;  %v3444_v5 = vrot.slane %v3389_v44, %v5867_v41  ;;  %v3375_v37 = vmax.f32 %v6940_v36, %v3355_v58 }
 0x4c8   :  { %v3451_v13 = vrot.slane %v3437_v25, %v5867_v41  ;;  %v3452_v55 = vcombine.high %v3444_v5, %v3444_v5  ;;  %v4399_v42 = vrot.slane %v3444_v5, 9  ;;  %v3390_v46 = vadd.f32 %v6953_v40, %v3375_v37 }
 0x4ca   :  { %v3453_v34 = vcombine.high %v3451_v13, %v3451_v13  ;;  %v4400_v4 = vrot.slane %v3452_v55, 9  ;;  %v4401_v24 = vrot.slane %v3451_v13, 9  ;;  %v3675_v10 = vmax.f32 %v3444_v5, %v4399_v42 }
 0x4cb   :  { %v3454_v20 = vcombine.high %v3390_v46, %v3390_v46  ;;  %v3461_v35 = vrot.slane %v3390_v46, %v5867_v41 }
 0x4cc   :  { %v4402_v29 = vrot.slane %v3453_v34, 9  ;;  %v3676_v16 = vmax.f32 %v3452_v55, %v4400_v4  ;;  %v3677_v18 = vmax.f32 %v3451_v13, %v4401_v24  ;;  %v3707_v50 = vmax.f32 %v3675_v10, 0.0 }
 0x4cd   :  { %v3468_v63 = vrot.slane %v3454_v20, %v5867_v41  ;;  %v3469_v36 = vcombine.high %v3461_v35, %v3461_v35  ;;  %v4403_v39 = vrot.slane %v3461_v35, 9 }
 0x4ce   :  { %v3678_v56 = vmax.f32 %v3453_v34, %v4402_v29  ;;  %v3708_v15 = vmax.f32 %v3676_v16, 0.0  ;;  %v3709_v9 = vmax.f32 %v3677_v18, 0.0  ;;  %v3734_v62 = vpack.c.bf16 %v3707_v50, %v3707_v50 }
 0x4cf   :  { %v3470_v45 = vcombine.high %v3468_v63, %v3468_v63  ;;  %v4404_v17 = vrot.slane %v3469_v36, 9  ;;  %v4405_v2 = vrot.slane %v3468_v63, 9  ;;  %v3679_v49 = vmax.f32 %v3461_v35, %v4403_v39 }
 0x4d0   :  { %v3710_v19 = vmax.f32 %v3678_v56, 0.0  ;;  %v3754_v12 = vunpack.c.l.b16 %v3734_v62  ;;  %v3840_v43 = vpack.c.bf16 %v3708_v15, %v3708_v15  ;;  %v3940_v30 = vpack.c.bf16 %v3709_v9, %v3709_v9 }
 0x4d1   :  { %v4406_v8 = vrot.slane %v3470_v45, 9  ;;  %v3680_v31 = vmax.f32 %v3469_v36, %v4404_v17  ;;  %v3681_v14 = vmax.f32 %v3468_v63, %v4405_v2  ;;  %v3711_v11 = vmax.f32 %v3679_v49, 0.0 }
 0x4d2   :  { %v3762_v33 = vrot.slane %v3754_v12, 6  ;;  %v3861_v54 = vunpack.c.l.b16 %v3840_v43  ;;  %v3961_v53 = vunpack.c.l.b16 %v3940_v30  ;;  %v4040_v27 = vpack.c.bf16 %v3710_v19, %v3710_v19 }
 0x4d3   :  { %v3682_v26 = vmax.f32 %v3470_v45, %v4406_v8  ;;  %v3712_v32 = vmax.f32 %v3680_v31, 0.0  ;;  %v3713_v59 = vmax.f32 %v3681_v14, 0.0  ;;  %v3735_v47 = vpack.c.bf16 %v3711_v11, %v3711_v11 }
 0x4d4   :  { %v3763_v3 = vsel %vm2573_vm10, %v3762_v33, %v3761_v60  ;;  %v3869_v0 = vrot.slane %v3861_v54, 6  ;;  %v3969_v7 = vrot.slane %v3961_v53, 6  ;;  %v4061_v48 = vunpack.c.l.b16 %v4040_v27 }
 0x4d5   :  { %v3714_v52 = vmax.f32 %v3682_v26, 0.0  ;;  %v3755_v38 = vunpack.c.l.b16 %v3735_v47  ;;  %v3841_v28 = vpack.c.bf16 %v3712_v32, %v3712_v32  ;;  %v3941_v44 = vpack.c.bf16 %v3713_v59, %v3713_v59 }
 0x4d6   :  { %v3870_v58 = vsel %vm2573_vm10, %v3869_v0, %v3868_v23  ;;  %v3970_v25 = vsel %vm2573_vm10, %v3969_v7, %v3968_v51  ;;  %v4069_v5 = vrot.slane %v4061_v48, 6 }
 0x4d7   :  { %v3764_v37 = vrot.slane %v3755_v38, 5  ;;  %v3862_v13 = vunpack.c.l.b16 %v3841_v28  ;;  %v3962_v55 = vunpack.c.l.b16 %v3941_v44  ;;  %v4041_v42 = vpack.c.bf16 %v3714_v52, %v3714_v52 }
 0x4d8   :  { %v4070_v46 = vsel %vm2573_vm10, %v4069_v5, %v6972_v1  ;;  %vm4223_vm10 = vcmask 80896  }
 0x4d9   :  { %v3765_v60 = vsel %vm2575_vm11, %v3764_v37, %v3763_v3  ;;  %v3871_v34 = vrot.slane %v3862_v13, 5  ;;  %v3971_v4 = vrot.slane %v3962_v55, 5  ;;  %v4062_v24 = vunpack.c.l.b16 %v4041_v42 }
 0x4db   :  { %v6989_v10 = vsel %vm2575_vm11, %v3871_v34, %v3870_v58  ;;  %v6992_v23 = vsel %vm2575_vm11, %v3971_v4, %v3970_v25  ;;  %v4071_v51 = vrot.slane %v4062_v24, 5 }
 0x4dd   :  { %v6995_v20 = vsel %vm2575_vm11, %v4071_v51, %v4070_v46 }
 0x4f0   :  { %v3357_v35 = vpop.permute.xlu0 %3356 }
 0x4f1   :  { %v3376_v29 = vmax.f32 %v6943_v61, %v3357_v35 }
 0x4f2   :  { %v3359_v16 = vpop.permute.xlu1 %3358 }
 0x4f3   :  { %v3391_v1 = vadd.f32 %v6953_v40, %v3376_v29  ;;  %v3377_v18 = vmax.f32 %v6946_v22, %v3359_v16 }
 0x4f5   :  { %v3471_v50 = vcombine.high %v3391_v1, %v3391_v1  ;;  %v3478_v63 = vrot.slane %v3391_v1, %v5867_v41  ;;  %v3392_v36 = vadd.f32 %v6953_v40, %v3377_v18 }
 0x4f7   :  { %v3485_v39 = vrot.slane %v3471_v50, %v5867_v41  ;;  %v3486_v56 = vcombine.high %v3478_v63, %v3478_v63  ;;  %v4407_v15 = vrot.slane %v3478_v63, 9  ;;  %v3488_v9 = vcombine.high %v3392_v36, %v3392_v36 }
 0x4f8   :  { %v3495_v62 = vrot.slane %v3392_v36, %v5867_v41 }
 0x4f9   :  { %v3487_v45 = vcombine.high %v3485_v39, %v3485_v39  ;;  %v4408_v17 = vrot.slane %v3486_v56, 9  ;;  %v4409_v61 = vrot.slane %v3485_v39, 9  ;;  %v3683_v2 = vmax.f32 %v3478_v63, %v4407_v15 }
 0x4fa   :  { %v3502_v49 = vrot.slane %v3488_v9, %v5867_v41  ;;  %v3503_v19 = vcombine.high %v3495_v62, %v3495_v62  ;;  %v4411_v22 = vrot.slane %v3495_v62, 9 }
 0x4fb   :  { %v4410_v12 = vrot.slane %v3487_v45, 9  ;;  %v3684_v43 = vmax.f32 %v3486_v56, %v4408_v17  ;;  %v3685_v30 = vmax.f32 %v3485_v39, %v4409_v61  ;;  %v3715_v8 = vmax.f32 %v3683_v2, 0.0 }
 0x4fc   :  { %v3504_v31 = vcombine.high %v3502_v49, %v3502_v49  ;;  %v4412_v14 = vrot.slane %v3503_v19, 9  ;;  %v4413_v11 = vrot.slane %v3502_v49, 9  ;;  %v3687_v33 = vmax.f32 %v3495_v62, %v4411_v22 }
 0x4fd   :  { %v3686_v54 = vmax.f32 %v3487_v45, %v4410_v12  ;;  %v3716_v53 = vmax.f32 %v3684_v43, 0.0  ;;  %v3717_v27 = vmax.f32 %v3685_v30, 0.0  ;;  %v3736_v26 = vpack.c.bf16 %v3715_v8, %v3715_v8 }
 0x4fe   :  { %v4414_v32 = vrot.slane %v3504_v31, 9  ;;  %v3688_v59 = vmax.f32 %v3503_v19, %v4412_v14  ;;  %v3689_v47 = vmax.f32 %v3502_v49, %v4413_v11  ;;  %v3719_v3 = vmax.f32 %v3687_v33, 0.0 }
 0x4ff   :  { %v3718_v0 = vmax.f32 %v3686_v54, 0.0  ;;  %v3756_v7 = vunpack.c.l.b16 %v3736_v26  ;;  %v3842_v48 = vpack.c.bf16 %v3716_v53, %v3716_v53  ;;  %v3942_v52 = vpack.c.bf16 %v3717_v27, %v3717_v27 }
 0x500   :  { %v3690_v38 = vmax.f32 %v3504_v31, %v4414_v32  ;;  %v3720_v28 = vmax.f32 %v3688_v59, 0.0  ;;  %v3721_v44 = vmax.f32 %v3689_v47, 0.0  ;;  %v3737_v58 = vpack.c.bf16 %v3719_v3, %v3719_v3 }
 0x501   :  { %v3766_v25 = vrot.slane %v3756_v7, 4  ;;  %v3863_v5 = vunpack.c.l.b16 %v3842_v48  ;;  %v3963_v37 = vunpack.c.l.b16 %v3942_v52  ;;  %v4042_v13 = vpack.c.bf16 %v3718_v0, %v3718_v0 }
 0x502   :  { %v3722_v55 = vmax.f32 %v3690_v38, 0.0  ;;  %v3757_v42 = vunpack.c.l.b16 %v3737_v58  ;;  %v3843_v46 = vpack.c.bf16 %v3720_v28, %v3720_v28  ;;  %v3943_v34 = vpack.c.bf16 %v3721_v44, %v3721_v44 }
 0x503   :  { %v3767_v4 = vsel %vm2577_vm12, %v3766_v25, %v3765_v60  ;;  %v3873_v24 = vrot.slane %v3863_v5, 4  ;;  %v3973_v51 = vrot.slane %v3963_v37, 4  ;;  %v4063_v35 = vunpack.c.l.b16 %v4042_v13 }
 0x504   :  { %v3768_v29 = vrot.slane %v3757_v42, 3  ;;  %v3864_v16 = vunpack.c.l.b16 %v3843_v46  ;;  %v3964_v1 = vunpack.c.l.b16 %v3943_v34  ;;  %v4043_v18 = vpack.c.bf16 %v3722_v55, %v3722_v55 }
 0x505   :  { %v3874_v50 = vsel %vm2577_vm12, %v3873_v24, %v6989_v10  ;;  %v3974_v63 = vsel %vm2577_vm12, %v3973_v51, %v6992_v23  ;;  %v4073_v36 = vrot.slane %v4063_v35, 4 }
 0x506   :  { %v3769_v39 = vsel %vm2579_vm13, %v3768_v29, %v3767_v4  ;;  %v3875_v56 = vrot.slane %v3864_v16, 3  ;;  %v3975_v15 = vrot.slane %v3964_v1, 3  ;;  %v4064_v9 = vunpack.c.l.b16 %v4043_v18  ;;  %v3361_v60 = vpop.permute.xlu0 %3360 }
 0x507   :  { %v3378_v62 = vmax.f32 %v6951_v21, %v3361_v60  ;;  %v4074_v45 = vsel %vm2577_vm12, %v4073_v36, %v6995_v20 }
 0x508   :  { %v4075_v17 = vrot.slane %v4064_v9, 3  ;;  %v3363_v61 = vpop.permute.xlu1 %3362  ;;  %v7015_v2 = vsel %vm2579_vm13, %v3875_v56, %v3874_v50  ;;  %v7018_v10 = vsel %vm2579_vm13, %v3975_v15, %v3974_v63 }
 0x509   :  { %v3393_v23 = vadd.f32 %v6953_v40, %v3378_v62  ;;  %v3379_v49 = vmax.f32 %v6956_v6, %v3363_v61 }
 0x50a   :  { %v7023_v19 = vsel %vm2579_vm13, %v4075_v17, %v4074_v45 }
 0x50b   :  { %v3505_v22 = vcombine.high %v3393_v23, %v3393_v23  ;;  %v3512_v21 = vrot.slane %v3393_v23, %v5867_v41  ;;  %v3394_v20 = vadd.f32 %v6953_v40, %v3379_v49 }
 0x50d   :  { %v3519_v12 = vrot.slane %v3505_v22, %v5867_v41  ;;  %v3520_v43 = vcombine.high %v3512_v21, %v3512_v21  ;;  %v4415_v30 = vrot.slane %v3512_v21, 9  ;;  %v3522_v8 = vcombine.high %v3394_v20, %v3394_v20 }
 0x50e   :  { %v3529_v31 = vrot.slane %v3394_v20, %v5867_v41  ;;  %v4887_v20 = vld [vmem:[#allocation11 + $0x10] sm:$0xff]  }
 0x50f   :  { %v3521_v14 = vcombine.high %v3519_v12, %v3519_v12  ;;  %v4416_v11 = vrot.slane %v3520_v43, 9  ;;  %v4417_v33 = vrot.slane %v3519_v12, 9  ;;  %v3691_v54 = vmax.f32 %v3512_v21, %v4415_v30 }
 0x510   :  { %v3536_v6 = vrot.slane %v3522_v8, %v5867_v41  ;;  %v3537_v53 = vcombine.high %v3529_v31, %v3529_v31  ;;  %v4419_v27 = vrot.slane %v3529_v31, 9 }
 0x511   :  { %v4418_v26 = vrot.slane %v3521_v14, 9  ;;  %v3692_v32 = vmax.f32 %v3520_v43, %v4416_v11  ;;  %v3693_v59 = vmax.f32 %v3519_v12, %v4417_v33  ;;  %v3723_v47 = vmax.f32 %v3691_v54, 0.0  ;;  %v4890_v11 = vld [vmem:[#allocation11 + $0x28] sm:$0xff]   ;;  %v4891_v33 = vld [vmem:[#allocation11 + $0x30] sm:$0xff]  }
 0x512   :  { %v3538_v40 = vcombine.high %v3536_v6, %v3536_v6  ;;  %v4420_v3 = vrot.slane %v3537_v53, 9  ;;  %v4421_v0 = vrot.slane %v3536_v6, 9  ;;  %v3695_v7 = vmax.f32 %v3529_v31, %v4419_v27 }
 0x513   :  { %v3694_v48 = vmax.f32 %v3521_v14, %v4418_v26  ;;  %v3724_v52 = vmax.f32 %v3692_v32, 0.0  ;;  %v3725_v38 = vmax.f32 %v3693_v59, 0.0  ;;  %v3738_v28 = vpack.c.bf16 %v3723_v47, %v3723_v47  ;;  %v4894_v26 = vld [vmem:[#allocation14 + $0x8] sm:$0xff]   ;;  %v4895_v32 = vld [vmem:[#allocation14 + $0x10] sm:$0xff]  }
 0x514   :  { %v4422_v44 = vrot.slane %v3538_v40, 9  ;;  %v3696_v58 = vmax.f32 %v3537_v53, %v4420_v3  ;;  %v3697_v25 = vmax.f32 %v3536_v6, %v4421_v0  ;;  %v3727_v5 = vmax.f32 %v3695_v7, 0.0  ;;  %v4892_v6 = vld [vmem:[#allocation11 + $0x38] sm:$0xff]   ;;  %v4893_v53 = vld [vmem:[#allocation14] sm:$0xff]  }
 0x515   :  { %v3726_v37 = vmax.f32 %v3694_v48, 0.0  ;;  %v3758_v41 = vunpack.c.l.b16 %v3738_v28  ;;  %v3844_v13 = vpack.c.bf16 %v3724_v52, %v3724_v52  ;;  %v3944_v55 = vpack.c.bf16 %v3725_v38, %v3725_v38  ;;  %v4896_v59 = vld [vmem:[#allocation14 + $0x18] ss:$0 sps:$4 sm:$0x11]  }
 0x516   :  { %v3698_v42 = vmax.f32 %v3538_v40, %v4422_v44  ;;  %v3728_v46 = vmax.f32 %v3696_v58, 0.0  ;;  %v3729_v34 = vmax.f32 %v3697_v25, 0.0  ;;  %v3739_v4 = vpack.c.bf16 %v3727_v5, %v3727_v5  ;;  %v4426_v40 = vld [vmem:[#allocation13] ss:$0 sm:$0xff]  ;;  %v4436_v44 = vld [vmem:[#allocation16] ss:$0 sm:$0xff] }
 0x517   :  { %v3770_v24 = vrot.slane %v3758_v41, 2  ;;  %v3865_v51 = vunpack.c.l.b16 %v3844_v13  ;;  %v3965_v35 = vunpack.c.l.b16 %v3944_v55  ;;  %v4044_v29 = vpack.c.bf16 %v3726_v37, %v3726_v37 }
 0x518   :  { %v3730_v16 = vmax.f32 %v3698_v42, 0.0  ;;  %v3759_v1 = vunpack.c.l.b16 %v3739_v4  ;;  %v3845_v18 = vpack.c.bf16 %v3728_v46, %v3728_v46  ;;  %v3945_v50 = vpack.c.bf16 %v3729_v34, %v3729_v34 }
 0x519   :  { %v3771_v63 = vsel %vm2581_vm14, %v3770_v24, %v3769_v39  ;;  %v3877_v36 = vrot.slane %v3865_v51, 2  ;;  %v3977_v56 = vrot.slane %v3965_v35, 2  ;;  %v4065_v15 = vunpack.c.l.b16 %v4044_v29 }
 0x51a   :  { %v3772_v9 = vrot.slane %v3759_v1, 1  ;;  %v3866_v60 = vunpack.c.l.b16 %v3845_v18  ;;  %v3966_v62 = vunpack.c.l.b16 %v3945_v50  ;;  %v4045_v45 = vpack.c.bf16 %v3730_v16, %v3730_v16 }
 0x51b   :  { %v4077_v17 = vrot.slane %v4065_v15, 2  ;;  %v3878_v61 = vsel %vm2581_vm14, %v3877_v36, %v7015_v2  ;;  %v3978_v23 = vsel %vm2581_vm14, %v3977_v56, %v7018_v10  ;;  %v4888_v2 = vld [vmem:[#allocation11 + $0x18] sm:$0xff]   ;;  %v4181_v47 = vsel %vm4179_vm8, %v4896_v59, 0 }
 0x51c   :  { %v3773_v49 = vsel %vm2583_vm15, %v3772_v9, %v3771_v63  ;;  %v3879_v22 = vrot.slane %v3866_v60, 1  ;;  %v3979_v21 = vrot.slane %v3966_v62, 1  ;;  %v4066_v39 = vunpack.c.l.b16 %v4045_v45 }
 0x51d   :  { %v3774_v12 = vpack.c.b16 %v3773_v49, %v3773_v49  ;;  %v4078_v43 = vsel %vm2581_vm14, %v4077_v17, %v7023_v19  ;;  %v4889_v19 = vld [vmem:[#allocation11 + $0x20] sm:$0xff]  }
 0x51e   :  { %v4079_v30 = vrot.slane %v4066_v39, 1  ;;  %v3880_v8 = vsel %vm2583_vm15, %v3879_v22, %v3878_v61  ;;  %v3980_v31 = vsel %vm2583_vm15, %v3979_v21, %v3978_v23 }
 0x51f   :  { %4464 = vmatmul.mubr.msk.bf16.vlgmr.msra.gmra.mrb[16].mxu1 %vm3787_vm7, %v3774_v12  ;;  %v3881_v14 = vpack.c.b16 %v3880_v8, %v3880_v8  ;;  %v3981_v54 = vpack.c.b16 %v3980_v31, %v3980_v31 }
 0x520   :  { %4468 = vmatpush3.bf16.msra.mxu1 %v4887_v20  ;;  %4471 = vmatprep.mubr.msk.bf16.mxu1 %vm5160_vm6, %v5159_v57  ;;  %v4080_v10 = vsel %vm2583_vm15, %v4079_v30, %v4078_v43 }
 0x521   :  { %4469 = vmatprep.subr.bf16.mxu1 %v5159_v57  ;;  %v4081_v27 = vpack.c.b16 %v4080_v10, %v4080_v10 }
 0x524   :  { %4470 = vmatpush3.bf16.msra.mxu1 %v4888_v2 }
 0x525   :  { %4475 = vmatprep.subr.bf16.mxu1 %v5159_v57 }
 0x52b   :  { %4472 = vmatmul.mubr.msk.bf16.vlgmr.msra.gmra.mrb[16].mxu1 %vm3787_vm7, %v3881_v14 }
 0x52c   :  { %4476 = vmatpush3.bf16.msra.mxu1 %v4889_v19  ;;  %4479 = vmatprep.mubr.msk.bf16.mxu1 %vm5160_vm6, %v5159_v57 }
 0x52d   :  { %4477 = vmatprep.subr.bf16.mxu1 %v5159_v57 }
 0x530   :  { %4478 = vmatpush3.bf16.msra.mxu1 %v4890_v11 }
 0x531   :  { %4483 = vmatprep.subr.bf16.mxu1 %v5159_v57 }
 0x537   :  { %4480 = vmatmul.mubr.msk.bf16.vlgmr.msra.gmra.mrb[16].mxu1 %vm3787_vm7, %v3981_v54 }
 0x538   :  { %4484 = vmatpush3.bf16.msra.mxu1 %v4891_v33  ;;  %4487 = vmatprep.mubr.msk.bf16.mxu1 %vm5160_vm6, %v5159_v57 }
 0x539   :  { %4485 = vmatprep.subr.bf16.mxu1 %v5159_v57 }
 0x53c   :  { %4486 = vmatpush3.bf16.msra.mxu1 %v4892_v6 }
 0x53d   :  { %4491 = vmatprep.subr.bf16.mxu1 %v5159_v57 }
 0x543   :  { %4488 = vmatmul.mubr.msk.bf16.vlgmr.msra.gmra.mrb[16].mxu1 %vm3787_vm7, %v4081_v27 }
 0x544   :  { %4492 = vmatpush3.bf16.msra.mxu1 %v4893_v53  ;;  %4499 = vmatprep.mubr.msk.bf16.mxu1 %vm5160_vm6, %v5159_v57 }
 0x545   :  { %4493 = vmatprep.subr.bf16.mxu1 %v5159_v57 }
 0x548   :  { %4494 = vmatpush3.bf16.msra.mxu1 %v4894_v26 }
 0x549   :  { %4495 = vmatprep.subr.bf16.mxu1 %v5159_v57 }
 0x54c   :  { %4496 = vmatpush3.bf16.msra.mxu1 %v4895_v32 }
 0x54d   :  { %4497 = vmatprep.subr.bf16.mxu1 %v5159_v57 }
 0x550   :  { %4498 = vmatpush3.bf16.msra.mxu1 %v4181_v47 }
 0x616   :  { %v4131_v3 = vpop.f32.mrb[16].mxu1 }
 0x617   :  { %v4503_v0 = vadd.f32 %v4426_v40, %v4131_v3  ;;  %v4489_v7 = vpop.f32.mrb[17].mxu1 }
 0x618   :  { %v4134_v48 = vpop.f32.mrb[18].mxu1 }
 0x619   :  { %v4138_v52 = vmax.f32 %v4503_v0, 0.0  ;;  %v4490_v38 = vpop.f32.mrb[19].mxu1 }
 0x61b   :  { %v4139_v28 = vpack.c.bf16 %v4138_v52, %v4138_v52 }
 0x61d   :  { %4500 = vmatmul.mubr.msk.bf16.vlgmr.msra.gmra.mrb[20].mxu1 %vm4175_vm9, %v4139_v28 }
 0x6f0   :  { %v4217_v58 = vpop.f32.mrb[20].mxu1 }
 0x6f1   :  { %v4218_v25 = vadd.f32 %v4436_v44, %v4217_v58  ;;  %v4501_v5 = vpop.f32.mrb[21].mxu1 }
 0x6f2   :  { %v4220_v37 = vpop.f32.mrb[22].mxu1 }
 0x6f3   :  { %v4502_v41 = vpop.f32.mrb[23].mxu1  ;;  %v4224_v57 = vsel %vm4223_vm10, %v4218_v25, -inf }
 0x6f4   :  { %4225 = vmax.xlane.f32.xlu0 %v4224_v57 }
 0x781   :  { %v4226_v13 = vpop.xlane.xlu0 %4225 }
 0x782   :  { %v4227_v55 = vsub.f32 %v4218_v25, %v4226_v13 }
 0x784   :  { %v4228_v42 = vmul.f32 1.442695, %v4227_v55 }
 0x786   :  { %4897 = vpow2.f32 %v4228_v42 }
 0x790   :  { %v4898_v46 = vpop.eup %4897 }
 0x791   :  { %v4230_v34 = vsel %vm4223_vm10, %v4898_v46, 0.0 }
 0x792   :  { %4231 = vadd.xlane.f32.xlu1 %v4230_v34 }
 0x81f   :  { %v4232_v4 = vpop.xlane.xlu1 %4231 }
 0x820   :  { %4899 = vlog2.f32 %v4232_v4 }
 0x82a   :  { %v4900_v24 = vpop.eup %4899 }
 0x82b   :  { %v4234_v51 = vmul.f32 0.6931472, %v4900_v24 }
 0x82d   :  { %v4235_v35 = vsub.f32 %v4227_v55, %v4234_v51 }
 0x82f   :  { %4236 = vst.msk [vmem:[#allocation17] sm:$0xff] %vm4223_vm10, %v4235_v35 }
 0x830   :  { %5111 = shalt.err (!%p5108_p6)
}
 0x831   :  { %s5112_s4 = scalar_lea.hbm %s7086_s9, 128 }
 0x832   :  { %p5113_p7 = scmp.ne.s32.totalorder %s7086_s9, %s5112_s4  ;;  %p5116_p8 = scmp.lt.u32.totalorder %s5112_s4, %s7086_s9 }
 0x834   :  { %p5118_p9 = pnand %p5116_p8, %p5113_p7 }
 0x836   :  { %5121 = shalt.err (!%p5118_p9)
}
 0x837   :  { %4246 = dma.vmem_to_hbm [thread:$0]  %s4244_s14, 128, %s7086_s9, [#allocation4]  }
 0x838   :  { %5132 = dma.done.wait [#allocation4], 128  }
 0x839   :  { %5133 = vsyncadd [#allocation4], 4294967168 }
 0x83a   :  { %4250 = vsyncpa [#allocation3], 1 }
 0x83b   :  { %4251 = vsyncpa [#allocation6], 1 }
 0x83c   :  { %4252 = vsyncpa [#allocation9], 1 }
 0x83d   :  { %4253 = vsyncpa [#allocation12], 1 }
 0x83e   :  { %4254 = vsyncpa [#allocation15], 1 }
 0x83f   :  { %4255 = vsyncpa [#allocation4], 1 }

</bundles_post_ra>
